<compile_context>
chip_gen: v7x
topology: tpu7x:2x2x1
jax: 0.10.0
libtpu: 0.0.40
codegen_flags: <defaults>
</compile_context>

<pallas_src>
import functools
import math

import jax
import jax.numpy as jnp
from jax import lax
from jax.experimental import pallas as pl
from jax.experimental.pallas import tpu as pltpu


# -----------------------------------------------------------------------------
# Fused kernel: one grid step processes `bc` batch elements (folded on sublanes)
# through the entire model.
# -----------------------------------------------------------------------------
def _fused_decoder_kernel(
    smi_ref, seq_ref,                                    # inputs (2-D folded or 3-D (1,S,h))
    pe_src_ref, pe_tgt_ref,                              # (bc*Lm, D), (bc*Lt, D)
    sa_bias_ref, ca_bias_ref,                            # (H*bc*Lt, bc*Lt), (H*bc*Lt, bc*Lm)
    smi_w_ref, smi_b_ref, seq_w_ref, seq_b_ref,          # input projections
    sa_wqkv_ref, sa_bqkv_ref, sa_wo_ref, sa_bo_ref,      # self-attn (fused QKV)
    ca_wq_ref, ca_bq_ref, ca_wkv_ref, ca_bkv_ref, ca_wo_ref, ca_bo_ref,  # cross-attn
    w1_ref, b1_ref, w2_ref, b2_ref,                      # FFN
    ln_g_ref, ln_b_ref,                                  # 3 LayerNorms per layer
    fc_w_ref, fc_b_ref,                                  # final fc_out
    o_ref,                                               # (bc, 1, 1)
    ctx_ref,                                             # VMEM scratch (bc*Lt, D) f32
    *, n_layers, n_heads, d_model, d_head, bc, lt, eps,
):
    f32 = jnp.float32
    bf16 = jnp.bfloat16
    scale = 1.0 / math.sqrt(d_head)

    def mm(x, w):
        # bf16 MXU matmul with f32 accumulation (weights are already bf16).
        return jnp.dot(x.astype(bf16), w.astype(bf16), preferred_element_type=f32)

    def layer_norm(x, idx):
        g = ln_g_ref[idx]                                 # (1, D)
        b = ln_b_ref[idx]                                 # (1, D)
        mu = jnp.mean(x, axis=-1, keepdims=True)
        var = jnp.mean(jnp.square(x - mu), axis=-1, keepdims=True)
        return (x - mu) * lax.rsqrt(var + eps) * g + b

    def attention(q_all, kv_all, bias, wo, bo):
        # q_all: (Rq, D)    kv_all: (Rk, 2D) == [K | V]    bias: (Rq*H, Rk)
        rq = q_all.shape[0]
        k_t = kv_all[:, :d_model].T                       # one XLU transpose: (D, Rk)
        s_heads = []
        for h in range(n_heads):
            q_h = q_all[:, h * d_head:(h + 1) * d_head]           # (Rq, Dh)
            k_ht = k_t[h * d_head:(h + 1) * d_head, :]            # (Dh, Rk)
            s_heads.append(jnp.dot(q_h, k_ht, preferred_element_type=f32))
        # Heads stacked on sublanes -> ONE mask-add / max / exp / sum / recip.
        s = jnp.concatenate(s_heads, axis=0) * scale + bias       # (H*Rq, Rk)
        s = s - jnp.max(s, axis=-1, keepdims=True)
        p = jnp.exp(s)
        p = p * pl.reciprocal(jnp.sum(p, axis=-1, keepdims=True), approx=True)
        # Per-head context written at its lane offset -> single out-proj matmul.
        for h in range(n_heads):
            p_h = p[h * rq:(h + 1) * rq, :]                        # (Rq, Rk)
            v_h = kv_all[:, d_model + h * d_head: d_model + (h + 1) * d_head]
            ctx_ref[:, h * d_head:(h + 1) * d_head] = mm(p_h, v_h)
        return mm(ctx_ref[...], wo) + bo                           # (Rq, D)

    # ---- input projections + positional encoding --------------------------------
    smi_x = smi_ref[0] if len(smi_ref.shape) == 3 else smi_ref[...]   # (bc*Lm, smi_h)
    seq_x = seq_ref[0] if len(seq_ref.shape) == 3 else seq_ref[...]   # (bc*Lt, seq_h)

    mem = mm(smi_x, smi_w_ref[...]) + smi_b_ref[...] + pe_src_ref[...]   # (bc*Lm, D)
    tgt = mm(seq_x, seq_w_ref[...]) + seq_b_ref[...] + pe_tgt_ref[...]   # (bc*Lt, D)

    sa_bias = sa_bias_ref[...]
    ca_bias = ca_bias_ref[...]

    # TODO(synk): for n_layers >> 4 move this unrolled Python loop into a
    # lax.fori_loop / extra grid axis to bound code size and vreg pressure.
    for layer in range(n_layers):
        # -- masked (causal + batch-block-diagonal) self attention ---------------
        qkv = mm(tgt, sa_wqkv_ref[layer]) + sa_bqkv_ref[layer]            # (R, 3D)
        sa = attention(qkv[:, :d_model], qkv[:, d_model:],
                       sa_bias, sa_wo_ref[layer], sa_bo_ref[layer])
        tgt = layer_norm(tgt + sa, 3 * layer + 0)
        # -- cross attention over the memory (batch-block mask only) -------------
        q = mm(tgt, ca_wq_ref[layer]) + ca_bq_ref[layer]                  # (R, D)
        kv = mm(mem, ca_wkv_ref[layer]) + ca_bkv_ref[layer]               # (Rm, 2D)
        ca = attention(q, kv, ca_bias, ca_wo_ref[layer], ca_bo_ref[layer])
        tgt = layer_norm(tgt + ca, 3 * layer + 1)
        # -- feed forward ---------------------------------------------------------
        h1 = jnp.maximum(mm(tgt, w1_ref[layer]) + b1_ref[layer], 0.0)
        ff = mm(h1, w2_ref[layer]) + b2_ref[layer]
        tgt = layer_norm(tgt + ff, 3 * layer + 2)
        # NOTE: the PyTorch layer recomputes cross-attention only to return its
        # attention weights, which the top-level module never uses -> elided.

    # ---- final fc_out on the LAST target position of each batch element ---------
    y = mm(tgt, fc_w_ref[...]) + fc_b_ref[...]                            # (bc*Lt, 1)
    for b in range(bc):
        o_ref[b] = y[(b + 1) * lt - 1:(b + 1) * lt, :].astype(o_ref.dtype)


# -----------------------------------------------------------------------------
# Wrapper helpers
# -----------------------------------------------------------------------------
def positional_encoding_table(d_model, max_len):
    position = jnp.arange(max_len, dtype=jnp.float32)[:, None]
    div_term = jnp.exp(
        jnp.arange(0, d_model, 2, dtype=jnp.float32) * (-math.log(10000.0) / d_model))
    ang = position * div_term
    pe = jnp.zeros((max_len, d_model), jnp.float32)
    pe = pe.at[:, 0::2].set(jnp.sin(ang))
    pe = pe.at[:, 1::2].set(jnp.cos(ang))
    return pe


def _whole_array_spec(shape):
    zeros = (0,) * len(shape)
    return pl.BlockSpec(shape, lambda g, _z=zeros: _z)


def _grid_batch_split(batch):
    """Choose (num_grid_steps, batch_elements_per_step)."""
    kind = ""
    try:
        kind = jax.devices()[0].device_kind.lower()
    except Exception:
        pass
    multi_tc = any(tag in kind for tag in ("v7", "v4", "v5p"))
    if multi_tc and batch == 2:
        return 2, 1                  # one batch element per TensorCore
    if batch <= 8:
        return 1, batch              # fold whole batch into sublanes (v5e/v6e win)
    return batch, 1                  # large batch: one element per (serial) step


def _attention_biases(bc, lt, lm, n_heads):
    """Additive score masks, tiled across heads (heads stacked on sublanes)."""
    neg = jnp.float32(-1e30)
    bt = jnp.arange(bc * lt) // lt
    pt = jnp.arange(bc * lt) % lt
    bm = jnp.arange(bc * lm) // lm
    self_ok = (bt[:, None] == bt[None, :]) & (pt[None, :] <= pt[:, None])
    cross_ok = bt[:, None] == bm[None, :]
    sa = jnp.where(self_ok, jnp.float32(0.0), neg)
    ca = jnp.where(cross_ok, jnp.float32(0.0), neg)
    return jnp.tile(sa, (n_heads, 1)), jnp.tile(ca, (n_heads, 1))


def transformer_decoder_forward(params, smi, seq, args):
    """smi: (B, S_smi, smi_hidden)   seq: (B, S_seq, seq_hidden)  ->  (B, 1)."""
    d = args["att_dim"]
    nh = args["n_heads"]
    nl = args["n_layers"]
    dh = d // nh
    B, S_smi, smi_h = smi.shape
    _, S_seq, seq_h = seq.shape

    G, Bc = _grid_batch_split(B)

    # Positional encodings (tiled over the folded batch) and attention biases.
    pe = positional_encoding_table(d, max(S_smi, S_seq))
    pe_src = jnp.tile(pe[:S_smi], (Bc, 1))                    # (Bc*S_smi, D)
    pe_tgt = jnp.tile(pe[:S_seq], (Bc, 1))                    # (Bc*S_seq, D)
    sa_bias, ca_bias = _attention_biases(Bc, S_seq, S_smi, nh)

    if G == 1:
        # Whole batch folded into sublanes: 2-D, full-array blocks.
        smi_in = smi.reshape(B * S_smi, smi_h)
        seq_in = seq.reshape(B * S_seq, seq_h)
        smi_spec = pl.BlockSpec((B * S_smi, smi_h), lambda g: (0, 0))
        seq_spec = pl.BlockSpec((B * S_seq, seq_h), lambda g: (0, 0))
    else:
        # One batch element per grid step: 3-D blocks (last two dims == full dims).
        smi_in, seq_in = smi, seq
        smi_spec = pl.BlockSpec((1, S_smi, smi_h), lambda g: (g, 0, 0))
        seq_spec = pl.BlockSpec((1, S_seq, seq_h), lambda g: (g, 0, 0))

    bf16 = jnp.bfloat16
    weight_inputs = [
        pe_src, pe_tgt, sa_bias, ca_bias,
        params["smi_w"].astype(bf16), params["smi_b"],
        params["seq_w"].astype(bf16), params["seq_b"],
        params["sa_wqkv"].astype(bf16), params["sa_bqkv"],
        params["sa_wo"].astype(bf16), params["sa_bo"],
        params["ca_wq"].astype(bf16), params["ca_bq"],
        params["ca_wkv"].astype(bf16), params["ca_bkv"],
        params["ca_wo"].astype(bf16), params["ca_bo"],
        params["w1"].astype(bf16), params["b1"],
        params["w2"].astype(bf16), params["b2"],
        params["ln_g"], params["ln_b"],
        params["fc_w"].astype(bf16), params["fc_b"],
    ]

    in_specs = [smi_spec, seq_spec] + [_whole_array_spec(a.shape) for a in weight_inputs]

    kernel = functools.partial(
        _fused_decoder_kernel,
        n_layers=nl, n_heads=nh, d_model=d, d_head=dh, bc=Bc, lt=S_seq, eps=1e-5)

    out = pl.pallas_call(
        kernel,
        grid=(G,),
        out_shape=jax.ShapeDtypeStruct((B, 1, 1), jnp.float32),
        in_specs=in_specs,
        out_specs=pl.BlockSpec((Bc, 1, 1), lambda g: (g, 0, 0)),
        scratch_shapes=[pltpu.VMEM((Bc * S_seq, d), jnp.float32)],
        compiler_params=pltpu.CompilerParams(
            dimension_semantics=("parallel",)),
    )(smi_in, seq_in, *weight_inputs)

    return out.reshape(B, 1)


# -----------------------------------------------------------------------------
# Deterministic parameter init (layer-stacked, lane-dense layouts).
#   sa_wqkv[l] = [Wq | Wk | Wv] columns, head h of each at cols h*Dh:(h+1)*Dh
#                (== nn.MultiheadAttention.in_proj_weight.T layout).
#   *_wo[l]    = out_proj.weight.T ;  ln_g/ln_b[3*l + j] = gamma/beta of norm{1,2,3}.
# -----------------------------------------------------------------------------
def init_params(key, args):
    d = args["att_dim"]
    dff = args["att_dim"]     # TransformerTimeSeriesModel uses dim_feedforward=att_dim
    L = args["n_layers"]
    smi_h = args["smi_hidden_size"]
    seq_h = args["seq_hidden_size"]

    keys = iter(jax.random.split(key, 32))

    def w(shape, scale=0.05):
        return jax.random.normal(next(keys), shape, jnp.float32) * scale

    return dict(
        smi_w=w((smi_h, d)), smi_b=w((1, d)),
        seq_w=w((seq_h, d)), seq_b=w((1, d)),
        sa_wqkv=w((L, d, 3 * d)), sa_bqkv=w((L, 1, 3 * d)),
        sa_wo=w((L, d, d)),       sa_bo=w((L, 1, d)),
        ca_wq=w((L, d, d)),       ca_bq=w((L, 1, d)),
        ca_wkv=w((L, d, 2 * d)),  ca_bkv=w((L, 1, 2 * d)),
        ca_wo=w((L, d, d)),       ca_bo=w((L, 1, d)),
        w1=w((L, d, dff)), b1=w((L, 1, dff)),
        w2=w((L, dff, d)), b2=w((L, 1, d)),
        ln_g=jnp.ones((3 * L, 1, d), jnp.float32),
        ln_b=jnp.zeros((3 * L, 1, d), jnp.float32),
        fc_w=w((d, 1)), fc_b=w((1, 1)),
    )


# -----------------------------------------------------------------------------
# Main
# -----------------------------------------------------------------------------
if __name__ == "__main__":
    args = dict(
        device=None,
        att_dim=32,
        n_layers=2,
        n_heads=4,
        smi_hidden_size=16,
        seq_hidden_size=24,
        dropout=0.1,     # inference: dropout is identity
    )

    B, S_smi, S_seq = 2, 10, 8

    root = jax.random.PRNGKey(0)
    k_param, k_smi, k_seq = jax.random.split(root, 3)

    params = init_params(k_param, args)
    smi = jax.random.normal(k_smi, (B, S_smi, args["smi_hidden_size"]), jnp.float32)
    seq = jax.random.normal(k_seq, (B, S_seq, args["seq_hidden_size"]), jnp.float32)

    fwd = jax.jit(functools.partial(transformer_decoder_forward, args=args))
    out = jax.block_until_ready(fwd(params, smi, seq))

    assert out.shape == (B, 1), out.shape
    assert out.dtype == jnp.float32
    assert bool(jnp.all(jnp.isfinite(out)))
    print("KERNEL_OK")
</pallas_src>

<mosaic_0001>
module attributes {stable_mosaic.version = 11 : i64} {
  func.func @_fused_decoder_kernel(%arg0: i32, %arg1: memref<20x16xf32, #tpu.memory_space<vmem>>, %arg2: memref<16x24xf32, #tpu.memory_space<vmem>>, %arg3: memref<20x32xf32, #tpu.memory_space<vmem>>, %arg4: memref<16x32xf32, #tpu.memory_space<vmem>>, %arg5: memref<64x16xf32, #tpu.memory_space<vmem>>, %arg6: memref<64x20xf32, #tpu.memory_space<vmem>>, %arg7: memref<16x32xbf16, #tpu.memory_space<vmem>>, %arg8: memref<1x32xf32, #tpu.memory_space<vmem>>, %arg9: memref<24x32xbf16, #tpu.memory_space<vmem>>, %arg10: memref<1x32xf32, #tpu.memory_space<vmem>>, %arg11: memref<2x32x96xbf16, #tpu.memory_space<vmem>>, %arg12: memref<2x1x96xf32, #tpu.memory_space<vmem>>, %arg13: memref<2x32x32xbf16, #tpu.memory_space<vmem>>, %arg14: memref<2x1x32xf32, #tpu.memory_space<vmem>>, %arg15: memref<2x32x32xbf16, #tpu.memory_space<vmem>>, %arg16: memref<2x1x32xf32, #tpu.memory_space<vmem>>, %arg17: memref<2x32x64xbf16, #tpu.memory_space<vmem>>, %arg18: memref<2x1x64xf32, #tpu.memory_space<vmem>>, %arg19: memref<2x32x32xbf16, #tpu.memory_space<vmem>>, %arg20: memref<2x1x32xf32, #tpu.memory_space<vmem>>, %arg21: memref<2x32x32xbf16, #tpu.memory_space<vmem>>, %arg22: memref<2x1x32xf32, #tpu.memory_space<vmem>>, %arg23: memref<2x32x32xbf16, #tpu.memory_space<vmem>>, %arg24: memref<2x1x32xf32, #tpu.memory_space<vmem>>, %arg25: memref<6x1x32xf32, #tpu.memory_space<vmem>>, %arg26: memref<6x1x32xf32, #tpu.memory_space<vmem>>, %arg27: memref<32x1xbf16, #tpu.memory_space<vmem>>, %arg28: memref<1x1xf32, #tpu.memory_space<vmem>>, %arg29: memref<2x1x1xf32, #tpu.memory_space<vmem>>, %arg30: memref<16x32xf32, #tpu.memory_space<vmem>>) attributes {dimension_semantics = [#tpu.dimension_semantics<parallel>], iteration_bounds = array<i64: 1>, scalar_prefetch = 0 : i64, scratch_operands = 1 : i64, tpu.core_type = #tpu.core_type<tc>, window_params = [{pipeline_mode = #tpu.pipeline_mode<synchronous>, transform_indices = @transform_0, window_bounds = array<i64: 20, 16>}, {pipeline_mode = #tpu.pipeline_mode<synchronous>, transform_indices = @transform_1, window_bounds = array<i64: 16, 24>}, {pipeline_mode = #tpu.pipeline_mode<synchronous>, transform_indices = @transform_2, window_bounds = array<i64: 20, 32>}, {pipeline_mode = #tpu.pipeline_mode<synchronous>, transform_indices = @transform_3, window_bounds = array<i64: 16, 32>}, {pipeline_mode = #tpu.pipeline_mode<synchronous>, transform_indices = @transform_4, window_bounds = array<i64: 64, 16>}, {pipeline_mode = #tpu.pipeline_mode<synchronous>, transform_indices = @transform_5, window_bounds = array<i64: 64, 20>}, {pipeline_mode = #tpu.pipeline_mode<synchronous>, transform_indices = @transform_6, window_bounds = array<i64: 16, 32>}, {pipeline_mode = #tpu.pipeline_mode<synchronous>, transform_indices = @transform_7, window_bounds = array<i64: 1, 32>}, {pipeline_mode = #tpu.pipeline_mode<synchronous>, transform_indices = @transform_8, window_bounds = array<i64: 24, 32>}, {pipeline_mode = #tpu.pipeline_mode<synchronous>, transform_indices = @transform_9, window_bounds = array<i64: 1, 32>}, {pipeline_mode = #tpu.pipeline_mode<synchronous>, transform_indices = @transform_10, window_bounds = array<i64: 2, 32, 96>}, {pipeline_mode = #tpu.pipeline_mode<synchronous>, transform_indices = @transform_11, window_bounds = array<i64: 2, 1, 96>}, {pipeline_mode = #tpu.pipeline_mode<synchronous>, transform_indices = @transform_12, window_bounds = array<i64: 2, 32, 32>}, {pipeline_mode = #tpu.pipeline_mode<synchronous>, transform_indices = @transform_13, window_bounds = array<i64: 2, 1, 32>}, {pipeline_mode = #tpu.pipeline_mode<synchronous>, transform_indices = @transform_14, window_bounds = array<i64: 2, 32, 32>}, {pipeline_mode = #tpu.pipeline_mode<synchronous>, transform_indices = @transform_15, window_bounds = array<i64: 2, 1, 32>}, {pipeline_mode = #tpu.pipeline_mode<synchronous>, transform_indices = @transform_16, window_bounds = array<i64: 2, 32, 64>}, {pipeline_mode = #tpu.pipeline_mode<synchronous>, transform_indices = @transform_17, window_bounds = array<i64: 2, 1, 64>}, {pipeline_mode = #tpu.pipeline_mode<synchronous>, transform_indices = @transform_18, window_bounds = array<i64: 2, 32, 32>}, {pipeline_mode = #tpu.pipeline_mode<synchronous>, transform_indices = @transform_19, window_bounds = array<i64: 2, 1, 32>}, {pipeline_mode = #tpu.pipeline_mode<synchronous>, transform_indices = @transform_20, window_bounds = array<i64: 2, 32, 32>}, {pipeline_mode = #tpu.pipeline_mode<synchronous>, transform_indices = @transform_21, window_bounds = array<i64: 2, 1, 32>}, {pipeline_mode = #tpu.pipeline_mode<synchronous>, transform_indices = @transform_22, window_bounds = array<i64: 2, 32, 32>}, {pipeline_mode = #tpu.pipeline_mode<synchronous>, transform_indices = @transform_23, window_bounds = array<i64: 2, 1, 32>}, {pipeline_mode = #tpu.pipeline_mode<synchronous>, transform_indices = @transform_24, window_bounds = array<i64: 6, 1, 32>}, {pipeline_mode = #tpu.pipeline_mode<synchronous>, transform_indices = @transform_25, window_bounds = array<i64: 6, 1, 32>}, {pipeline_mode = #tpu.pipeline_mode<synchronous>, transform_indices = @transform_26, window_bounds = array<i64: 32, 1>}, {pipeline_mode = #tpu.pipeline_mode<synchronous>, transform_indices = @transform_27, window_bounds = array<i64: 1, 1>}, {transform_indices = @transform_28, window_bounds = array<i64: 2, 1, 1>}]} {
    %c0 = arith.constant 0 : index
    %c0_0 = arith.constant 0 : index
    %0 = vector.load %arg1[%c0, %c0_0] : memref<20x16xf32, #tpu.memory_space<vmem>>, vector<20x16xf32>
    %c0_1 = arith.constant 0 : index
    %c0_2 = arith.constant 0 : index
    %1 = vector.load %arg2[%c0_1, %c0_2] : memref<16x24xf32, #tpu.memory_space<vmem>>, vector<16x24xf32>
    %c0_3 = arith.constant 0 : index
    %c0_4 = arith.constant 0 : index
    %2 = vector.load %arg7[%c0_3, %c0_4] : memref<16x32xbf16, #tpu.memory_space<vmem>>, vector<16x32xbf16>
    %3 = arith.truncf %0 : vector<20x16xf32> to vector<20x16xbf16>
    %cst = arith.constant dense<0.000000e+00> : vector<20x32xf32>
    %4 = tpu.matmul %3, %2, %cst {dimension_numbers = #tpu.dot_dimension_numbers<[1], [0], [0], [1], [0, 0, 1, 1], [], []>} : vector<20x16xbf16>, vector<16x32xbf16>, vector<20x32xf32> -> vector<20x32xf32>
    %c0_5 = arith.constant 0 : index
    %c0_6 = arith.constant 0 : index
    %5 = vector.load %arg8[%c0_5, %c0_6] : memref<1x32xf32, #tpu.memory_space<vmem>>, vector<1x32xf32>
    %6 = vector.broadcast %5 : vector<1x32xf32> to vector<20x32xf32>
    %7 = arith.addf %4, %6 : vector<20x32xf32>
    %c0_7 = arith.constant 0 : index
    %c0_8 = arith.constant 0 : index
    %8 = vector.load %arg3[%c0_7, %c0_8] : memref<20x32xf32, #tpu.memory_space<vmem>>, vector<20x32xf32>
    %9 = arith.addf %7, %8 : vector<20x32xf32>
    %c0_9 = arith.constant 0 : index
    %c0_10 = arith.constant 0 : index
    %10 = vector.load %arg9[%c0_9, %c0_10] : memref<24x32xbf16, #tpu.memory_space<vmem>>, vector<24x32xbf16>
    %11 = arith.truncf %1 : vector<16x24xf32> to vector<16x24xbf16>
    %cst_11 = arith.constant dense<0.000000e+00> : vector<16x32xf32>
    %12 = tpu.matmul %11, %10, %cst_11 {dimension_numbers = #tpu.dot_dimension_numbers<[1], [0], [0], [1], [0, 0, 1, 1], [], []>} : vector<16x24xbf16>, vector<24x32xbf16>, vector<16x32xf32> -> vector<16x32xf32>
    %c0_12 = arith.constant 0 : index
    %c0_13 = arith.constant 0 : index
    %13 = vector.load %arg10[%c0_12, %c0_13] : memref<1x32xf32, #tpu.memory_space<vmem>>, vector<1x32xf32>
    %14 = vector.broadcast %13 : vector<1x32xf32> to vector<16x32xf32>
    %15 = arith.addf %12, %14 : vector<16x32xf32>
    %c0_14 = arith.constant 0 : index
    %c0_15 = arith.constant 0 : index
    %16 = vector.load %arg4[%c0_14, %c0_15] : memref<16x32xf32, #tpu.memory_space<vmem>>, vector<16x32xf32>
    %17 = arith.addf %15, %16 : vector<16x32xf32>
    %c0_16 = arith.constant 0 : index
    %c0_17 = arith.constant 0 : index
    %18 = vector.load %arg5[%c0_16, %c0_17] : memref<64x16xf32, #tpu.memory_space<vmem>>, vector<64x16xf32>
    %c0_18 = arith.constant 0 : index
    %c0_19 = arith.constant 0 : index
    %19 = vector.load %arg6[%c0_18, %c0_19] : memref<64x20xf32, #tpu.memory_space<vmem>>, vector<64x20xf32>
    %c0_20 = arith.constant 0 : index
    %c0_21 = arith.constant 0 : index
    %c0_22 = arith.constant 0 : index
    %20 = vector.load %arg11[%c0_20, %c0_21, %c0_22] : memref<2x32x96xbf16, #tpu.memory_space<vmem>>, vector<1x32x96xbf16>
    %21 = vector.shape_cast %20 : vector<1x32x96xbf16> to vector<32x96xbf16>
    %22 = arith.truncf %17 : vector<16x32xf32> to vector<16x32xbf16>
    %cst_23 = arith.constant dense<0.000000e+00> : vector<16x96xf32>
    %23 = tpu.matmul %22, %21, %cst_23 {dimension_numbers = #tpu.dot_dimension_numbers<[1], [0], [0], [1], [0, 0, 1, 1], [], []>} : vector<16x32xbf16>, vector<32x96xbf16>, vector<16x96xf32> -> vector<16x96xf32>
    %c0_24 = arith.constant 0 : index
    %c0_25 = arith.constant 0 : index
    %c0_26 = arith.constant 0 : index
    %24 = vector.load %arg12[%c0_24, %c0_25, %c0_26] : memref<2x1x96xf32, #tpu.memory_space<vmem>>, vector<1x1x96xf32>
    %25 = vector.shape_cast %24 : vector<1x1x96xf32> to vector<1x96xf32>
    %26 = vector.broadcast %25 : vector<1x96xf32> to vector<16x96xf32>
    %27 = arith.addf %23, %26 : vector<16x96xf32>
    %28 = vector.extract_strided_slice %27 {offsets = [0, 0], sizes = [16, 32], strides = [1, 1]} : vector<16x96xf32> to vector<16x32xf32>
    %29 = vector.extract_strided_slice %27 {offsets = [0, 32], sizes = [16, 64], strides = [1, 1]} : vector<16x96xf32> to vector<16x64xf32>
    %c0_27 = arith.constant 0 : index
    %c0_28 = arith.constant 0 : index
    %c0_29 = arith.constant 0 : index
    %30 = vector.load %arg13[%c0_27, %c0_28, %c0_29] : memref<2x32x32xbf16, #tpu.memory_space<vmem>>, vector<1x32x32xbf16>
    %31 = vector.shape_cast %30 : vector<1x32x32xbf16> to vector<32x32xbf16>
    %c0_30 = arith.constant 0 : index
    %c0_31 = arith.constant 0 : index
    %c0_32 = arith.constant 0 : index
    %32 = vector.load %arg14[%c0_30, %c0_31, %c0_32] : memref<2x1x32xf32, #tpu.memory_space<vmem>>, vector<1x1x32xf32>
    %33 = vector.shape_cast %32 : vector<1x1x32xf32> to vector<1x32xf32>
    %34 = vector.extract_strided_slice %29 {offsets = [0, 0], sizes = [16, 32], strides = [1, 1]} : vector<16x64xf32> to vector<16x32xf32>
    %35 = tpu.transpose %34, [1, 0] : vector<16x32xf32> -> vector<32x16xf32>
    %36 = vector.extract_strided_slice %28 {offsets = [0, 0], sizes = [16, 8], strides = [1, 1]} : vector<16x32xf32> to vector<16x8xf32>
    %37 = vector.extract_strided_slice %35 {offsets = [0, 0], sizes = [8, 16], strides = [1, 1]} : vector<32x16xf32> to vector<8x16xf32>
    %cst_33 = arith.constant dense<0.000000e+00> : vector<16x16xf32>
    %38 = tpu.matmul %36, %37, %cst_33 {dimension_numbers = #tpu.dot_dimension_numbers<[1], [0], [0], [1], [0, 0, 1, 1], [], []>} : vector<16x8xf32>, vector<8x16xf32>, vector<16x16xf32> -> vector<16x16xf32>
    %39 = vector.extract_strided_slice %28 {offsets = [0, 8], sizes = [16, 8], strides = [1, 1]} : vector<16x32xf32> to vector<16x8xf32>
    %40 = vector.extract_strided_slice %35 {offsets = [8, 0], sizes = [8, 16], strides = [1, 1]} : vector<32x16xf32> to vector<8x16xf32>
    %cst_34 = arith.constant dense<0.000000e+00> : vector<16x16xf32>
    %41 = tpu.matmul %39, %40, %cst_34 {dimension_numbers = #tpu.dot_dimension_numbers<[1], [0], [0], [1], [0, 0, 1, 1], [], []>} : vector<16x8xf32>, vector<8x16xf32>, vector<16x16xf32> -> vector<16x16xf32>
    %42 = vector.extract_strided_slice %28 {offsets = [0, 16], sizes = [16, 8], strides = [1, 1]} : vector<16x32xf32> to vector<16x8xf32>
    %43 = vector.extract_strided_slice %35 {offsets = [16, 0], sizes = [8, 16], strides = [1, 1]} : vector<32x16xf32> to vector<8x16xf32>
    %cst_35 = arith.constant dense<0.000000e+00> : vector<16x16xf32>
    %44 = tpu.matmul %42, %43, %cst_35 {dimension_numbers = #tpu.dot_dimension_numbers<[1], [0], [0], [1], [0, 0, 1, 1], [], []>} : vector<16x8xf32>, vector<8x16xf32>, vector<16x16xf32> -> vector<16x16xf32>
    %45 = vector.extract_strided_slice %28 {offsets = [0, 24], sizes = [16, 8], strides = [1, 1]} : vector<16x32xf32> to vector<16x8xf32>
    %46 = vector.extract_strided_slice %35 {offsets = [24, 0], sizes = [8, 16], strides = [1, 1]} : vector<32x16xf32> to vector<8x16xf32>
    %cst_36 = arith.constant dense<0.000000e+00> : vector<16x16xf32>
    %47 = tpu.matmul %45, %46, %cst_36 {dimension_numbers = #tpu.dot_dimension_numbers<[1], [0], [0], [1], [0, 0, 1, 1], [], []>} : vector<16x8xf32>, vector<8x16xf32>, vector<16x16xf32> -> vector<16x16xf32>
    %48 = tpu.concatenate %38, %41, %44, %47 in 0 : vector<16x16xf32>, vector<16x16xf32>, vector<16x16xf32>, vector<16x16xf32> -> vector<64x16xf32>
    %cst_37 = arith.constant 0.353553385 : f32
    %49 = vector.broadcast %cst_37 : f32 to vector<64x16xf32>
    %50 = arith.mulf %48, %49 : vector<64x16xf32>
    %51 = arith.addf %50, %18 : vector<64x16xf32>
    %cst_38 = arith.constant dense<0xFF800000> : vector<64xf32>
    %52 = vector.multi_reduction <maximumf>, %51, %cst_38 [1] : vector<64x16xf32> to vector<64xf32>
    %53 = vector.shape_cast %52 : vector<64xf32> to vector<64x1xf32>
    %54 = vector.broadcast %53 : vector<64x1xf32> to vector<64x16xf32>
    %55 = arith.subf %51, %54 : vector<64x16xf32>
    %56 = math.exp %55 : vector<64x16xf32>
    %cst_39 = arith.constant dense<0.000000e+00> : vector<64xf32>
    %57 = vector.multi_reduction <add>, %56, %cst_39 [1] : vector<64x16xf32> to vector<64xf32>
    %58 = vector.shape_cast %57 : vector<64xf32> to vector<64x1xf32>
    %59 = tpu.reciprocal %58 {approx = true} : vector<64x1xf32> -> vector<64x1xf32>
    %60 = vector.broadcast %59 : vector<64x1xf32> to vector<64x16xf32>
    %61 = arith.mulf %56, %60 : vector<64x16xf32>
    %62 = vector.extract_strided_slice %61 {offsets = [0, 0], sizes = [16, 16], strides = [1, 1]} : vector<64x16xf32> to vector<16x16xf32>
    %63 = vector.extract_strided_slice %29 {offsets = [0, 32], sizes = [16, 8], strides = [1, 1]} : vector<16x64xf32> to vector<16x8xf32>
    %64 = arith.truncf %62 : vector<16x16xf32> to vector<16x16xbf16>
    %65 = arith.truncf %63 : vector<16x8xf32> to vector<16x8xbf16>
    %cst_40 = arith.constant dense<0.000000e+00> : vector<16x8xf32>
    %66 = tpu.matmul %64, %65, %cst_40 {dimension_numbers = #tpu.dot_dimension_numbers<[1], [0], [0], [1], [0, 0, 1, 1], [], []>} : vector<16x16xbf16>, vector<16x8xbf16>, vector<16x8xf32> -> vector<16x8xf32>
    %c0_41 = arith.constant 0 : index
    %c0_42 = arith.constant 0 : index
    %67 = vector.load %arg30[%c0_41, %c0_42] : memref<16x32xf32, #tpu.memory_space<vmem>>, vector<16x8xf32>
    tpu.vector_store %arg30[%c0_41, %c0_42], %66 {strides = array<i32>} : memref<16x32xf32, #tpu.memory_space<vmem>>, vector<16x8xf32>,
    %68 = vector.extract_strided_slice %61 {offsets = [16, 0], sizes = [16, 16], strides = [1, 1]} : vector<64x16xf32> to vector<16x16xf32>
    %69 = vector.extract_strided_slice %29 {offsets = [0, 40], sizes = [16, 8], strides = [1, 1]} : vector<16x64xf32> to vector<16x8xf32>
    %70 = arith.truncf %68 : vector<16x16xf32> to vector<16x16xbf16>
    %71 = arith.truncf %69 : vector<16x8xf32> to vector<16x8xbf16>
    %cst_43 = arith.constant dense<0.000000e+00> : vector<16x8xf32>
    %72 = tpu.matmul %70, %71, %cst_43 {dimension_numbers = #tpu.dot_dimension_numbers<[1], [0], [0], [1], [0, 0, 1, 1], [], []>} : vector<16x16xbf16>, vector<16x8xbf16>, vector<16x8xf32> -> vector<16x8xf32>
    %c0_44 = arith.constant 0 : index
    %c8 = arith.constant 8 : index
    %73 = vector.load %arg30[%c0_44, %c8] : memref<16x32xf32, #tpu.memory_space<vmem>>, vector<16x8xf32>
    tpu.vector_store %arg30[%c0_44, %c8], %72 {strides = array<i32>} : memref<16x32xf32, #tpu.memory_space<vmem>>, vector<16x8xf32>,
    %74 = vector.extract_strided_slice %61 {offsets = [32, 0], sizes = [16, 16], strides = [1, 1]} : vector<64x16xf32> to vector<16x16xf32>
    %75 = vector.extract_strided_slice %29 {offsets = [0, 48], sizes = [16, 8], strides = [1, 1]} : vector<16x64xf32> to vector<16x8xf32>
    %76 = arith.truncf %74 : vector<16x16xf32> to vector<16x16xbf16>
    %77 = arith.truncf %75 : vector<16x8xf32> to vector<16x8xbf16>
    %cst_45 = arith.constant dense<0.000000e+00> : vector<16x8xf32>
    %78 = tpu.matmul %76, %77, %cst_45 {dimension_numbers = #tpu.dot_dimension_numbers<[1], [0], [0], [1], [0, 0, 1, 1], [], []>} : vector<16x16xbf16>, vector<16x8xbf16>, vector<16x8xf32> -> vector<16x8xf32>
    %c0_46 = arith.constant 0 : index
    %c16 = arith.constant 16 : index
    %79 = vector.load %arg30[%c0_46, %c16] : memref<16x32xf32, #tpu.memory_space<vmem>>, vector<16x8xf32>
    tpu.vector_store %arg30[%c0_46, %c16], %78 {strides = array<i32>} : memref<16x32xf32, #tpu.memory_space<vmem>>, vector<16x8xf32>,
    %80 = vector.extract_strided_slice %61 {offsets = [48, 0], sizes = [16, 16], strides = [1, 1]} : vector<64x16xf32> to vector<16x16xf32>
    %81 = vector.extract_strided_slice %29 {offsets = [0, 56], sizes = [16, 8], strides = [1, 1]} : vector<16x64xf32> to vector<16x8xf32>
    %82 = arith.truncf %80 : vector<16x16xf32> to vector<16x16xbf16>
    %83 = arith.truncf %81 : vector<16x8xf32> to vector<16x8xbf16>
    %cst_47 = arith.constant dense<0.000000e+00> : vector<16x8xf32>
    %84 = tpu.matmul %82, %83, %cst_47 {dimension_numbers = #tpu.dot_dimension_numbers<[1], [0], [0], [1], [0, 0, 1, 1], [], []>} : vector<16x16xbf16>, vector<16x8xbf16>, vector<16x8xf32> -> vector<16x8xf32>
    %c0_48 = arith.constant 0 : index
    %c24 = arith.constant 24 : index
    %85 = vector.load %arg30[%c0_48, %c24] : memref<16x32xf32, #tpu.memory_space<vmem>>, vector<16x8xf32>
    tpu.vector_store %arg30[%c0_48, %c24], %84 {strides = array<i32>} : memref<16x32xf32, #tpu.memory_space<vmem>>, vector<16x8xf32>,
    %c0_49 = arith.constant 0 : index
    %c0_50 = arith.constant 0 : index
    %86 = vector.load %arg30[%c0_49, %c0_50] : memref<16x32xf32, #tpu.memory_space<vmem>>, vector<16x32xf32>
    %87 = arith.truncf %86 : vector<16x32xf32> to vector<16x32xbf16>
    %cst_51 = arith.constant dense<0.000000e+00> : vector<16x32xf32>
    %88 = tpu.matmul %87, %31, %cst_51 {dimension_numbers = #tpu.dot_dimension_numbers<[1], [0], [0], [1], [0, 0, 1, 1], [], []>} : vector<16x32xbf16>, vector<32x32xbf16>, vector<16x32xf32> -> vector<16x32xf32>
    %89 = vector.broadcast %33 : vector<1x32xf32> to vector<16x32xf32>
    %90 = arith.addf %88, %89 : vector<16x32xf32>
    %91 = arith.addf %17, %90 : vector<16x32xf32>
    %c0_52 = arith.constant 0 : index
    %c0_53 = arith.constant 0 : index
    %c0_54 = arith.constant 0 : index
    %92 = vector.load %arg25[%c0_52, %c0_53, %c0_54] : memref<6x1x32xf32, #tpu.memory_space<vmem>>, vector<1x1x32xf32>
    %93 = vector.shape_cast %92 : vector<1x1x32xf32> to vector<1x32xf32>
    %c0_55 = arith.constant 0 : index
    %c0_56 = arith.constant 0 : index
    %c0_57 = arith.constant 0 : index
    %94 = vector.load %arg26[%c0_55, %c0_56, %c0_57] : memref<6x1x32xf32, #tpu.memory_space<vmem>>, vector<1x1x32xf32>
    %95 = vector.shape_cast %94 : vector<1x1x32xf32> to vector<1x32xf32>
    %cst_58 = arith.constant dense<0.000000e+00> : vector<16xf32>
    %96 = vector.multi_reduction <add>, %91, %cst_58 [1] : vector<16x32xf32> to vector<16xf32>
    %97 = vector.shape_cast %96 : vector<16xf32> to vector<16x1xf32>
    %cst_59 = arith.constant 3.200000e+01 : f32
    %98 = vector.broadcast %cst_59 : f32 to vector<16x1xf32>
    %99 = arith.divf %97, %98 : vector<16x1xf32>
    %100 = vector.broadcast %99 : vector<16x1xf32> to vector<16x32xf32>
    %101 = arith.subf %91, %100 : vector<16x32xf32>
    %102 = arith.mulf %101, %101 : vector<16x32xf32>
    %cst_60 = arith.constant dense<0.000000e+00> : vector<16xf32>
    %103 = vector.multi_reduction <add>, %102, %cst_60 [1] : vector<16x32xf32> to vector<16xf32>
    %104 = vector.shape_cast %103 : vector<16xf32> to vector<16x1xf32>
    %cst_61 = arith.constant 3.200000e+01 : f32
    %105 = vector.broadcast %cst_61 : f32 to vector<16x1xf32>
    %106 = arith.divf %104, %105 : vector<16x1xf32>
    %107 = vector.broadcast %99 : vector<16x1xf32> to vector<16x32xf32>
    %108 = arith.subf %91, %107 : vector<16x32xf32>
    %cst_62 = arith.constant 9.99999974E-6 : f32
    %109 = vector.broadcast %cst_62 : f32 to vector<16x1xf32>
    %110 = arith.addf %106, %109 : vector<16x1xf32>
    %111 = math.rsqrt %110 : vector<16x1xf32>
    %112 = vector.broadcast %111 : vector<16x1xf32> to vector<16x32xf32>
    %113 = arith.mulf %108, %112 : vector<16x32xf32>
    %114 = vector.broadcast %93 : vector<1x32xf32> to vector<16x32xf32>
    %115 = arith.mulf %113, %114 : vector<16x32xf32>
    %116 = vector.broadcast %95 : vector<1x32xf32> to vector<16x32xf32>
    %117 = arith.addf %115, %116 : vector<16x32xf32>
    %c0_63 = arith.constant 0 : index
    %c0_64 = arith.constant 0 : index
    %c0_65 = arith.constant 0 : index
    %118 = vector.load %arg15[%c0_63, %c0_64, %c0_65] : memref<2x32x32xbf16, #tpu.memory_space<vmem>>, vector<1x32x32xbf16>
    %119 = vector.shape_cast %118 : vector<1x32x32xbf16> to vector<32x32xbf16>
    %120 = arith.truncf %117 : vector<16x32xf32> to vector<16x32xbf16>
    %cst_66 = arith.constant dense<0.000000e+00> : vector<16x32xf32>
    %121 = tpu.matmul %120, %119, %cst_66 {dimension_numbers = #tpu.dot_dimension_numbers<[1], [0], [0], [1], [0, 0, 1, 1], [], []>} : vector<16x32xbf16>, vector<32x32xbf16>, vector<16x32xf32> -> vector<16x32xf32>
    %c0_67 = arith.constant 0 : index
    %c0_68 = arith.constant 0 : index
    %c0_69 = arith.constant 0 : index
    %122 = vector.load %arg16[%c0_67, %c0_68, %c0_69] : memref<2x1x32xf32, #tpu.memory_space<vmem>>, vector<1x1x32xf32>
    %123 = vector.shape_cast %122 : vector<1x1x32xf32> to vector<1x32xf32>
    %124 = vector.broadcast %123 : vector<1x32xf32> to vector<16x32xf32>
    %125 = arith.addf %121, %124 : vector<16x32xf32>
    %c0_70 = arith.constant 0 : index
    %c0_71 = arith.constant 0 : index
    %c0_72 = arith.constant 0 : index
    %126 = vector.load %arg17[%c0_70, %c0_71, %c0_72] : memref<2x32x64xbf16, #tpu.memory_space<vmem>>, vector<1x32x64xbf16>
    %127 = vector.shape_cast %126 : vector<1x32x64xbf16> to vector<32x64xbf16>
    %128 = arith.truncf %9 : vector<20x32xf32> to vector<20x32xbf16>
    %cst_73 = arith.constant dense<0.000000e+00> : vector<20x64xf32>
    %129 = tpu.matmul %128, %127, %cst_73 {dimension_numbers = #tpu.dot_dimension_numbers<[1], [0], [0], [1], [0, 0, 1, 1], [], []>} : vector<20x32xbf16>, vector<32x64xbf16>, vector<20x64xf32> -> vector<20x64xf32>
    %c0_74 = arith.constant 0 : index
    %c0_75 = arith.constant 0 : index
    %c0_76 = arith.constant 0 : index
    %130 = vector.load %arg18[%c0_74, %c0_75, %c0_76] : memref<2x1x64xf32, #tpu.memory_space<vmem>>, vector<1x1x64xf32>
    %131 = vector.shape_cast %130 : vector<1x1x64xf32> to vector<1x64xf32>
    %132 = vector.broadcast %131 : vector<1x64xf32> to vector<20x64xf32>
    %133 = arith.addf %129, %132 : vector<20x64xf32>
    %c0_77 = arith.constant 0 : index
    %c0_78 = arith.constant 0 : index
    %c0_79 = arith.constant 0 : index
    %134 = vector.load %arg19[%c0_77, %c0_78, %c0_79] : memref<2x32x32xbf16, #tpu.memory_space<vmem>>, vector<1x32x32xbf16>
    %135 = vector.shape_cast %134 : vector<1x32x32xbf16> to vector<32x32xbf16>
    %c0_80 = arith.constant 0 : index
    %c0_81 = arith.constant 0 : index
    %c0_82 = arith.constant 0 : index
    %136 = vector.load %arg20[%c0_80, %c0_81, %c0_82] : memref<2x1x32xf32, #tpu.memory_space<vmem>>, vector<1x1x32xf32>
    %137 = vector.shape_cast %136 : vector<1x1x32xf32> to vector<1x32xf32>
    %138 = vector.extract_strided_slice %133 {offsets = [0, 0], sizes = [20, 32], strides = [1, 1]} : vector<20x64xf32> to vector<20x32xf32>
    %139 = tpu.transpose %138, [1, 0] : vector<20x32xf32> -> vector<32x20xf32>
    %140 = vector.extract_strided_slice %125 {offsets = [0, 0], sizes = [16, 8], strides = [1, 1]} : vector<16x32xf32> to vector<16x8xf32>
    %141 = vector.extract_strided_slice %139 {offsets = [0, 0], sizes = [8, 20], strides = [1, 1]} : vector<32x20xf32> to vector<8x20xf32>
    %cst_83 = arith.constant dense<0.000000e+00> : vector<16x20xf32>
    %142 = tpu.matmul %140, %141, %cst_83 {dimension_numbers = #tpu.dot_dimension_numbers<[1], [0], [0], [1], [0, 0, 1, 1], [], []>} : vector<16x8xf32>, vector<8x20xf32>, vector<16x20xf32> -> vector<16x20xf32>
    %143 = vector.extract_strided_slice %125 {offsets = [0, 8], sizes = [16, 8], strides = [1, 1]} : vector<16x32xf32> to vector<16x8xf32>
    %144 = vector.extract_strided_slice %139 {offsets = [8, 0], sizes = [8, 20], strides = [1, 1]} : vector<32x20xf32> to vector<8x20xf32>
    %cst_84 = arith.constant dense<0.000000e+00> : vector<16x20xf32>
    %145 = tpu.matmul %143, %144, %cst_84 {dimension_numbers = #tpu.dot_dimension_numbers<[1], [0], [0], [1], [0, 0, 1, 1], [], []>} : vector<16x8xf32>, vector<8x20xf32>, vector<16x20xf32> -> vector<16x20xf32>
    %146 = vector.extract_strided_slice %125 {offsets = [0, 16], sizes = [16, 8], strides = [1, 1]} : vector<16x32xf32> to vector<16x8xf32>
    %147 = vector.extract_strided_slice %139 {offsets = [16, 0], sizes = [8, 20], strides = [1, 1]} : vector<32x20xf32> to vector<8x20xf32>
    %cst_85 = arith.constant dense<0.000000e+00> : vector<16x20xf32>
    %148 = tpu.matmul %146, %147, %cst_85 {dimension_numbers = #tpu.dot_dimension_numbers<[1], [0], [0], [1], [0, 0, 1, 1], [], []>} : vector<16x8xf32>, vector<8x20xf32>, vector<16x20xf32> -> vector<16x20xf32>
    %149 = vector.extract_strided_slice %125 {offsets = [0, 24], sizes = [16, 8], strides = [1, 1]} : vector<16x32xf32> to vector<16x8xf32>
    %150 = vector.extract_strided_slice %139 {offsets = [24, 0], sizes = [8, 20], strides = [1, 1]} : vector<32x20xf32> to vector<8x20xf32>
    %cst_86 = arith.constant dense<0.000000e+00> : vector<16x20xf32>
    %151 = tpu.matmul %149, %150, %cst_86 {dimension_numbers = #tpu.dot_dimension_numbers<[1], [0], [0], [1], [0, 0, 1, 1], [], []>} : vector<16x8xf32>, vector<8x20xf32>, vector<16x20xf32> -> vector<16x20xf32>
    %152 = tpu.concatenate %142, %145, %148, %151 in 0 : vector<16x20xf32>, vector<16x20xf32>, vector<16x20xf32>, vector<16x20xf32> -> vector<64x20xf32>
    %cst_87 = arith.constant 0.353553385 : f32
    %153 = vector.broadcast %cst_87 : f32 to vector<64x20xf32>
    %154 = arith.mulf %152, %153 : vector<64x20xf32>
    %155 = arith.addf %154, %19 : vector<64x20xf32>
    %cst_88 = arith.constant dense<0xFF800000> : vector<64xf32>
    %156 = vector.multi_reduction <maximumf>, %155, %cst_88 [1] : vector<64x20xf32> to vector<64xf32>
    %157 = vector.shape_cast %156 : vector<64xf32> to vector<64x1xf32>
    %158 = vector.broadcast %157 : vector<64x1xf32> to vector<64x20xf32>
    %159 = arith.subf %155, %158 : vector<64x20xf32>
    %160 = math.exp %159 : vector<64x20xf32>
    %cst_89 = arith.constant dense<0.000000e+00> : vector<64xf32>
    %161 = vector.multi_reduction <add>, %160, %cst_89 [1] : vector<64x20xf32> to vector<64xf32>
    %162 = vector.shape_cast %161 : vector<64xf32> to vector<64x1xf32>
    %163 = tpu.reciprocal %162 {approx = true} : vector<64x1xf32> -> vector<64x1xf32>
    %164 = vector.broadcast %163 : vector<64x1xf32> to vector<64x20xf32>
    %165 = arith.mulf %160, %164 : vector<64x20xf32>
    %166 = vector.extract_strided_slice %165 {offsets = [0, 0], sizes = [16, 20], strides = [1, 1]} : vector<64x20xf32> to vector<16x20xf32>
    %167 = vector.extract_strided_slice %133 {offsets = [0, 32], sizes = [20, 8], strides = [1, 1]} : vector<20x64xf32> to vector<20x8xf32>
    %168 = arith.truncf %166 : vector<16x20xf32> to vector<16x20xbf16>
    %169 = arith.truncf %167 : vector<20x8xf32> to vector<20x8xbf16>
    %cst_90 = arith.constant dense<0.000000e+00> : vector<16x8xf32>
    %170 = tpu.matmul %168, %169, %cst_90 {dimension_numbers = #tpu.dot_dimension_numbers<[1], [0], [0], [1], [0, 0, 1, 1], [], []>} : vector<16x20xbf16>, vector<20x8xbf16>, vector<16x8xf32> -> vector<16x8xf32>
    %c0_91 = arith.constant 0 : index
    %c0_92 = arith.constant 0 : index
    %171 = vector.load %arg30[%c0_91, %c0_92] : memref<16x32xf32, #tpu.memory_space<vmem>>, vector<16x8xf32>
    tpu.vector_store %arg30[%c0_91, %c0_92], %170 {strides = array<i32>} : memref<16x32xf32, #tpu.memory_space<vmem>>, vector<16x8xf32>,
    %172 = vector.extract_strided_slice %165 {offsets = [16, 0], sizes = [16, 20], strides = [1, 1]} : vector<64x20xf32> to vector<16x20xf32>
    %173 = vector.extract_strided_slice %133 {offsets = [0, 40], sizes = [20, 8], strides = [1, 1]} : vector<20x64xf32> to vector<20x8xf32>
    %174 = arith.truncf %172 : vector<16x20xf32> to vector<16x20xbf16>
    %175 = arith.truncf %173 : vector<20x8xf32> to vector<20x8xbf16>
    %cst_93 = arith.constant dense<0.000000e+00> : vector<16x8xf32>
    %176 = tpu.matmul %174, %175, %cst_93 {dimension_numbers = #tpu.dot_dimension_numbers<[1], [0], [0], [1], [0, 0, 1, 1], [], []>} : vector<16x20xbf16>, vector<20x8xbf16>, vector<16x8xf32> -> vector<16x8xf32>
    %c0_94 = arith.constant 0 : index
    %c8_95 = arith.constant 8 : index
    %177 = vector.load %arg30[%c0_94, %c8_95] : memref<16x32xf32, #tpu.memory_space<vmem>>, vector<16x8xf32>
    tpu.vector_store %arg30[%c0_94, %c8_95], %176 {strides = array<i32>} : memref<16x32xf32, #tpu.memory_space<vmem>>, vector<16x8xf32>,
    %178 = vector.extract_strided_slice %165 {offsets = [32, 0], sizes = [16, 20], strides = [1, 1]} : vector<64x20xf32> to vector<16x20xf32>
    %179 = vector.extract_strided_slice %133 {offsets = [0, 48], sizes = [20, 8], strides = [1, 1]} : vector<20x64xf32> to vector<20x8xf32>
    %180 = arith.truncf %178 : vector<16x20xf32> to vector<16x20xbf16>
    %181 = arith.truncf %179 : vector<20x8xf32> to vector<20x8xbf16>
    %cst_96 = arith.constant dense<0.000000e+00> : vector<16x8xf32>
    %182 = tpu.matmul %180, %181, %cst_96 {dimension_numbers = #tpu.dot_dimension_numbers<[1], [0], [0], [1], [0, 0, 1, 1], [], []>} : vector<16x20xbf16>, vector<20x8xbf16>, vector<16x8xf32> -> vector<16x8xf32>
    %c0_97 = arith.constant 0 : index
    %c16_98 = arith.constant 16 : index
    %183 = vector.load %arg30[%c0_97, %c16_98] : memref<16x32xf32, #tpu.memory_space<vmem>>, vector<16x8xf32>
    tpu.vector_store %arg30[%c0_97, %c16_98], %182 {strides = array<i32>} : memref<16x32xf32, #tpu.memory_space<vmem>>, vector<16x8xf32>,
    %184 = vector.extract_strided_slice %165 {offsets = [48, 0], sizes = [16, 20], strides = [1, 1]} : vector<64x20xf32> to vector<16x20xf32>
    %185 = vector.extract_strided_slice %133 {offsets = [0, 56], sizes = [20, 8], strides = [1, 1]} : vector<20x64xf32> to vector<20x8xf32>
    %186 = arith.truncf %184 : vector<16x20xf32> to vector<16x20xbf16>
    %187 = arith.truncf %185 : vector<20x8xf32> to vector<20x8xbf16>
    %cst_99 = arith.constant dense<0.000000e+00> : vector<16x8xf32>
    %188 = tpu.matmul %186, %187, %cst_99 {dimension_numbers = #tpu.dot_dimension_numbers<[1], [0], [0], [1], [0, 0, 1, 1], [], []>} : vector<16x20xbf16>, vector<20x8xbf16>, vector<16x8xf32> -> vector<16x8xf32>
    %c0_100 = arith.constant 0 : index
    %c24_101 = arith.constant 24 : index
    %189 = vector.load %arg30[%c0_100, %c24_101] : memref<16x32xf32, #tpu.memory_space<vmem>>, vector<16x8xf32>
    tpu.vector_store %arg30[%c0_100, %c24_101], %188 {strides = array<i32>} : memref<16x32xf32, #tpu.memory_space<vmem>>, vector<16x8xf32>,
    %c0_102 = arith.constant 0 : index
    %c0_103 = arith.constant 0 : index
    %190 = vector.load %arg30[%c0_102, %c0_103] : memref<16x32xf32, #tpu.memory_space<vmem>>, vector<16x32xf32>
    %191 = arith.truncf %190 : vector<16x32xf32> to vector<16x32xbf16>
    %cst_104 = arith.constant dense<0.000000e+00> : vector<16x32xf32>
    %192 = tpu.matmul %191, %135, %cst_104 {dimension_numbers = #tpu.dot_dimension_numbers<[1], [0], [0], [1], [0, 0, 1, 1], [], []>} : vector<16x32xbf16>, vector<32x32xbf16>, vector<16x32xf32> -> vector<16x32xf32>
    %193 = vector.broadcast %137 : vector<1x32xf32> to vector<16x32xf32>
    %194 = arith.addf %192, %193 : vector<16x32xf32>
    %195 = arith.addf %117, %194 : vector<16x32xf32>
    %c1 = arith.constant 1 : index
    %c0_105 = arith.constant 0 : index
    %c0_106 = arith.constant 0 : index
    %196 = vector.load %arg25[%c1, %c0_105, %c0_106] : memref<6x1x32xf32, #tpu.memory_space<vmem>>, vector<1x1x32xf32>
    %197 = vector.shape_cast %196 : vector<1x1x32xf32> to vector<1x32xf32>
    %c1_107 = arith.constant 1 : index
    %c0_108 = arith.constant 0 : index
    %c0_109 = arith.constant 0 : index
    %198 = vector.load %arg26[%c1_107, %c0_108, %c0_109] : memref<6x1x32xf32, #tpu.memory_space<vmem>>, vector<1x1x32xf32>
    %199 = vector.shape_cast %198 : vector<1x1x32xf32> to vector<1x32xf32>
    %cst_110 = arith.constant dense<0.000000e+00> : vector<16xf32>
    %200 = vector.multi_reduction <add>, %195, %cst_110 [1] : vector<16x32xf32> to vector<16xf32>
    %201 = vector.shape_cast %200 : vector<16xf32> to vector<16x1xf32>
    %cst_111 = arith.constant 3.200000e+01 : f32
    %202 = vector.broadcast %cst_111 : f32 to vector<16x1xf32>
    %203 = arith.divf %201, %202 : vector<16x1xf32>
    %204 = vector.broadcast %203 : vector<16x1xf32> to vector<16x32xf32>
    %205 = arith.subf %195, %204 : vector<16x32xf32>
    %206 = arith.mulf %205, %205 : vector<16x32xf32>
    %cst_112 = arith.constant dense<0.000000e+00> : vector<16xf32>
    %207 = vector.multi_reduction <add>, %206, %cst_112 [1] : vector<16x32xf32> to vector<16xf32>
    %208 = vector.shape_cast %207 : vector<16xf32> to vector<16x1xf32>
    %cst_113 = arith.constant 3.200000e+01 : f32
    %209 = vector.broadcast %cst_113 : f32 to vector<16x1xf32>
    %210 = arith.divf %208, %209 : vector<16x1xf32>
    %211 = vector.broadcast %203 : vector<16x1xf32> to vector<16x32xf32>
    %212 = arith.subf %195, %211 : vector<16x32xf32>
    %cst_114 = arith.constant 9.99999974E-6 : f32
    %213 = vector.broadcast %cst_114 : f32 to vector<16x1xf32>
    %214 = arith.addf %210, %213 : vector<16x1xf32>
    %215 = math.rsqrt %214 : vector<16x1xf32>
    %216 = vector.broadcast %215 : vector<16x1xf32> to vector<16x32xf32>
    %217 = arith.mulf %212, %216 : vector<16x32xf32>
    %218 = vector.broadcast %197 : vector<1x32xf32> to vector<16x32xf32>
    %219 = arith.mulf %217, %218 : vector<16x32xf32>
    %220 = vector.broadcast %199 : vector<1x32xf32> to vector<16x32xf32>
    %221 = arith.addf %219, %220 : vector<16x32xf32>
    %c0_115 = arith.constant 0 : index
    %c0_116 = arith.constant 0 : index
    %c0_117 = arith.constant 0 : index
    %222 = vector.load %arg21[%c0_115, %c0_116, %c0_117] : memref<2x32x32xbf16, #tpu.memory_space<vmem>>, vector<1x32x32xbf16>
    %223 = vector.shape_cast %222 : vector<1x32x32xbf16> to vector<32x32xbf16>
    %224 = arith.truncf %221 : vector<16x32xf32> to vector<16x32xbf16>
    %cst_118 = arith.constant dense<0.000000e+00> : vector<16x32xf32>
    %225 = tpu.matmul %224, %223, %cst_118 {dimension_numbers = #tpu.dot_dimension_numbers<[1], [0], [0], [1], [0, 0, 1, 1], [], []>} : vector<16x32xbf16>, vector<32x32xbf16>, vector<16x32xf32> -> vector<16x32xf32>
    %c0_119 = arith.constant 0 : index
    %c0_120 = arith.constant 0 : index
    %c0_121 = arith.constant 0 : index
    %226 = vector.load %arg22[%c0_119, %c0_120, %c0_121] : memref<2x1x32xf32, #tpu.memory_space<vmem>>, vector<1x1x32xf32>
    %227 = vector.shape_cast %226 : vector<1x1x32xf32> to vector<1x32xf32>
    %228 = vector.broadcast %227 : vector<1x32xf32> to vector<16x32xf32>
    %229 = arith.addf %225, %228 : vector<16x32xf32>
    %cst_122 = arith.constant 0.000000e+00 : f32
    %230 = vector.broadcast %cst_122 : f32 to vector<16x32xf32>
    %231 = arith.maximumf %229, %230 : vector<16x32xf32>
    %c0_123 = arith.constant 0 : index
    %c0_124 = arith.constant 0 : index
    %c0_125 = arith.constant 0 : index
    %232 = vector.load %arg23[%c0_123, %c0_124, %c0_125] : memref<2x32x32xbf16, #tpu.memory_space<vmem>>, vector<1x32x32xbf16>
    %233 = vector.shape_cast %232 : vector<1x32x32xbf16> to vector<32x32xbf16>
    %234 = arith.truncf %231 : vector<16x32xf32> to vector<16x32xbf16>
    %cst_126 = arith.constant dense<0.000000e+00> : vector<16x32xf32>
    %235 = tpu.matmul %234, %233, %cst_126 {dimension_numbers = #tpu.dot_dimension_numbers<[1], [0], [0], [1], [0, 0, 1, 1], [], []>} : vector<16x32xbf16>, vector<32x32xbf16>, vector<16x32xf32> -> vector<16x32xf32>
    %c0_127 = arith.constant 0 : index
    %c0_128 = arith.constant 0 : index
    %c0_129 = arith.constant 0 : index
    %236 = vector.load %arg24[%c0_127, %c0_128, %c0_129] : memref<2x1x32xf32, #tpu.memory_space<vmem>>, vector<1x1x32xf32>
    %237 = vector.shape_cast %236 : vector<1x1x32xf32> to vector<1x32xf32>
    %238 = vector.broadcast %237 : vector<1x32xf32> to vector<16x32xf32>
    %239 = arith.addf %235, %238 : vector<16x32xf32>
    %240 = arith.addf %221, %239 : vector<16x32xf32>
    %c2 = arith.constant 2 : index
    %c0_130 = arith.constant 0 : index
    %c0_131 = arith.constant 0 : index
    %241 = vector.load %arg25[%c2, %c0_130, %c0_131] : memref<6x1x32xf32, #tpu.memory_space<vmem>>, vector<1x1x32xf32>
    %242 = vector.shape_cast %241 : vector<1x1x32xf32> to vector<1x32xf32>
    %c2_132 = arith.constant 2 : index
    %c0_133 = arith.constant 0 : index
    %c0_134 = arith.constant 0 : index
    %243 = vector.load %arg26[%c2_132, %c0_133, %c0_134] : memref<6x1x32xf32, #tpu.memory_space<vmem>>, vector<1x1x32xf32>
    %244 = vector.shape_cast %243 : vector<1x1x32xf32> to vector<1x32xf32>
    %cst_135 = arith.constant dense<0.000000e+00> : vector<16xf32>
    %245 = vector.multi_reduction <add>, %240, %cst_135 [1] : vector<16x32xf32> to vector<16xf32>
    %246 = vector.shape_cast %245 : vector<16xf32> to vector<16x1xf32>
    %cst_136 = arith.constant 3.200000e+01 : f32
    %247 = vector.broadcast %cst_136 : f32 to vector<16x1xf32>
    %248 = arith.divf %246, %247 : vector<16x1xf32>
    %249 = vector.broadcast %248 : vector<16x1xf32> to vector<16x32xf32>
    %250 = arith.subf %240, %249 : vector<16x32xf32>
    %251 = arith.mulf %250, %250 : vector<16x32xf32>
    %cst_137 = arith.constant dense<0.000000e+00> : vector<16xf32>
    %252 = vector.multi_reduction <add>, %251, %cst_137 [1] : vector<16x32xf32> to vector<16xf32>
    %253 = vector.shape_cast %252 : vector<16xf32> to vector<16x1xf32>
    %cst_138 = arith.constant 3.200000e+01 : f32
    %254 = vector.broadcast %cst_138 : f32 to vector<16x1xf32>
    %255 = arith.divf %253, %254 : vector<16x1xf32>
    %256 = vector.broadcast %248 : vector<16x1xf32> to vector<16x32xf32>
    %257 = arith.subf %240, %256 : vector<16x32xf32>
    %cst_139 = arith.constant 9.99999974E-6 : f32
    %258 = vector.broadcast %cst_139 : f32 to vector<16x1xf32>
    %259 = arith.addf %255, %258 : vector<16x1xf32>
    %260 = math.rsqrt %259 : vector<16x1xf32>
    %261 = vector.broadcast %260 : vector<16x1xf32> to vector<16x32xf32>
    %262 = arith.mulf %257, %261 : vector<16x32xf32>
    %263 = vector.broadcast %242 : vector<1x32xf32> to vector<16x32xf32>
    %264 = arith.mulf %262, %263 : vector<16x32xf32>
    %265 = vector.broadcast %244 : vector<1x32xf32> to vector<16x32xf32>
    %266 = arith.addf %264, %265 : vector<16x32xf32>
    %c1_140 = arith.constant 1 : index
    %c0_141 = arith.constant 0 : index
    %c0_142 = arith.constant 0 : index
    %267 = vector.load %arg11[%c1_140, %c0_141, %c0_142] : memref<2x32x96xbf16, #tpu.memory_space<vmem>>, vector<1x32x96xbf16>
    %268 = vector.shape_cast %267 : vector<1x32x96xbf16> to vector<32x96xbf16>
    %269 = arith.truncf %266 : vector<16x32xf32> to vector<16x32xbf16>
    %cst_143 = arith.constant dense<0.000000e+00> : vector<16x96xf32>
    %270 = tpu.matmul %269, %268, %cst_143 {dimension_numbers = #tpu.dot_dimension_numbers<[1], [0], [0], [1], [0, 0, 1, 1], [], []>} : vector<16x32xbf16>, vector<32x96xbf16>, vector<16x96xf32> -> vector<16x96xf32>
    %c1_144 = arith.constant 1 : index
    %c0_145 = arith.constant 0 : index
    %c0_146 = arith.constant 0 : index
    %271 = vector.load %arg12[%c1_144, %c0_145, %c0_146] : memref<2x1x96xf32, #tpu.memory_space<vmem>>, vector<1x1x96xf32>
    %272 = vector.shape_cast %271 : vector<1x1x96xf32> to vector<1x96xf32>
    %273 = vector.broadcast %272 : vector<1x96xf32> to vector<16x96xf32>
    %274 = arith.addf %270, %273 : vector<16x96xf32>
    %275 = vector.extract_strided_slice %274 {offsets = [0, 0], sizes = [16, 32], strides = [1, 1]} : vector<16x96xf32> to vector<16x32xf32>
    %276 = vector.extract_strided_slice %274 {offsets = [0, 32], sizes = [16, 64], strides = [1, 1]} : vector<16x96xf32> to vector<16x64xf32>
    %c1_147 = arith.constant 1 : index
    %c0_148 = arith.constant 0 : index
    %c0_149 = arith.constant 0 : index
    %277 = vector.load %arg13[%c1_147, %c0_148, %c0_149] : memref<2x32x32xbf16, #tpu.memory_space<vmem>>, vector<1x32x32xbf16>
    %278 = vector.shape_cast %277 : vector<1x32x32xbf16> to vector<32x32xbf16>
    %c1_150 = arith.constant 1 : index
    %c0_151 = arith.constant 0 : index
    %c0_152 = arith.constant 0 : index
    %279 = vector.load %arg14[%c1_150, %c0_151, %c0_152] : memref<2x1x32xf32, #tpu.memory_space<vmem>>, vector<1x1x32xf32>
    %280 = vector.shape_cast %279 : vector<1x1x32xf32> to vector<1x32xf32>
    %281 = vector.extract_strided_slice %276 {offsets = [0, 0], sizes = [16, 32], strides = [1, 1]} : vector<16x64xf32> to vector<16x32xf32>
    %282 = tpu.transpose %281, [1, 0] : vector<16x32xf32> -> vector<32x16xf32>
    %283 = vector.extract_strided_slice %275 {offsets = [0, 0], sizes = [16, 8], strides = [1, 1]} : vector<16x32xf32> to vector<16x8xf32>
    %284 = vector.extract_strided_slice %282 {offsets = [0, 0], sizes = [8, 16], strides = [1, 1]} : vector<32x16xf32> to vector<8x16xf32>
    %cst_153 = arith.constant dense<0.000000e+00> : vector<16x16xf32>
    %285 = tpu.matmul %283, %284, %cst_153 {dimension_numbers = #tpu.dot_dimension_numbers<[1], [0], [0], [1], [0, 0, 1, 1], [], []>} : vector<16x8xf32>, vector<8x16xf32>, vector<16x16xf32> -> vector<16x16xf32>
    %286 = vector.extract_strided_slice %275 {offsets = [0, 8], sizes = [16, 8], strides = [1, 1]} : vector<16x32xf32> to vector<16x8xf32>
    %287 = vector.extract_strided_slice %282 {offsets = [8, 0], sizes = [8, 16], strides = [1, 1]} : vector<32x16xf32> to vector<8x16xf32>
    %cst_154 = arith.constant dense<0.000000e+00> : vector<16x16xf32>
    %288 = tpu.matmul %286, %287, %cst_154 {dimension_numbers = #tpu.dot_dimension_numbers<[1], [0], [0], [1], [0, 0, 1, 1], [], []>} : vector<16x8xf32>, vector<8x16xf32>, vector<16x16xf32> -> vector<16x16xf32>
    %289 = vector.extract_strided_slice %275 {offsets = [0, 16], sizes = [16, 8], strides = [1, 1]} : vector<16x32xf32> to vector<16x8xf32>
    %290 = vector.extract_strided_slice %282 {offsets = [16, 0], sizes = [8, 16], strides = [1, 1]} : vector<32x16xf32> to vector<8x16xf32>
    %cst_155 = arith.constant dense<0.000000e+00> : vector<16x16xf32>
    %291 = tpu.matmul %289, %290, %cst_155 {dimension_numbers = #tpu.dot_dimension_numbers<[1], [0], [0], [1], [0, 0, 1, 1], [], []>} : vector<16x8xf32>, vector<8x16xf32>, vector<16x16xf32> -> vector<16x16xf32>
    %292 = vector.extract_strided_slice %275 {offsets = [0, 24], sizes = [16, 8], strides = [1, 1]} : vector<16x32xf32> to vector<16x8xf32>
    %293 = vector.extract_strided_slice %282 {offsets = [24, 0], sizes = [8, 16], strides = [1, 1]} : vector<32x16xf32> to vector<8x16xf32>
    %cst_156 = arith.constant dense<0.000000e+00> : vector<16x16xf32>
    %294 = tpu.matmul %292, %293, %cst_156 {dimension_numbers = #tpu.dot_dimension_numbers<[1], [0], [0], [1], [0, 0, 1, 1], [], []>} : vector<16x8xf32>, vector<8x16xf32>, vector<16x16xf32> -> vector<16x16xf32>
    %295 = tpu.concatenate %285, %288, %291, %294 in 0 : vector<16x16xf32>, vector<16x16xf32>, vector<16x16xf32>, vector<16x16xf32> -> vector<64x16xf32>
    %cst_157 = arith.constant 0.353553385 : f32
    %296 = vector.broadcast %cst_157 : f32 to vector<64x16xf32>
    %297 = arith.mulf %295, %296 : vector<64x16xf32>
    %298 = arith.addf %297, %18 : vector<64x16xf32>
    %cst_158 = arith.constant dense<0xFF800000> : vector<64xf32>
    %299 = vector.multi_reduction <maximumf>, %298, %cst_158 [1] : vector<64x16xf32> to vector<64xf32>
    %300 = vector.shape_cast %299 : vector<64xf32> to vector<64x1xf32>
    %301 = vector.broadcast %300 : vector<64x1xf32> to vector<64x16xf32>
    %302 = arith.subf %298, %301 : vector<64x16xf32>
    %303 = math.exp %302 : vector<64x16xf32>
    %cst_159 = arith.constant dense<0.000000e+00> : vector<64xf32>
    %304 = vector.multi_reduction <add>, %303, %cst_159 [1] : vector<64x16xf32> to vector<64xf32>
    %305 = vector.shape_cast %304 : vector<64xf32> to vector<64x1xf32>
    %306 = tpu.reciprocal %305 {approx = true} : vector<64x1xf32> -> vector<64x1xf32>
    %307 = vector.broadcast %306 : vector<64x1xf32> to vector<64x16xf32>
    %308 = arith.mulf %303, %307 : vector<64x16xf32>
    %309 = vector.extract_strided_slice %308 {offsets = [0, 0], sizes = [16, 16], strides = [1, 1]} : vector<64x16xf32> to vector<16x16xf32>
    %310 = vector.extract_strided_slice %276 {offsets = [0, 32], sizes = [16, 8], strides = [1, 1]} : vector<16x64xf32> to vector<16x8xf32>
    %311 = arith.truncf %309 : vector<16x16xf32> to vector<16x16xbf16>
    %312 = arith.truncf %310 : vector<16x8xf32> to vector<16x8xbf16>
    %cst_160 = arith.constant dense<0.000000e+00> : vector<16x8xf32>
    %313 = tpu.matmul %311, %312, %cst_160 {dimension_numbers = #tpu.dot_dimension_numbers<[1], [0], [0], [1], [0, 0, 1, 1], [], []>} : vector<16x16xbf16>, vector<16x8xbf16>, vector<16x8xf32> -> vector<16x8xf32>
    %c0_161 = arith.constant 0 : index
    %c0_162 = arith.constant 0 : index
    %314 = vector.load %arg30[%c0_161, %c0_162] : memref<16x32xf32, #tpu.memory_space<vmem>>, vector<16x8xf32>
    tpu.vector_store %arg30[%c0_161, %c0_162], %313 {strides = array<i32>} : memref<16x32xf32, #tpu.memory_space<vmem>>, vector<16x8xf32>,
    %315 = vector.extract_strided_slice %308 {offsets = [16, 0], sizes = [16, 16], strides = [1, 1]} : vector<64x16xf32> to vector<16x16xf32>
    %316 = vector.extract_strided_slice %276 {offsets = [0, 40], sizes = [16, 8], strides = [1, 1]} : vector<16x64xf32> to vector<16x8xf32>
    %317 = arith.truncf %315 : vector<16x16xf32> to vector<16x16xbf16>
    %318 = arith.truncf %316 : vector<16x8xf32> to vector<16x8xbf16>
    %cst_163 = arith.constant dense<0.000000e+00> : vector<16x8xf32>
    %319 = tpu.matmul %317, %318, %cst_163 {dimension_numbers = #tpu.dot_dimension_numbers<[1], [0], [0], [1], [0, 0, 1, 1], [], []>} : vector<16x16xbf16>, vector<16x8xbf16>, vector<16x8xf32> -> vector<16x8xf32>
    %c0_164 = arith.constant 0 : index
    %c8_165 = arith.constant 8 : index
    %320 = vector.load %arg30[%c0_164, %c8_165] : memref<16x32xf32, #tpu.memory_space<vmem>>, vector<16x8xf32>
    tpu.vector_store %arg30[%c0_164, %c8_165], %319 {strides = array<i32>} : memref<16x32xf32, #tpu.memory_space<vmem>>, vector<16x8xf32>,
    %321 = vector.extract_strided_slice %308 {offsets = [32, 0], sizes = [16, 16], strides = [1, 1]} : vector<64x16xf32> to vector<16x16xf32>
    %322 = vector.extract_strided_slice %276 {offsets = [0, 48], sizes = [16, 8], strides = [1, 1]} : vector<16x64xf32> to vector<16x8xf32>
    %323 = arith.truncf %321 : vector<16x16xf32> to vector<16x16xbf16>
    %324 = arith.truncf %322 : vector<16x8xf32> to vector<16x8xbf16>
    %cst_166 = arith.constant dense<0.000000e+00> : vector<16x8xf32>
    %325 = tpu.matmul %323, %324, %cst_166 {dimension_numbers = #tpu.dot_dimension_numbers<[1], [0], [0], [1], [0, 0, 1, 1], [], []>} : vector<16x16xbf16>, vector<16x8xbf16>, vector<16x8xf32> -> vector<16x8xf32>
    %c0_167 = arith.constant 0 : index
    %c16_168 = arith.constant 16 : index
    %326 = vector.load %arg30[%c0_167, %c16_168] : memref<16x32xf32, #tpu.memory_space<vmem>>, vector<16x8xf32>
    tpu.vector_store %arg30[%c0_167, %c16_168], %325 {strides = array<i32>} : memref<16x32xf32, #tpu.memory_space<vmem>>, vector<16x8xf32>,
    %327 = vector.extract_strided_slice %308 {offsets = [48, 0], sizes = [16, 16], strides = [1, 1]} : vector<64x16xf32> to vector<16x16xf32>
    %328 = vector.extract_strided_slice %276 {offsets = [0, 56], sizes = [16, 8], strides = [1, 1]} : vector<16x64xf32> to vector<16x8xf32>
    %329 = arith.truncf %327 : vector<16x16xf32> to vector<16x16xbf16>
    %330 = arith.truncf %328 : vector<16x8xf32> to vector<16x8xbf16>
    %cst_169 = arith.constant dense<0.000000e+00> : vector<16x8xf32>
    %331 = tpu.matmul %329, %330, %cst_169 {dimension_numbers = #tpu.dot_dimension_numbers<[1], [0], [0], [1], [0, 0, 1, 1], [], []>} : vector<16x16xbf16>, vector<16x8xbf16>, vector<16x8xf32> -> vector<16x8xf32>
    %c0_170 = arith.constant 0 : index
    %c24_171 = arith.constant 24 : index
    %332 = vector.load %arg30[%c0_170, %c24_171] : memref<16x32xf32, #tpu.memory_space<vmem>>, vector<16x8xf32>
    tpu.vector_store %arg30[%c0_170, %c24_171], %331 {strides = array<i32>} : memref<16x32xf32, #tpu.memory_space<vmem>>, vector<16x8xf32>,
    %c0_172 = arith.constant 0 : index
    %c0_173 = arith.constant 0 : index
    %333 = vector.load %arg30[%c0_172, %c0_173] : memref<16x32xf32, #tpu.memory_space<vmem>>, vector<16x32xf32>
    %334 = arith.truncf %333 : vector<16x32xf32> to vector<16x32xbf16>
    %cst_174 = arith.constant dense<0.000000e+00> : vector<16x32xf32>
    %335 = tpu.matmul %334, %278, %cst_174 {dimension_numbers = #tpu.dot_dimension_numbers<[1], [0], [0], [1], [0, 0, 1, 1], [], []>} : vector<16x32xbf16>, vector<32x32xbf16>, vector<16x32xf32> -> vector<16x32xf32>
    %336 = vector.broadcast %280 : vector<1x32xf32> to vector<16x32xf32>
    %337 = arith.addf %335, %336 : vector<16x32xf32>
    %338 = arith.addf %266, %337 : vector<16x32xf32>
    %c3 = arith.constant 3 : index
    %c0_175 = arith.constant 0 : index
    %c0_176 = arith.constant 0 : index
    %339 = vector.load %arg25[%c3, %c0_175, %c0_176] : memref<6x1x32xf32, #tpu.memory_space<vmem>>, vector<1x1x32xf32>
    %340 = vector.shape_cast %339 : vector<1x1x32xf32> to vector<1x32xf32>
    %c3_177 = arith.constant 3 : index
    %c0_178 = arith.constant 0 : index
    %c0_179 = arith.constant 0 : index
    %341 = vector.load %arg26[%c3_177, %c0_178, %c0_179] : memref<6x1x32xf32, #tpu.memory_space<vmem>>, vector<1x1x32xf32>
    %342 = vector.shape_cast %341 : vector<1x1x32xf32> to vector<1x32xf32>
    %cst_180 = arith.constant dense<0.000000e+00> : vector<16xf32>
    %343 = vector.multi_reduction <add>, %338, %cst_180 [1] : vector<16x32xf32> to vector<16xf32>
    %344 = vector.shape_cast %343 : vector<16xf32> to vector<16x1xf32>
    %cst_181 = arith.constant 3.200000e+01 : f32
    %345 = vector.broadcast %cst_181 : f32 to vector<16x1xf32>
    %346 = arith.divf %344, %345 : vector<16x1xf32>
    %347 = vector.broadcast %346 : vector<16x1xf32> to vector<16x32xf32>
    %348 = arith.subf %338, %347 : vector<16x32xf32>
    %349 = arith.mulf %348, %348 : vector<16x32xf32>
    %cst_182 = arith.constant dense<0.000000e+00> : vector<16xf32>
    %350 = vector.multi_reduction <add>, %349, %cst_182 [1] : vector<16x32xf32> to vector<16xf32>
    %351 = vector.shape_cast %350 : vector<16xf32> to vector<16x1xf32>
    %cst_183 = arith.constant 3.200000e+01 : f32
    %352 = vector.broadcast %cst_183 : f32 to vector<16x1xf32>
    %353 = arith.divf %351, %352 : vector<16x1xf32>
    %354 = vector.broadcast %346 : vector<16x1xf32> to vector<16x32xf32>
    %355 = arith.subf %338, %354 : vector<16x32xf32>
    %cst_184 = arith.constant 9.99999974E-6 : f32
    %356 = vector.broadcast %cst_184 : f32 to vector<16x1xf32>
    %357 = arith.addf %353, %356 : vector<16x1xf32>
    %358 = math.rsqrt %357 : vector<16x1xf32>
    %359 = vector.broadcast %358 : vector<16x1xf32> to vector<16x32xf32>
    %360 = arith.mulf %355, %359 : vector<16x32xf32>
    %361 = vector.broadcast %340 : vector<1x32xf32> to vector<16x32xf32>
    %362 = arith.mulf %360, %361 : vector<16x32xf32>
    %363 = vector.broadcast %342 : vector<1x32xf32> to vector<16x32xf32>
    %364 = arith.addf %362, %363 : vector<16x32xf32>
    %c1_185 = arith.constant 1 : index
    %c0_186 = arith.constant 0 : index
    %c0_187 = arith.constant 0 : index
    %365 = vector.load %arg15[%c1_185, %c0_186, %c0_187] : memref<2x32x32xbf16, #tpu.memory_space<vmem>>, vector<1x32x32xbf16>
    %366 = vector.shape_cast %365 : vector<1x32x32xbf16> to vector<32x32xbf16>
    %367 = arith.truncf %364 : vector<16x32xf32> to vector<16x32xbf16>
    %cst_188 = arith.constant dense<0.000000e+00> : vector<16x32xf32>
    %368 = tpu.matmul %367, %366, %cst_188 {dimension_numbers = #tpu.dot_dimension_numbers<[1], [0], [0], [1], [0, 0, 1, 1], [], []>} : vector<16x32xbf16>, vector<32x32xbf16>, vector<16x32xf32> -> vector<16x32xf32>
    %c1_189 = arith.constant 1 : index
    %c0_190 = arith.constant 0 : index
    %c0_191 = arith.constant 0 : index
    %369 = vector.load %arg16[%c1_189, %c0_190, %c0_191] : memref<2x1x32xf32, #tpu.memory_space<vmem>>, vector<1x1x32xf32>
    %370 = vector.shape_cast %369 : vector<1x1x32xf32> to vector<1x32xf32>
    %371 = vector.broadcast %370 : vector<1x32xf32> to vector<16x32xf32>
    %372 = arith.addf %368, %371 : vector<16x32xf32>
    %c1_192 = arith.constant 1 : index
    %c0_193 = arith.constant 0 : index
    %c0_194 = arith.constant 0 : index
    %373 = vector.load %arg17[%c1_192, %c0_193, %c0_194] : memref<2x32x64xbf16, #tpu.memory_space<vmem>>, vector<1x32x64xbf16>
    %374 = vector.shape_cast %373 : vector<1x32x64xbf16> to vector<32x64xbf16>
    %375 = arith.truncf %9 : vector<20x32xf32> to vector<20x32xbf16>
    %cst_195 = arith.constant dense<0.000000e+00> : vector<20x64xf32>
    %376 = tpu.matmul %375, %374, %cst_195 {dimension_numbers = #tpu.dot_dimension_numbers<[1], [0], [0], [1], [0, 0, 1, 1], [], []>} : vector<20x32xbf16>, vector<32x64xbf16>, vector<20x64xf32> -> vector<20x64xf32>
    %c1_196 = arith.constant 1 : index
    %c0_197 = arith.constant 0 : index
    %c0_198 = arith.constant 0 : index
    %377 = vector.load %arg18[%c1_196, %c0_197, %c0_198] : memref<2x1x64xf32, #tpu.memory_space<vmem>>, vector<1x1x64xf32>
    %378 = vector.shape_cast %377 : vector<1x1x64xf32> to vector<1x64xf32>
    %379 = vector.broadcast %378 : vector<1x64xf32> to vector<20x64xf32>
    %380 = arith.addf %376, %379 : vector<20x64xf32>
    %c1_199 = arith.constant 1 : index
    %c0_200 = arith.constant 0 : index
    %c0_201 = arith.constant 0 : index
    %381 = vector.load %arg19[%c1_199, %c0_200, %c0_201] : memref<2x32x32xbf16, #tpu.memory_space<vmem>>, vector<1x32x32xbf16>
    %382 = vector.shape_cast %381 : vector<1x32x32xbf16> to vector<32x32xbf16>
    %c1_202 = arith.constant 1 : index
    %c0_203 = arith.constant 0 : index
    %c0_204 = arith.constant 0 : index
    %383 = vector.load %arg20[%c1_202, %c0_203, %c0_204] : memref<2x1x32xf32, #tpu.memory_space<vmem>>, vector<1x1x32xf32>
    %384 = vector.shape_cast %383 : vector<1x1x32xf32> to vector<1x32xf32>
    %385 = vector.extract_strided_slice %380 {offsets = [0, 0], sizes = [20, 32], strides = [1, 1]} : vector<20x64xf32> to vector<20x32xf32>
    %386 = tpu.transpose %385, [1, 0] : vector<20x32xf32> -> vector<32x20xf32>
    %387 = vector.extract_strided_slice %372 {offsets = [0, 0], sizes = [16, 8], strides = [1, 1]} : vector<16x32xf32> to vector<16x8xf32>
    %388 = vector.extract_strided_slice %386 {offsets = [0, 0], sizes = [8, 20], strides = [1, 1]} : vector<32x20xf32> to vector<8x20xf32>
    %cst_205 = arith.constant dense<0.000000e+00> : vector<16x20xf32>
    %389 = tpu.matmul %387, %388, %cst_205 {dimension_numbers = #tpu.dot_dimension_numbers<[1], [0], [0], [1], [0, 0, 1, 1], [], []>} : vector<16x8xf32>, vector<8x20xf32>, vector<16x20xf32> -> vector<16x20xf32>
    %390 = vector.extract_strided_slice %372 {offsets = [0, 8], sizes = [16, 8], strides = [1, 1]} : vector<16x32xf32> to vector<16x8xf32>
    %391 = vector.extract_strided_slice %386 {offsets = [8, 0], sizes = [8, 20], strides = [1, 1]} : vector<32x20xf32> to vector<8x20xf32>
    %cst_206 = arith.constant dense<0.000000e+00> : vector<16x20xf32>
    %392 = tpu.matmul %390, %391, %cst_206 {dimension_numbers = #tpu.dot_dimension_numbers<[1], [0], [0], [1], [0, 0, 1, 1], [], []>} : vector<16x8xf32>, vector<8x20xf32>, vector<16x20xf32> -> vector<16x20xf32>
    %393 = vector.extract_strided_slice %372 {offsets = [0, 16], sizes = [16, 8], strides = [1, 1]} : vector<16x32xf32> to vector<16x8xf32>
    %394 = vector.extract_strided_slice %386 {offsets = [16, 0], sizes = [8, 20], strides = [1, 1]} : vector<32x20xf32> to vector<8x20xf32>
    %cst_207 = arith.constant dense<0.000000e+00> : vector<16x20xf32>
    %395 = tpu.matmul %393, %394, %cst_207 {dimension_numbers = #tpu.dot_dimension_numbers<[1], [0], [0], [1], [0, 0, 1, 1], [], []>} : vector<16x8xf32>, vector<8x20xf32>, vector<16x20xf32> -> vector<16x20xf32>
    %396 = vector.extract_strided_slice %372 {offsets = [0, 24], sizes = [16, 8], strides = [1, 1]} : vector<16x32xf32> to vector<16x8xf32>
    %397 = vector.extract_strided_slice %386 {offsets = [24, 0], sizes = [8, 20], strides = [1, 1]} : vector<32x20xf32> to vector<8x20xf32>
    %cst_208 = arith.constant dense<0.000000e+00> : vector<16x20xf32>
    %398 = tpu.matmul %396, %397, %cst_208 {dimension_numbers = #tpu.dot_dimension_numbers<[1], [0], [0], [1], [0, 0, 1, 1], [], []>} : vector<16x8xf32>, vector<8x20xf32>, vector<16x20xf32> -> vector<16x20xf32>
    %399 = tpu.concatenate %389, %392, %395, %398 in 0 : vector<16x20xf32>, vector<16x20xf32>, vector<16x20xf32>, vector<16x20xf32> -> vector<64x20xf32>
    %cst_209 = arith.constant 0.353553385 : f32
    %400 = vector.broadcast %cst_209 : f32 to vector<64x20xf32>
    %401 = arith.mulf %399, %400 : vector<64x20xf32>
    %402 = arith.addf %401, %19 : vector<64x20xf32>
    %cst_210 = arith.constant dense<0xFF800000> : vector<64xf32>
    %403 = vector.multi_reduction <maximumf>, %402, %cst_210 [1] : vector<64x20xf32> to vector<64xf32>
    %404 = vector.shape_cast %403 : vector<64xf32> to vector<64x1xf32>
    %405 = vector.broadcast %404 : vector<64x1xf32> to vector<64x20xf32>
    %406 = arith.subf %402, %405 : vector<64x20xf32>
    %407 = math.exp %406 : vector<64x20xf32>
    %cst_211 = arith.constant dense<0.000000e+00> : vector<64xf32>
    %408 = vector.multi_reduction <add>, %407, %cst_211 [1] : vector<64x20xf32> to vector<64xf32>
    %409 = vector.shape_cast %408 : vector<64xf32> to vector<64x1xf32>
    %410 = tpu.reciprocal %409 {approx = true} : vector<64x1xf32> -> vector<64x1xf32>
    %411 = vector.broadcast %410 : vector<64x1xf32> to vector<64x20xf32>
    %412 = arith.mulf %407, %411 : vector<64x20xf32>
    %413 = vector.extract_strided_slice %412 {offsets = [0, 0], sizes = [16, 20], strides = [1, 1]} : vector<64x20xf32> to vector<16x20xf32>
    %414 = vector.extract_strided_slice %380 {offsets = [0, 32], sizes = [20, 8], strides = [1, 1]} : vector<20x64xf32> to vector<20x8xf32>
    %415 = arith.truncf %413 : vector<16x20xf32> to vector<16x20xbf16>
    %416 = arith.truncf %414 : vector<20x8xf32> to vector<20x8xbf16>
    %cst_212 = arith.constant dense<0.000000e+00> : vector<16x8xf32>
    %417 = tpu.matmul %415, %416, %cst_212 {dimension_numbers = #tpu.dot_dimension_numbers<[1], [0], [0], [1], [0, 0, 1, 1], [], []>} : vector<16x20xbf16>, vector<20x8xbf16>, vector<16x8xf32> -> vector<16x8xf32>
    %c0_213 = arith.constant 0 : index
    %c0_214 = arith.constant 0 : index
    %418 = vector.load %arg30[%c0_213, %c0_214] : memref<16x32xf32, #tpu.memory_space<vmem>>, vector<16x8xf32>
    tpu.vector_store %arg30[%c0_213, %c0_214], %417 {strides = array<i32>} : memref<16x32xf32, #tpu.memory_space<vmem>>, vector<16x8xf32>,
    %419 = vector.extract_strided_slice %412 {offsets = [16, 0], sizes = [16, 20], strides = [1, 1]} : vector<64x20xf32> to vector<16x20xf32>
    %420 = vector.extract_strided_slice %380 {offsets = [0, 40], sizes = [20, 8], strides = [1, 1]} : vector<20x64xf32> to vector<20x8xf32>
    %421 = arith.truncf %419 : vector<16x20xf32> to vector<16x20xbf16>
    %422 = arith.truncf %420 : vector<20x8xf32> to vector<20x8xbf16>
    %cst_215 = arith.constant dense<0.000000e+00> : vector<16x8xf32>
    %423 = tpu.matmul %421, %422, %cst_215 {dimension_numbers = #tpu.dot_dimension_numbers<[1], [0], [0], [1], [0, 0, 1, 1], [], []>} : vector<16x20xbf16>, vector<20x8xbf16>, vector<16x8xf32> -> vector<16x8xf32>
    %c0_216 = arith.constant 0 : index
    %c8_217 = arith.constant 8 : index
    %424 = vector.load %arg30[%c0_216, %c8_217] : memref<16x32xf32, #tpu.memory_space<vmem>>, vector<16x8xf32>
    tpu.vector_store %arg30[%c0_216, %c8_217], %423 {strides = array<i32>} : memref<16x32xf32, #tpu.memory_space<vmem>>, vector<16x8xf32>,
    %425 = vector.extract_strided_slice %412 {offsets = [32, 0], sizes = [16, 20], strides = [1, 1]} : vector<64x20xf32> to vector<16x20xf32>
    %426 = vector.extract_strided_slice %380 {offsets = [0, 48], sizes = [20, 8], strides = [1, 1]} : vector<20x64xf32> to vector<20x8xf32>
    %427 = arith.truncf %425 : vector<16x20xf32> to vector<16x20xbf16>
    %428 = arith.truncf %426 : vector<20x8xf32> to vector<20x8xbf16>
    %cst_218 = arith.constant dense<0.000000e+00> : vector<16x8xf32>
    %429 = tpu.matmul %427, %428, %cst_218 {dimension_numbers = #tpu.dot_dimension_numbers<[1], [0], [0], [1], [0, 0, 1, 1], [], []>} : vector<16x20xbf16>, vector<20x8xbf16>, vector<16x8xf32> -> vector<16x8xf32>
    %c0_219 = arith.constant 0 : index
    %c16_220 = arith.constant 16 : index
    %430 = vector.load %arg30[%c0_219, %c16_220] : memref<16x32xf32, #tpu.memory_space<vmem>>, vector<16x8xf32>
    tpu.vector_store %arg30[%c0_219, %c16_220], %429 {strides = array<i32>} : memref<16x32xf32, #tpu.memory_space<vmem>>, vector<16x8xf32>,
    %431 = vector.extract_strided_slice %412 {offsets = [48, 0], sizes = [16, 20], strides = [1, 1]} : vector<64x20xf32> to vector<16x20xf32>
    %432 = vector.extract_strided_slice %380 {offsets = [0, 56], sizes = [20, 8], strides = [1, 1]} : vector<20x64xf32> to vector<20x8xf32>
    %433 = arith.truncf %431 : vector<16x20xf32> to vector<16x20xbf16>
    %434 = arith.truncf %432 : vector<20x8xf32> to vector<20x8xbf16>
    %cst_221 = arith.constant dense<0.000000e+00> : vector<16x8xf32>
    %435 = tpu.matmul %433, %434, %cst_221 {dimension_numbers = #tpu.dot_dimension_numbers<[1], [0], [0], [1], [0, 0, 1, 1], [], []>} : vector<16x20xbf16>, vector<20x8xbf16>, vector<16x8xf32> -> vector<16x8xf32>
    %c0_222 = arith.constant 0 : index
    %c24_223 = arith.constant 24 : index
    %436 = vector.load %arg30[%c0_222, %c24_223] : memref<16x32xf32, #tpu.memory_space<vmem>>, vector<16x8xf32>
    tpu.vector_store %arg30[%c0_222, %c24_223], %435 {strides = array<i32>} : memref<16x32xf32, #tpu.memory_space<vmem>>, vector<16x8xf32>,
    %c0_224 = arith.constant 0 : index
    %c0_225 = arith.constant 0 : index
    %437 = vector.load %arg30[%c0_224, %c0_225] : memref<16x32xf32, #tpu.memory_space<vmem>>, vector<16x32xf32>
    %438 = arith.truncf %437 : vector<16x32xf32> to vector<16x32xbf16>
    %cst_226 = arith.constant dense<0.000000e+00> : vector<16x32xf32>
    %439 = tpu.matmul %438, %382, %cst_226 {dimension_numbers = #tpu.dot_dimension_numbers<[1], [0], [0], [1], [0, 0, 1, 1], [], []>} : vector<16x32xbf16>, vector<32x32xbf16>, vector<16x32xf32> -> vector<16x32xf32>
    %440 = vector.broadcast %384 : vector<1x32xf32> to vector<16x32xf32>
    %441 = arith.addf %439, %440 : vector<16x32xf32>
    %442 = arith.addf %364, %441 : vector<16x32xf32>
    %c4 = arith.constant 4 : index
    %c0_227 = arith.constant 0 : index
    %c0_228 = arith.constant 0 : index
    %443 = vector.load %arg25[%c4, %c0_227, %c0_228] : memref<6x1x32xf32, #tpu.memory_space<vmem>>, vector<1x1x32xf32>
    %444 = vector.shape_cast %443 : vector<1x1x32xf32> to vector<1x32xf32>
    %c4_229 = arith.constant 4 : index
    %c0_230 = arith.constant 0 : index
    %c0_231 = arith.constant 0 : index
    %445 = vector.load %arg26[%c4_229, %c0_230, %c0_231] : memref<6x1x32xf32, #tpu.memory_space<vmem>>, vector<1x1x32xf32>
    %446 = vector.shape_cast %445 : vector<1x1x32xf32> to vector<1x32xf32>
    %cst_232 = arith.constant dense<0.000000e+00> : vector<16xf32>
    %447 = vector.multi_reduction <add>, %442, %cst_232 [1] : vector<16x32xf32> to vector<16xf32>
    %448 = vector.shape_cast %447 : vector<16xf32> to vector<16x1xf32>
    %cst_233 = arith.constant 3.200000e+01 : f32
    %449 = vector.broadcast %cst_233 : f32 to vector<16x1xf32>
    %450 = arith.divf %448, %449 : vector<16x1xf32>
    %451 = vector.broadcast %450 : vector<16x1xf32> to vector<16x32xf32>
    %452 = arith.subf %442, %451 : vector<16x32xf32>
    %453 = arith.mulf %452, %452 : vector<16x32xf32>
    %cst_234 = arith.constant dense<0.000000e+00> : vector<16xf32>
    %454 = vector.multi_reduction <add>, %453, %cst_234 [1] : vector<16x32xf32> to vector<16xf32>
    %455 = vector.shape_cast %454 : vector<16xf32> to vector<16x1xf32>
    %cst_235 = arith.constant 3.200000e+01 : f32
    %456 = vector.broadcast %cst_235 : f32 to vector<16x1xf32>
    %457 = arith.divf %455, %456 : vector<16x1xf32>
    %458 = vector.broadcast %450 : vector<16x1xf32> to vector<16x32xf32>
    %459 = arith.subf %442, %458 : vector<16x32xf32>
    %cst_236 = arith.constant 9.99999974E-6 : f32
    %460 = vector.broadcast %cst_236 : f32 to vector<16x1xf32>
    %461 = arith.addf %457, %460 : vector<16x1xf32>
    %462 = math.rsqrt %461 : vector<16x1xf32>
    %463 = vector.broadcast %462 : vector<16x1xf32> to vector<16x32xf32>
    %464 = arith.mulf %459, %463 : vector<16x32xf32>
    %465 = vector.broadcast %444 : vector<1x32xf32> to vector<16x32xf32>
    %466 = arith.mulf %464, %465 : vector<16x32xf32>
    %467 = vector.broadcast %446 : vector<1x32xf32> to vector<16x32xf32>
    %468 = arith.addf %466, %467 : vector<16x32xf32>
    %c1_237 = arith.constant 1 : index
    %c0_238 = arith.constant 0 : index
    %c0_239 = arith.constant 0 : index
    %469 = vector.load %arg21[%c1_237, %c0_238, %c0_239] : memref<2x32x32xbf16, #tpu.memory_space<vmem>>, vector<1x32x32xbf16>
    %470 = vector.shape_cast %469 : vector<1x32x32xbf16> to vector<32x32xbf16>
    %471 = arith.truncf %468 : vector<16x32xf32> to vector<16x32xbf16>
    %cst_240 = arith.constant dense<0.000000e+00> : vector<16x32xf32>
    %472 = tpu.matmul %471, %470, %cst_240 {dimension_numbers = #tpu.dot_dimension_numbers<[1], [0], [0], [1], [0, 0, 1, 1], [], []>} : vector<16x32xbf16>, vector<32x32xbf16>, vector<16x32xf32> -> vector<16x32xf32>
    %c1_241 = arith.constant 1 : index
    %c0_242 = arith.constant 0 : index
    %c0_243 = arith.constant 0 : index
    %473 = vector.load %arg22[%c1_241, %c0_242, %c0_243] : memref<2x1x32xf32, #tpu.memory_space<vmem>>, vector<1x1x32xf32>
    %474 = vector.shape_cast %473 : vector<1x1x32xf32> to vector<1x32xf32>
    %475 = vector.broadcast %474 : vector<1x32xf32> to vector<16x32xf32>
    %476 = arith.addf %472, %475 : vector<16x32xf32>
    %cst_244 = arith.constant 0.000000e+00 : f32
    %477 = vector.broadcast %cst_244 : f32 to vector<16x32xf32>
    %478 = arith.maximumf %476, %477 : vector<16x32xf32>
    %c1_245 = arith.constant 1 : index
    %c0_246 = arith.constant 0 : index
    %c0_247 = arith.constant 0 : index
    %479 = vector.load %arg23[%c1_245, %c0_246, %c0_247] : memref<2x32x32xbf16, #tpu.memory_space<vmem>>, vector<1x32x32xbf16>
    %480 = vector.shape_cast %479 : vector<1x32x32xbf16> to vector<32x32xbf16>
    %481 = arith.truncf %478 : vector<16x32xf32> to vector<16x32xbf16>
    %cst_248 = arith.constant dense<0.000000e+00> : vector<16x32xf32>
    %482 = tpu.matmul %481, %480, %cst_248 {dimension_numbers = #tpu.dot_dimension_numbers<[1], [0], [0], [1], [0, 0, 1, 1], [], []>} : vector<16x32xbf16>, vector<32x32xbf16>, vector<16x32xf32> -> vector<16x32xf32>
    %c1_249 = arith.constant 1 : index
    %c0_250 = arith.constant 0 : index
    %c0_251 = arith.constant 0 : index
    %483 = vector.load %arg24[%c1_249, %c0_250, %c0_251] : memref<2x1x32xf32, #tpu.memory_space<vmem>>, vector<1x1x32xf32>
    %484 = vector.shape_cast %483 : vector<1x1x32xf32> to vector<1x32xf32>
    %485 = vector.broadcast %484 : vector<1x32xf32> to vector<16x32xf32>
    %486 = arith.addf %482, %485 : vector<16x32xf32>
    %487 = arith.addf %468, %486 : vector<16x32xf32>
    %c5 = arith.constant 5 : index
    %c0_252 = arith.constant 0 : index
    %c0_253 = arith.constant 0 : index
    %488 = vector.load %arg25[%c5, %c0_252, %c0_253] : memref<6x1x32xf32, #tpu.memory_space<vmem>>, vector<1x1x32xf32>
    %489 = vector.shape_cast %488 : vector<1x1x32xf32> to vector<1x32xf32>
    %c5_254 = arith.constant 5 : index
    %c0_255 = arith.constant 0 : index
    %c0_256 = arith.constant 0 : index
    %490 = vector.load %arg26[%c5_254, %c0_255, %c0_256] : memref<6x1x32xf32, #tpu.memory_space<vmem>>, vector<1x1x32xf32>
    %491 = vector.shape_cast %490 : vector<1x1x32xf32> to vector<1x32xf32>
    %cst_257 = arith.constant dense<0.000000e+00> : vector<16xf32>
    %492 = vector.multi_reduction <add>, %487, %cst_257 [1] : vector<16x32xf32> to vector<16xf32>
    %493 = vector.shape_cast %492 : vector<16xf32> to vector<16x1xf32>
    %cst_258 = arith.constant 3.200000e+01 : f32
    %494 = vector.broadcast %cst_258 : f32 to vector<16x1xf32>
    %495 = arith.divf %493, %494 : vector<16x1xf32>
    %496 = vector.broadcast %495 : vector<16x1xf32> to vector<16x32xf32>
    %497 = arith.subf %487, %496 : vector<16x32xf32>
    %498 = arith.mulf %497, %497 : vector<16x32xf32>
    %cst_259 = arith.constant dense<0.000000e+00> : vector<16xf32>
    %499 = vector.multi_reduction <add>, %498, %cst_259 [1] : vector<16x32xf32> to vector<16xf32>
    %500 = vector.shape_cast %499 : vector<16xf32> to vector<16x1xf32>
    %cst_260 = arith.constant 3.200000e+01 : f32
    %501 = vector.broadcast %cst_260 : f32 to vector<16x1xf32>
    %502 = arith.divf %500, %501 : vector<16x1xf32>
    %503 = vector.broadcast %495 : vector<16x1xf32> to vector<16x32xf32>
    %504 = arith.subf %487, %503 : vector<16x32xf32>
    %cst_261 = arith.constant 9.99999974E-6 : f32
    %505 = vector.broadcast %cst_261 : f32 to vector<16x1xf32>
    %506 = arith.addf %502, %505 : vector<16x1xf32>
    %507 = math.rsqrt %506 : vector<16x1xf32>
    %508 = vector.broadcast %507 : vector<16x1xf32> to vector<16x32xf32>
    %509 = arith.mulf %504, %508 : vector<16x32xf32>
    %510 = vector.broadcast %489 : vector<1x32xf32> to vector<16x32xf32>
    %511 = arith.mulf %509, %510 : vector<16x32xf32>
    %512 = vector.broadcast %491 : vector<1x32xf32> to vector<16x32xf32>
    %513 = arith.addf %511, %512 : vector<16x32xf32>
    %c0_262 = arith.constant 0 : index
    %c0_263 = arith.constant 0 : index
    %514 = vector.load %arg27[%c0_262, %c0_263] : memref<32x1xbf16, #tpu.memory_space<vmem>>, vector<32x1xbf16>
    %515 = arith.truncf %513 : vector<16x32xf32> to vector<16x32xbf16>
    %cst_264 = arith.constant dense<0.000000e+00> : vector<16x1xf32>
    %516 = tpu.matmul %515, %514, %cst_264 {dimension_numbers = #tpu.dot_dimension_numbers<[1], [0], [0], [1], [0, 0, 1, 1], [], []>} : vector<16x32xbf16>, vector<32x1xbf16>, vector<16x1xf32> -> vector<16x1xf32>
    %c0_265 = arith.constant 0 : index
    %c0_266 = arith.constant 0 : index
    %517 = vector.load %arg28[%c0_265, %c0_266] : memref<1x1xf32, #tpu.memory_space<vmem>>, vector<1x1xf32>
    %518 = vector.broadcast %517 : vector<1x1xf32> to vector<16x1xf32>
    %519 = arith.addf %516, %518 : vector<16x1xf32>
    %520 = vector.extract_strided_slice %519 {offsets = [7, 0], sizes = [1, 1], strides = [1, 1]} : vector<16x1xf32> to vector<1x1xf32>
    %c0_267 = arith.constant 0 : index
    %c0_268 = arith.constant 0 : index
    %c0_269 = arith.constant 0 : index
    %521 = vector.load %arg29[%c0_267, %c0_268, %c0_269] : memref<2x1x1xf32, #tpu.memory_space<vmem>>, vector<1x1x1xf32>
    %522 = vector.shape_cast %521 : vector<1x1x1xf32> to vector<1x1xf32>
    %523 = vector.shape_cast %520 : vector<1x1xf32> to vector<1x1x1xf32>
    tpu.vector_store %arg29[%c0_267, %c0_268, %c0_269], %523 {strides = array<i32>} : memref<2x1x1xf32, #tpu.memory_space<vmem>>, vector<1x1x1xf32>,
    %524 = vector.extract_strided_slice %519 {offsets = [15, 0], sizes = [1, 1], strides = [1, 1]} : vector<16x1xf32> to vector<1x1xf32>
    %c1_270 = arith.constant 1 : index
    %c0_271 = arith.constant 0 : index
    %c0_272 = arith.constant 0 : index
    %525 = vector.load %arg29[%c1_270, %c0_271, %c0_272] : memref<2x1x1xf32, #tpu.memory_space<vmem>>, vector<1x1x1xf32>
    %526 = vector.shape_cast %525 : vector<1x1x1xf32> to vector<1x1xf32>
    %527 = vector.shape_cast %524 : vector<1x1xf32> to vector<1x1x1xf32>
    tpu.vector_store %arg29[%c1_270, %c0_271, %c0_272], %527 {strides = array<i32>} : memref<2x1x1xf32, #tpu.memory_space<vmem>>, vector<1x1x1xf32>,
    return
  }
  func.func @transform_0(%arg0: i32) -> (i32, i32) {
    %c0_i32 = arith.constant 0 : i32
    %c0_i32_0 = arith.constant 0 : i32
    %c0_i32_1 = arith.constant 0 : i32
    return %c0_i32, %c0_i32_0 : i32, i32
  }
  func.func @transform_1(%arg0: i32) -> (i32, i32) {
    %c0_i32 = arith.constant 0 : i32
    %c0_i32_0 = arith.constant 0 : i32
    %c0_i32_1 = arith.constant 0 : i32
    return %c0_i32, %c0_i32_0 : i32, i32
  }
  func.func @transform_2(%arg0: i32) -> (i32, i32) {
    %c0_i32 = arith.constant 0 : i32
    %c0_i32_0 = arith.constant 0 : i32
    %c0_i32_1 = arith.constant 0 : i32
    return %c0_i32, %c0_i32_0 : i32, i32
  }
  func.func @transform_3(%arg0: i32) -> (i32, i32) {
    %c0_i32 = arith.constant 0 : i32
    %c0_i32_0 = arith.constant 0 : i32
    %c0_i32_1 = arith.constant 0 : i32
    return %c0_i32, %c0_i32_0 : i32, i32
  }
  func.func @transform_4(%arg0: i32) -> (i32, i32) {
    %c0_i32 = arith.constant 0 : i32
    %c0_i32_0 = arith.constant 0 : i32
    %c0_i32_1 = arith.constant 0 : i32
    return %c0_i32, %c0_i32_0 : i32, i32
  }
  func.func @transform_5(%arg0: i32) -> (i32, i32) {
    %c0_i32 = arith.constant 0 : i32
    %c0_i32_0 = arith.constant 0 : i32
    %c0_i32_1 = arith.constant 0 : i32
    return %c0_i32, %c0_i32_0 : i32, i32
  }
  func.func @transform_6(%arg0: i32) -> (i32, i32) {
    %c0_i32 = arith.constant 0 : i32
    %c0_i32_0 = arith.constant 0 : i32
    %c0_i32_1 = arith.constant 0 : i32
    return %c0_i32, %c0_i32_0 : i32, i32
  }
  func.func @transform_7(%arg0: i32) -> (i32, i32) {
    %c0_i32 = arith.constant 0 : i32
    %c0_i32_0 = arith.constant 0 : i32
    %c0_i32_1 = arith.constant 0 : i32
    return %c0_i32, %c0_i32_0 : i32, i32
  }
  func.func @transform_8(%arg0: i32) -> (i32, i32) {
    %c0_i32 = arith.constant 0 : i32
    %c0_i32_0 = arith.constant 0 : i32
    %c0_i32_1 = arith.constant 0 : i32
    return %c0_i32, %c0_i32_0 : i32, i32
  }
  func.func @transform_9(%arg0: i32) -> (i32, i32) {
    %c0_i32 = arith.constant 0 : i32
    %c0_i32_0 = arith.constant 0 : i32
    %c0_i32_1 = arith.constant 0 : i32
    return %c0_i32, %c0_i32_0 : i32, i32
  }
  func.func @transform_10(%arg0: i32) -> (i32, i32, i32) {
    %c0_i32 = arith.constant 0 : i32
    %c0_i32_0 = arith.constant 0 : i32
    %c0_i32_1 = arith.constant 0 : i32
    %c0_i32_2 = arith.constant 0 : i32
    return %c0_i32, %c0_i32_0, %c0_i32_1 : i32, i32, i32
  }
  func.func @transform_11(%arg0: i32) -> (i32, i32, i32) {
    %c0_i32 = arith.constant 0 : i32
    %c0_i32_0 = arith.constant 0 : i32
    %c0_i32_1 = arith.constant 0 : i32
    %c0_i32_2 = arith.constant 0 : i32
    return %c0_i32, %c0_i32_0, %c0_i32_1 : i32, i32, i32
  }
  func.func @transform_12(%arg0: i32) -> (i32, i32, i32) {
    %c0_i32 = arith.constant 0 : i32
    %c0_i32_0 = arith.constant 0 : i32
    %c0_i32_1 = arith.constant 0 : i32
    %c0_i32_2 = arith.constant 0 : i32
    return %c0_i32, %c0_i32_0, %c0_i32_1 : i32, i32, i32
  }
  func.func @transform_13(%arg0: i32) -> (i32, i32, i32) {
    %c0_i32 = arith.constant 0 : i32
    %c0_i32_0 = arith.constant 0 : i32
    %c0_i32_1 = arith.constant 0 : i32
    %c0_i32_2 = arith.constant 0 : i32
    return %c0_i32, %c0_i32_0, %c0_i32_1 : i32, i32, i32
  }
  func.func @transform_14(%arg0: i32) -> (i32, i32, i32) {
    %c0_i32 = arith.constant 0 : i32
    %c0_i32_0 = arith.constant 0 : i32
    %c0_i32_1 = arith.constant 0 : i32
    %c0_i32_2 = arith.constant 0 : i32
    return %c0_i32, %c0_i32_0, %c0_i32_1 : i32, i32, i32
  }
  func.func @transform_15(%arg0: i32) -> (i32, i32, i32) {
    %c0_i32 = arith.constant 0 : i32
    %c0_i32_0 = arith.constant 0 : i32
    %c0_i32_1 = arith.constant 0 : i32
    %c0_i32_2 = arith.constant 0 : i32
    return %c0_i32, %c0_i32_0, %c0_i32_1 : i32, i32, i32
  }
  func.func @transform_16(%arg0: i32) -> (i32, i32, i32) {
    %c0_i32 = arith.constant 0 : i32
    %c0_i32_0 = arith.constant 0 : i32
    %c0_i32_1 = arith.constant 0 : i32
    %c0_i32_2 = arith.constant 0 : i32
    return %c0_i32, %c0_i32_0, %c0_i32_1 : i32, i32, i32
  }
  func.func @transform_17(%arg0: i32) -> (i32, i32, i32) {
    %c0_i32 = arith.constant 0 : i32
    %c0_i32_0 = arith.constant 0 : i32
    %c0_i32_1 = arith.constant 0 : i32
    %c0_i32_2 = arith.constant 0 : i32
    return %c0_i32, %c0_i32_0, %c0_i32_1 : i32, i32, i32
  }
  func.func @transform_18(%arg0: i32) -> (i32, i32, i32) {
    %c0_i32 = arith.constant 0 : i32
    %c0_i32_0 = arith.constant 0 : i32
    %c0_i32_1 = arith.constant 0 : i32
    %c0_i32_2 = arith.constant 0 : i32
    return %c0_i32, %c0_i32_0, %c0_i32_1 : i32, i32, i32
  }
  func.func @transform_19(%arg0: i32) -> (i32, i32, i32) {
    %c0_i32 = arith.constant 0 : i32
    %c0_i32_0 = arith.constant 0 : i32
    %c0_i32_1 = arith.constant 0 : i32
    %c0_i32_2 = arith.constant 0 : i32
    return %c0_i32, %c0_i32_0, %c0_i32_1 : i32, i32, i32
  }
  func.func @transform_20(%arg0: i32) -> (i32, i32, i32) {
    %c0_i32 = arith.constant 0 : i32
    %c0_i32_0 = arith.constant 0 : i32
    %c0_i32_1 = arith.constant 0 : i32
    %c0_i32_2 = arith.constant 0 : i32
    return %c0_i32, %c0_i32_0, %c0_i32_1 : i32, i32, i32
  }
  func.func @transform_21(%arg0: i32) -> (i32, i32, i32) {
    %c0_i32 = arith.constant 0 : i32
    %c0_i32_0 = arith.constant 0 : i32
    %c0_i32_1 = arith.constant 0 : i32
    %c0_i32_2 = arith.constant 0 : i32
    return %c0_i32, %c0_i32_0, %c0_i32_1 : i32, i32, i32
  }
  func.func @transform_22(%arg0: i32) -> (i32, i32, i32) {
    %c0_i32 = arith.constant 0 : i32
    %c0_i32_0 = arith.constant 0 : i32
    %c0_i32_1 = arith.constant 0 : i32
    %c0_i32_2 = arith.constant 0 : i32
    return %c0_i32, %c0_i32_0, %c0_i32_1 : i32, i32, i32
  }
  func.func @transform_23(%arg0: i32) -> (i32, i32, i32) {
    %c0_i32 = arith.constant 0 : i32
    %c0_i32_0 = arith.constant 0 : i32
    %c0_i32_1 = arith.constant 0 : i32
    %c0_i32_2 = arith.constant 0 : i32
    return %c0_i32, %c0_i32_0, %c0_i32_1 : i32, i32, i32
  }
  func.func @transform_24(%arg0: i32) -> (i32, i32, i32) {
    %c0_i32 = arith.constant 0 : i32
    %c0_i32_0 = arith.constant 0 : i32
    %c0_i32_1 = arith.constant 0 : i32
    %c0_i32_2 = arith.constant 0 : i32
    return %c0_i32, %c0_i32_0, %c0_i32_1 : i32, i32, i32
  }
  func.func @transform_25(%arg0: i32) -> (i32, i32, i32) {
    %c0_i32 = arith.constant 0 : i32
    %c0_i32_0 = arith.constant 0 : i32
    %c0_i32_1 = arith.constant 0 : i32
    %c0_i32_2 = arith.constant 0 : i32
    return %c0_i32, %c0_i32_0, %c0_i32_1 : i32, i32, i32
  }
  func.func @transform_26(%arg0: i32) -> (i32, i32) {
    %c0_i32 = arith.constant 0 : i32
    %c0_i32_0 = arith.constant 0 : i32
    %c0_i32_1 = arith.constant 0 : i32
    return %c0_i32, %c0_i32_0 : i32, i32
  }
  func.func @transform_27(%arg0: i32) -> (i32, i32) {
    %c0_i32 = arith.constant 0 : i32
    %c0_i32_0 = arith.constant 0 : i32
    %c0_i32_1 = arith.constant 0 : i32
    return %c0_i32, %c0_i32_0 : i32, i32
  }
  func.func @transform_28(%arg0: i32) -> (i32, i32, i32) {
    %c0_i32 = arith.constant 0 : i32
    %c0_i32_0 = arith.constant 0 : i32
    %c0_i32_1 = arith.constant 0 : i32
    return %arg0, %c0_i32, %c0_i32_0 : i32, i32, i32
  }
}

</mosaic_0001>

<bundles_post_ra>
// kernel: tile.24
= control target key start
LH: loop header
LB: loop body
LE: loop exit
PB: predicated region body
PF: predicated region fallthrough
CT: control target
= control target key end

     0   :  { %vm3_vm0 = vcmask 261120   ;;  %s60_s0 = inlined_call_operand.vmem [shape: f32[2,10,32], index: 0, kind: input, shape index: {}]   ;;  %s61_s1 = inlined_call_operand.vmem [shape: f32[20,32], index: 1, kind: output, shape index: {}]  }
   0x1   :  { %v2_v0 = vld [vmem:[%s60_s0] sm:$0xff]   ;;  %v20_v1 = vld [vmem:[%s60_s0 + $0x8] sm:$0x3]   ;;  %v22_v2 = vld [vmem:[%s60_s0 + $0x10] sm:$0xff]  }
   0x2   :  { %4 = vst.msk [vmem:[%s61_s1] sm:$0xff] %vm3_vm0, %v2_v0   ;;  %21 = vst.msk [vmem:[%s61_s1 + $0x8] sm:$0x3] %vm3_vm0, %v20_v1   ;;  %v24_v3 = vld [vmem:[%s60_s0 + $0x18] sm:$0x3]  }
   0x3   :  { %23 = vst.msk [vmem:[%s61_s1 + $0xa] sm:$0xff] %vm3_vm0, %v22_v2   ;;  %25 = vst.msk [vmem:[%s61_s1 + $0x12] sm:$0x3] %vm3_vm0, %v24_v3  }

// kernel: transformer_decoder_forward.1
= control target key start
LH: loop header
LB: loop body
LE: loop exit
PB: predicated region body
PF: predicated region fallthrough
CT: control target
= control target key end

     0   :  { %v5602_v0 = vmov 0.0   ;;  %vm199_vm0 = vcmask 1043456   ;;  %vm5603_vm1 = vmmov 0   ;;  %vm114_vm2 = vcmask 130048   ;;  %s6794_s29 = smov 56   ;;  %s6750_s8 = inlined_call_operand.vmem [shape: bf16[24,32], index: 8, kind: input, shape index: {}]   ;;  %s6751_s1 = inlined_call_operand.vmem [shape: f32[16,24], index: 1, kind: input, shape index: {}]   ;;  %s6752_s6 = inlined_call_operand.vmem [shape: bf16[16,32], index: 6, kind: input, shape index: {}]   ;;  %s6753_s0 = inlined_call_operand.vmem [shape: f32[20,16], index: 0, kind: input, shape index: {}]   ;;  %s6754_s10 = inlined_call_operand.vmem [shape: bf16[2,32,96], index: 10, kind: input, shape index: {}]   ;;  %s6755_s9 = inlined_call_operand.vmem [shape: f32[1,32], index: 9, kind: input, shape index: {}]   ;;  %s6756_s7 = inlined_call_operand.vmem [shape: f32[1,32], index: 7, kind: input, shape index: {}]   ;;  %s6757_s2 = inlined_call_operand.vmem [shape: f32[20,32], index: 2, kind: input, shape index: {}]   ;;  %s6758_s3 = inlined_call_operand.vmem [shape: f32[16,32], index: 3, kind: input, shape index: {}]   ;;  %s6759_s11 = inlined_call_operand.vmem [shape: f32[2,1,96], index: 11, kind: input, shape index: {}]   ;;  %s6760_s4 = inlined_call_operand.vmem [shape: f32[64,16], index: 4, kind: input, shape index: {}]   ;;  %s6761_s12 = inlined_call_operand.vmem [shape: bf16[2,32,32], index: 12, kind: input, shape index: {}]   ;;  %s6762_s16 = inlined_call_operand.vmem [shape: bf16[2,32,64], index: 16, kind: input, shape index: {}]   ;;  %s6763_s14 = inlined_call_operand.vmem [shape: bf16[2,32,32], index: 14, kind: input, shape index: {}]   ;;  %s6764_s13 = inlined_call_operand.vmem [shape: f32[2,1,32], index: 13, kind: input, shape index: {}]   ;;  %s6765_s17 = inlined_call_operand.vmem [shape: f32[2,1,64], index: 17, kind: input, shape index: {}]   ;;  %s6766_s24 = inlined_call_operand.vmem [shape: f32[6,1,32], index: 24, kind: input, shape index: {}]   ;;  %s6767_s25 = inlined_call_operand.vmem [shape: f32[6,1,32], index: 25, kind: input, shape index: {}]   ;;  %s6768_s15 = inlined_call_operand.vmem [shape: f32[2,1,32], index: 15, kind: input, shape index: {}]   ;;  %s6769_s5 = inlined_call_operand.vmem [shape: f32[64,20], index: 5, kind: input, shape index: {}]   ;;  %s6770_s18 = inlined_call_operand.vmem [shape: bf16[2,32,32], index: 18, kind: input, shape index: {}]   ;;  %s6771_s19 = inlined_call_operand.vmem [shape: f32[2,1,32], index: 19, kind: input, shape index: {}]   ;;  %s6772_s20 = inlined_call_operand.vmem [shape: bf16[2,32,32], index: 20, kind: input, shape index: {}]   ;;  %s6773_s22 = inlined_call_operand.vmem [shape: bf16[2,32,32], index: 22, kind: input, shape index: {}]   ;;  %s6774_s21 = inlined_call_operand.vmem [shape: f32[2,1,32], index: 21, kind: input, shape index: {}]   ;;  %s6775_s23 = inlined_call_operand.vmem [shape: f32[2,1,32], index: 23, kind: input, shape index: {}]   ;;  %s6776_s26 = inlined_call_operand.vmem [shape: bf16[32,1], index: 26, kind: input, shape index: {}]   ;;  %s6777_s27 = inlined_call_operand.<no memory space> [shape: f32[1,1], index: 27, kind: input, shape index: {}]   ;;  %s6778_s28 = inlined_call_operand.vmem [shape: f32[2,1,1], index: 28, kind: output, shape index: {}]  }
   0x1   :  { %6816 = sst [smem:[#allocation4_spill]] %s6750_s8  ;;  %4851 = vmatprep.subr.bf16.mxu1 %v5602_v0  ;;  %4855 = vmatprep.mubr.msk.bf16.mxu1 %vm5603_vm1, %v5602_v0  ;;  %vm195_vm3 = vcmask 195584   ;;  %vm288_vm4 = vcmask 261120   ;;  %vm344_vm5 = vcmask 64512   ;;  %vm913_vm7 = vcmask 130112  }
   0x2   :  { %6817 = sst [smem:[#allocation5_spill]] %s6751_s1  ;;  %vm5865_vm6 = vmpackc.low %vm344_vm5, %vm344_vm5  ;;  %vm972_vm8 = vcmask 195712   ;;  %vm1031_vm9 = vcmask 261312   ;;  %vm1689_vm10 = vcmask 162816   ;;  %vm1791_vm11 = vcmask 1041408  }
   0x3   :  { %6818 = sst [smem:[#allocation6_spill]] %s6752_s6  ;;  %s6834_s1 = sld [smem:[#allocation5_spill]]  ;;  %vm4456_vm12 = vcmask 7175  }
   0x4   :  { %6819 = sst [smem:[#allocation7_spill]] %s6753_s0 }
   0x5   :  { %6820 = sst [smem:[#allocation8_spill]] %s6754_s10  ;;  %s6836_s10 = sld [smem:[#allocation7_spill]] }
   0x6   :  { %6821 = sst [smem:[#allocation9_spill]] %s6755_s9  ;;  %s6811_s9 = smov 96  }
   0x7   :  { %6822 = sst [smem:[#allocation10_spill]] %s6756_s7  ;;  %s6809_s7 = smov 120  }
   0x8   :  { %6823 = sst [smem:[#allocation11_spill]] %s6757_s2  ;;  %s6793_s2 = smov 40  }
   0x9   :  { %6824 = sst [smem:[#allocation12_spill]] %s6758_s3  ;;  %v95_v3 = vld [vmem:[%s6834_s1] sm:$0xff]  ;;  %v96_v4 = vld [vmem:[%s6834_s1 + $0x8] sm:$0xff]  ;;  %s6837_s1 = sld [smem:[#allocation8_spill]] }
   0xa   :  { %6825 = sst [smem:[#allocation13_spill]] %s6759_s11  ;;  %s6833_s11 = sld [smem:[#allocation4_spill]]  ;;  %v178_v11 = vpack.c.bf16 %v96_v4, %v95_v3 }
   0xb   :  { %6826 = sst [smem:[#allocation14_spill]] %s6760_s4  ;;  %v92_v7 = vld [vmem:[%s6836_s10] sm:$0xff]  ;;  %v93_v8 = vld [vmem:[%s6836_s10 + $0x8] sm:$0xff]  ;;  %v94_v9 = vld [vmem:[%s6836_s10 + $0x10] sm:$0xf]  ;;  %s6839_s10 = sld [smem:[#allocation10_spill]] }
   0xc   :  { %6827 = sst [smem:[#allocation15_spill]] %s6761_s12  ;;  %v99_v10 = vpack.c.bf16 %v93_v8, %v92_v7  ;;  %v100_v12 = vpack.c.bf16 %v94_v9, %v94_v9  ;;  %s6840_s30 = sld [smem:[#allocation11_spill]] }
   0xd   :  { %6828 = sst [smem:[#allocation16_spill]] %s6762_s16  ;;  %s6835_s16 = sld [smem:[#allocation6_spill]] }
   0xe   :  { %6829 = sst [smem:[#allocation17_spill]] %s6775_s23  ;;  %4847 = vmatprep.mubr.msk.bf16.mxu0 %vm114_vm2, %v99_v10  ;;  %s6841_s8 = sld [smem:[#allocation12_spill]] }
   0xf   :  { %6830 = sst [smem:[#allocation18_spill]] %s6776_s26  ;;  %v5404_v13 = vld [vmem:[%s6837_s1] sm:$0xff]   ;;  %v5405_v14 = vld [vmem:[%s6837_s1 + $0x8] sm:$0xff]   ;;  %s6842_s0 = sld [smem:[#allocation13_spill]] }
  0x10   :  { %6831 = sst [smem:[#allocation19_spill]] %s6777_s27  ;;  %v5401_v1 = vld [vmem:[%s6833_s11] sm:$0xff]   ;;  %v5402_v2 = vld [vmem:[%s6833_s11 + $0x8] ss:$0 sps:$4 sm:$0xff]   ;;  %s6789_s11 = smov 72  }
  0x11   :  { %6832 = sst [smem:[#allocation20_spill]] %s6778_s28  ;;  %4852 = vmatpush3.bf16.msra.mxu1 %v5401_v1  ;;  %v201_v5 = vsel %vm199_vm0, %v5402_v2, 0  ;;  %v5809_v16 = vld [vmem:[%s6839_s10] ss:$0 sm:$0xff]  ;;  %s6791_s10 = smov 80  }
  0x12   :  { %4853 = vmatprep.subr.bf16.mxu1 %v5602_v0  ;;  %v169_v22 = vld [vmem:[%s6840_s30] sm:$0xff]  ;;  %v170_v31 = vld [vmem:[%s6840_s30 + $0x8] sm:$0xff]  ;;  %s6797_s4 = smov 88   ;;  %s6805_s12 = smov 104  }
  0x13   :  { %v5403_v6 = vld [vmem:[%s6835_s16] sm:$0xff]   ;;  %s6838_s16 = sld [smem:[#allocation9_spill]]  ;;  %s6845_s6 = sld [smem:[#allocation14_spill]] }
  0x14   :  { %4845 = vmatprep.subr.bf16.mxu0 %v5403_v6  ;;  %v244_v23 = vld [vmem:[%s6841_s8] sm:$0xff]  ;;  %v245_v25 = vld [vmem:[%s6841_s8 + $0x8] sm:$0xff]  ;;  %s6807_s8 = smov 112   ;;  %s6847_s3 = sld [smem:[#allocation16_spill]] }
  0x15   :  { %4854 = vmatpush3.bf16.msra.mxu1 %v201_v5  ;;  %4846 = vmatpush3.bf16.msra.mxu0 %v5403_v6  ;;  %v4472_v39 = vld [vmem:[%s6842_s0] ss:$0 sm:$0xff]  ;;  %s6855_s27 = smov 120   ;;  %s6857_s28 = smov 104  }
  0x16   :  { %4859 = vmatprep.subr.bf16.mxu0 %v5602_v0 }
  0x18   :  { %4856 = vmatmul.mubr.msk.bf16.vlgmr.msra.gmra.mrb[0].mxu1 %vm195_vm3, %v178_v11  ;;  %4848 = vmatmul.mubr.msk.bf16.vlgmr.msra.gmra.mrb[0].mxu0 %vm114_vm2, %v100_v12 }
  0x19   :  { %4863 = vmatprep.mubr.msk.bf16.mxu0 %vm5603_vm1, %v5602_v0  ;;  %4860 = vmatpush3.bf16.msra.mxu0 %v5404_v13  ;;  %v4468_v15 = vld [vmem:[%s6838_s16] ss:$0 sm:$0xff]  ;;  %v249_v8 = vld [vmem:[%s6845_s6 + $0x8] sm:$0xff]  ;;  %v251_v13 = vld [vmem:[%s6845_s6 + $0x18] sm:$0xff]  ;;  %s6799_s16 = smov 8  }
  0x1a   :  { %4861 = vmatprep.subr.bf16.mxu0 %v5602_v0 }
  0x1d   :  { %4862 = vmatpush3.bf16.msra.mxu0 %v5405_v14 }
  0xeb   :  { %v237_v17 = vpop.f32.mrb[0].mxu1  ;;  %v5811_v18 = vpop.f32.mrb[0].mxu0 }
  0xec   :  { %v238_v19 = vadd.f32 %v4468_v15, %v237_v17  ;;  %v4857_v20 = vpop.f32.mrb[1].mxu1  ;;  %v155_v21 = vpop.f32.mrb[1].mxu0 }
  0xed   :  { %v240_v24 = vpop.f32.mrb[2].mxu1  ;;  %v156_v26 = vadd.f32 %v5809_v16, %v155_v21  ;;  %v4850_v27 = vpop.f32.mrb[2].mxu0  ;;  %v248_v20 = vld [vmem:[%s6845_s6] sm:$0xff] }
  0xee   :  { %v241_v28 = vadd.f32 %v4468_v15, %v240_v24  ;;  %v4858_v29 = vpop.f32.mrb[3].mxu1  ;;  %v158_v30 = vpop.f32.mrb[3].mxu0  ;;  %v5827_v34 = vadd.f32 %v244_v23, %v238_v19  ;;  %v252_v27 = vld [vmem:[%s6845_s6 + $0x20] sm:$0xff] }
  0xef   :  { %v172_v32 = vadd.f32 %v169_v22, %v156_v26  ;;  %v159_v33 = vadd.f32 %v5809_v16, %v158_v30  ;;  %v250_v29 = vld [vmem:[%s6845_s6 + $0x10] sm:$0xff] }
  0xf0   :  { %v5829_v35 = vadd.f32 %v245_v25, %v241_v28 }
  0xf1   :  { %v173_v36 = vadd.f32 %v170_v31, %v159_v33 }
  0xf2   :  { %v268_v37 = vpack.c.bf16 %v5829_v35, %v5827_v34 }
  0xf3   :  { %v5833_v38 = vpack.c.bf16 %v173_v36, %v172_v32 }
  0xf4   :  { %4864 = vmatmul.mubr.msk.bf16.vlgmr.msra.gmra.mrb[4].mxu0 %vm288_vm4, %v268_v37 }
 0x1c7   :  { %v326_v40 = vpop.f32.mrb[4].mxu0 }
 0x1c8   :  { %v5839_v41 = vadd.f32 %v4472_v39, %v326_v40  ;;  %v4865_v42 = vpop.f32.mrb[5].mxu0 }
 0x1c9   :  { %v329_v43 = vpop.f32.mrb[6].mxu0 }
 0x1ca   :  { %v5841_v44 = vadd.f32 %v4472_v39, %v329_v43  ;;  %v4866_v45 = vpop.f32.mrb[7].mxu0  ;;  %4871 = vmatprep.mubr.msk.f32.mxu1 %vm344_vm5, %v5839_v41  ;;  %v254_v39 = vld [vmem:[%s6845_s6 + $0x30] sm:$0xff]  ;;  %v253_v43 = vld [vmem:[%s6845_s6 + $0x28] sm:$0xff] }
 0x1cc   :  { %v5341_v46 = vpack.i.bf16 %v5841_v44, %v5839_v41 }
 0x1ce   :  { %5342 = vrot.lane.b32.xlu1 %v5341_v46, %s6791_s10  ;;  %5332 = vrot.lane.b32.xlu0 %v5341_v46, %s6811_s9  ;;  %s6796_s10 = smov 64  }
 0x1d2   :  { %5347 = vrot.lane.b32.xlu1 %v5341_v46, %s6789_s11  ;;  %5337 = vrot.lane.b32.xlu0 %v5341_v46, %s6797_s4  ;;  %s6795_s11 = smov 48   ;;  %s6803_s4 = smov 16  }
 0x1d6   :  { %430 = vrot.lane.b32.xlu1 %v5841_v44, %s6809_s7  ;;  %428 = vrot.lane.b32.xlu0 %v5839_v41, %s6809_s7 }
 0x1da   :  { %521 = vrot.lane.b32.xlu1 %v5841_v44, %s6807_s8  ;;  %519 = vrot.lane.b32.xlu0 %v5839_v41, %s6807_s8 }
 0x1de   :  { %612 = vrot.lane.b32.xlu1 %v5841_v44, %s6805_s12  ;;  %610 = vrot.lane.b32.xlu0 %v5839_v41, %s6805_s12 }
 0x240   :  { %v5343_v47 = vpop.permute.xlu1 %5342  ;;  %v5333_v48 = vpop.permute.xlu0 %5332 }
 0x241   :  { %v5345_v49 = vunpack.i.h.bf16 %v5343_v47  ;;  %v5344_v50 = vunpack.i.l.bf16 %v5343_v47  ;;  %v5335_v51 = vunpack.i.h.bf16 %v5333_v48  ;;  %v5334_v52 = vunpack.i.l.bf16 %v5333_v48 }
 0x243   :  { %v5219_v54 = vpack.c.bf16 %v5335_v51, %v5334_v52  ;;  %v5231_v55 = vpack.c.bf16 %v5345_v49, %v5344_v50  ;;  %v255_v50 = vld [vmem:[%s6845_s6 + $0x38] sm:$0xff] }
 0x244   :  { %v5348_v56 = vpop.permute.xlu1 %5347  ;;  %v5338_v57 = vpop.permute.xlu0 %5337 }
 0x245   :  { %v5350_v58 = vunpack.i.h.bf16 %v5348_v56  ;;  %v5349_v59 = vunpack.i.l.bf16 %v5348_v56  ;;  %v5340_v60 = vunpack.i.h.bf16 %v5338_v57  ;;  %v5339_v61 = vunpack.i.l.bf16 %v5338_v57  ;;  %5221 = vmatprep.subr.msk.bf16.mxu1 %vm5865_vm6, %v5219_v54 }
 0x246   :  { %5224 = vmatpush3.bf16.xpose.msk.msra.mxu1 %vm5865_vm6, %v5219_v54 }
 0x247   :  { %v5225_v62 = vpack.c.bf16 %v5340_v60, %v5339_v61  ;;  %5233 = vmatprep.subr.msk.bf16.mxu1 %vm5865_vm6, %v5231_v55  ;;  %v5237_v1 = vpack.c.bf16 %v5350_v58, %v5349_v59 }
 0x248   :  { %v429_v63 = vpop.permute.xlu0 %428  ;;  %v431_v2 = vpop.permute.xlu1 %430 }
 0x249   :  { %5227 = vmatprep.subr.msk.bf16.mxu0 %vm5865_vm6, %v5225_v62  ;;  %4878 = vmatprep.mubr.msk.f32.mxu0 %vm344_vm5, %v429_v63 }
 0x24a   :  { %5230 = vmatpush3.bf16.xpose.msk.msra.mxu0 %vm5865_vm6, %v5225_v62 }
 0x24b   :  { %5239 = vmatprep.subr.msk.bf16.mxu0 %vm5865_vm6, %v5237_v1 }
 0x24c   :  { %v520_v3 = vpop.permute.xlu0 %519  ;;  %v522_v5 = vpop.permute.xlu1 %521 }
 0x24d   :  { %4872 = vmatmul.mubr.msk.f32.vlgmr.msra.gmra.mrb[4].mxu1 %vm344_vm5, %v5841_v44 }
 0x24e   :  { %5236 = vmatpush3.bf16.xpose.msk.msra.mxu1 %vm5865_vm6, %v5231_v55  ;;  %4885 = vmatprep.mubr.msk.f32.mxu1 %vm344_vm5, %v520_v3  ;;  %v5939_v55 = vpack.c.bf16 %v5841_v44, %v5839_v41 }
 0x24f   :  { %4895 = vmatprep.subr.bf16.mxu1 %v5602_v0 }
 0x250   :  { %v611_v4 = vpop.permute.xlu0 %610  ;;  %v613_v6 = vpop.permute.xlu1 %612 }
 0x251   :  { %4879 = vmatmul.mubr.msk.f32.vlgmr.msra.gmra.mrb[8].mxu0 %vm344_vm5, %v431_v2 }
 0x252   :  { %5242 = vmatpush3.bf16.xpose.msk.msra.mxu0 %vm5865_vm6, %v5237_v1  ;;  %4892 = vmatprep.mubr.msk.f32.mxu0 %vm344_vm5, %v611_v4 }
 0x253   :  { %4901 = vmatprep.subr.bf16.mxu0 %v5602_v0 }
 0x255   :  { %4886 = vmatmul.mubr.msk.f32.vlgmr.msra.gmra.mrb[6].mxu1 %vm344_vm5, %v522_v5 }
 0x256   :  { %4897 = vmatprep.mubr.msk.bf16.mxu1 %vm5603_vm1, %v5602_v0 }
 0x259   :  { %4893 = vmatmul.mubr.msk.f32.vlgmr.msra.gmra.mrb[10].mxu0 %vm344_vm5, %v613_v6 }
 0x25a   :  { %4903 = vmatprep.mubr.msk.bf16.mxu0 %vm5603_vm1, %v5602_v0 }
 0x320   :  { %v4873_v7 = vpop.f32.mrb[4].mxu1 }
 0x321   :  { %v702_v9 = vmul.f32 0.35355338, %v4873_v7  ;;  %v419_v10 = vpop.f32.mrb[5].mxu1 }
 0x322   :  { %v701_v14 = vmul.f32 0.35355338, %v419_v10 }
 0x323   :  { %v710_v11 = vadd.f32 %v702_v9, %v249_v8 }
 0x324   :  { %v4880_v12 = vpop.f32.mrb[8].mxu0  ;;  %v709_v26 = vadd.f32 %v701_v14, %v248_v20 }
 0x325   :  { %v704_v15 = vmul.f32 0.35355338, %v4880_v12  ;;  %v510_v17 = vpop.f32.mrb[9].mxu0  ;;  %v720_v19 = vsel %vm114_vm2, %v710_v11, -inf }
 0x326   :  { %721 = vmax.xlane.f32.xlu1 %v720_v19  ;;  %v703_v23 = vmul.f32 0.35355338, %v510_v17  ;;  %v717_v36 = vsel %vm114_vm2, %v709_v26, -inf }
 0x327   :  { %v712_v21 = vadd.f32 %v704_v15, %v251_v13 }
 0x328   :  { %v4887_v22 = vpop.f32.mrb[6].mxu1  ;;  %v711_v37 = vadd.f32 %v703_v23, %v250_v29 }
 0x329   :  { %v601_v24 = vpop.f32.mrb[7].mxu1  ;;  %v726_v25 = vsel %vm114_vm2, %v712_v21, -inf  ;;  %v706_v32 = vmul.f32 0.35355338, %v4887_v22 }
 0x32a   :  { %v705_v28 = vmul.f32 0.35355338, %v601_v24  ;;  %727 = vmax.xlane.f32.xlu0 %v726_v25  ;;  %v723_v47 = vsel %vm114_vm2, %v711_v37, -inf }
 0x32b   :  { %v714_v48 = vadd.f32 %v706_v32, %v253_v43 }
 0x32c   :  { %v4894_v30 = vpop.f32.mrb[10].mxu0  ;;  %v5916_v31 = vadd.f32 %v705_v28, %v252_v27 }
 0x32d   :  { %v692_v33 = vpop.f32.mrb[11].mxu0  ;;  %v708_v46 = vmul.f32 0.35355338, %v4894_v30  ;;  %v732_v51 = vsel %vm114_vm2, %v714_v48, -inf }
 0x32e   :  { %v707_v40 = vmul.f32 0.35355338, %v692_v33  ;;  %718 = vmax.xlane.f32.xlu0 %v717_v36  ;;  %v729_v42 = vsel %vm114_vm2, %v5916_v31, -inf }
 0x32f   :  { %730 = vmax.xlane.f32.xlu1 %v729_v42  ;;  %v716_v52 = vadd.f32 %v708_v46, %v255_v50 }
 0x330   :  { %v5927_v45 = vadd.f32 %v707_v40, %v254_v39 }
 0x331   :  { %v738_v54 = vsel %vm114_vm2, %v716_v52, -inf }
 0x332   :  { %724 = vmax.xlane.f32.xlu0 %v723_v47  ;;  %v735_v49 = vsel %vm114_vm2, %v5927_v45, -inf }
 0x333   :  { %736 = vmax.xlane.f32.xlu1 %v735_v49 }
 0x336   :  { %733 = vmax.xlane.f32.xlu0 %v732_v51 }
 0x33a   :  { %739 = vmax.xlane.f32.xlu0 %v738_v54 }
 0x344   :  { %808 = vrot.lane.b32.xlu1 %v5939_v55, %s6796_s10  ;;  %s6801_s10 = smov 24  }
 0x3b3   :  { %v722_v56 = vpop.xlane.xlu1 %721 }
 0x3b4   :  { %v742_v57 = vsub.f32 %v710_v11, %v722_v56 }
 0x3b6   :  { %v751_v58 = vmul.f32 1.442695, %v742_v57 }
 0x3b7   :  { %v728_v59 = vpop.xlane.xlu0 %727 }
 0x3b8   :  { %5434 = vpow2.f32 %v751_v58  ;;  %v744_v60 = vsub.f32 %v712_v21, %v728_v59 }
 0x3ba   :  { %v755_v61 = vmul.f32 1.442695, %v744_v60 }
 0x3bb   :  { %v719_v62 = vpop.xlane.xlu0 %718 }
 0x3bc   :  { %5436 = vpow2.f32 %v755_v61  ;;  %v741_v63 = vsub.f32 %v709_v26, %v719_v62  ;;  %v731_v1 = vpop.xlane.xlu1 %730 }
 0x3bd   :  { %v745_v26 = vsub.f32 %v5916_v31, %v731_v1 }
 0x3be   :  { %v749_v2 = vmul.f32 1.442695, %v741_v63 }
 0x3bf   :  { %v725_v3 = vpop.xlane.xlu0 %724  ;;  %v757_v27 = vmul.f32 1.442695, %v745_v26 }
 0x3c0   :  { %5438 = vpow2.f32 %v749_v2  ;;  %v743_v41 = vsub.f32 %v711_v37, %v725_v3  ;;  %v737_v44 = vpop.xlane.xlu1 %736 }
 0x3c1   :  { %v747_v28 = vsub.f32 %v5927_v45, %v737_v44 }
 0x3c2   :  { %v5435_v4 = vpop.eup %5434  ;;  %v753_v5 = vmul.f32 1.442695, %v743_v41 }
 0x3c3   :  { %v734_v6 = vpop.xlane.xlu0 %733  ;;  %v768_v7 = vsel %vm114_vm2, %v5435_v4, 0.0  ;;  %v761_v29 = vmul.f32 1.442695, %v747_v28 }
 0x3c4   :  { %5440 = vpow2.f32 %v753_v5  ;;  %v746_v8 = vsub.f32 %v714_v48, %v734_v6  ;;  %769 = vadd.xlane.f32.xlu0 %v768_v7  ;;  %v809_v9 = vpop.permute.xlu1 %808 }
 0x3c5   :  { %4896 = vmatpush3.bf16.msra.mxu1 %v809_v9 }
 0x3c6   :  { %v5437_v10 = vpop.eup %5436  ;;  %v759_v11 = vmul.f32 1.442695, %v746_v8  ;;  %4907 = vmatprep.subr.bf16.mxu1 %v5602_v0 }
 0x3c7   :  { %v740_v12 = vpop.xlane.xlu0 %739  ;;  %v774_v13 = vsel %vm114_vm2, %v5437_v10, 0.0 }
 0x3c8   :  { %5442 = vpow2.f32 %v759_v11  ;;  %v748_v14 = vsub.f32 %v716_v52, %v740_v12  ;;  %775 = vadd.xlane.f32.xlu0 %v774_v13 }
 0x3ca   :  { %v5439_v15 = vpop.eup %5438  ;;  %v763_v17 = vmul.f32 1.442695, %v748_v14 }
 0x3cb   :  { %v765_v19 = vsel %vm114_vm2, %v5439_v15, 0.0 }
 0x3cc   :  { %5444 = vpow2.f32 %v763_v17  ;;  %766 = vadd.xlane.f32.xlu1 %v765_v19 }
 0x3cd   :  { %5446 = vpow2.f32 %v757_v27 }
 0x3ce   :  { %v5441_v20 = vpop.eup %5440  ;;  %5448 = vpow2.f32 %v761_v29 }
 0x3cf   :  { %v771_v21 = vsel %vm114_vm2, %v5441_v20, 0.0 }
 0x3d0   :  { %772 = vadd.xlane.f32.xlu1 %v771_v21 }
 0x3d2   :  { %v5948_v22 = vpop.eup %5442 }
 0x3d3   :  { %v780_v23 = vsel %vm114_vm2, %v5948_v22, 0.0 }
 0x3d4   :  { %781 = vadd.xlane.f32.xlu0 %v780_v23 }
 0x3d6   :  { %v5952_v24 = vpop.eup %5444 }
 0x3d7   :  { %v786_v25 = vsel %vm114_vm2, %v5952_v24, 0.0  ;;  %v5447_v30 = vpop.eup %5446 }
 0x3d8   :  { %787 = vadd.xlane.f32.xlu0 %v786_v25  ;;  %v777_v32 = vsel %vm114_vm2, %v5447_v30, 0.0  ;;  %v5449_v33 = vpop.eup %5448 }
 0x3d9   :  { %v783_v36 = vsel %vm114_vm2, %v5449_v33, 0.0 }
 0x3e1   :  { %917 = vrot.lane.b32.xlu1 %v5939_v55, %s6795_s11  ;;  %s6848_s11 = smov 88  }
 0x3ee   :  { %858 = vrot.lane.b32.xlu0 %v5939_v55, %s6794_s29  ;;  %s6846_s29 = sld [smem:[#allocation15_spill]] }
 0x3f4   :  { %v5406_v14 = vld [vmem:[%s6846_s29] sm:$0xff]  }
 0x405   :  { %778 = vadd.xlane.f32.xlu1 %v777_v32 }
 0x409   :  { %784 = vadd.xlane.f32.xlu1 %v783_v36 }
 0x41a   :  { %976 = vrot.lane.b32.xlu1 %v5939_v55, %s6793_s2  ;;  %s6851_s2 = smov 8  }
 0x451   :  { %v770_v37 = vpop.xlane.xlu0 %769 }
 0x452   :  { %5450 = vrcp.f32 %v770_v37 }
 0x455   :  { %v776_v31 = vpop.xlane.xlu0 %775 }
 0x459   :  { %v767_v39 = vpop.xlane.xlu1 %766 }
 0x45a   :  { %5452 = vrcp.f32 %v767_v39 }
 0x45b   :  { %5454 = vrcp.f32 %v776_v31  ;;  %v164_v31 = vadd.f32 %v5811_v18, %v5809_v16  ;;  %v5410_v16 = vld [vmem:[%s6763_s14] sm:$0xff]   ;;  %v5411_v18 = vld [vmem:[%s6763_s14 + $0x8] sm:$0xff]  }
 0x45c   :  { %v5451_v43 = vpop.eup %5450 }
 0x45d   :  { %v773_v40 = vpop.xlane.xlu1 %772  ;;  %v798_v46 = vmul.f32 %v5451_v43, %v5435_v4 }
 0x45e   :  { %5456 = vrcp.f32 %v773_v40  ;;  %v5409_v40 = vld [vmem:[%s6847_s3 + $0x8] sm:$0xff]  }
 0x461   :  { %v782_v42 = vpop.xlane.xlu0 %781  ;;  %v918_v55 = vpop.permute.xlu1 %917 }
 0x462   :  { %5458 = vrcp.f32 %v782_v42  ;;  %v171_v42 = vld [vmem:[%s6840_s30 + $0x10] sm:$0xf]  ;;  %s6853_s30 = smov 24  }
 0x463   :  { %v174_v43 = vadd.f32 %v171_v42, %v164_v31  ;;  %v4501_v31 = vld [vmem:[%s6767_s25] ss:$0 sm:$0xff] }
 0x464   :  { %v5453_v45 = vpop.eup %5452 }
 0x465   :  { %v797_v47 = vmul.f32 %v5453_v45, %v5439_v15  ;;  %v788_v48 = vpop.xlane.xlu0 %787  ;;  %v5455_v49 = vpop.eup %5454  ;;  %v5407_v15 = vld [vmem:[%s6846_s29 + $0x8] sm:$0xff]   ;;  %v6018_v45 = vpack.c.bf16 %v174_v43, %v174_v43 }
 0x466   :  { %v800_v52 = vmul.f32 %v5455_v49, %v5437_v10 }
 0x467   :  { %v805_v50 = vpack.c.bf16 %v798_v46, %v797_v47  ;;  %v4496_v46 = vld [vmem:[%s6764_s13] ss:$0 sm:$0xff] }
 0x468   :  { %v5457_v51 = vpop.eup %5456 }
 0x469   :  { %v799_v54 = vmul.f32 %v5457_v51, %v5441_v20  ;;  %v859_v56 = vpop.permute.xlu0 %858  ;;  %4898 = vmatmul.mubr.msk.bf16.vlgmr.msra.gmra.mrb[8].mxu1 %vm114_vm2, %v805_v50 }
 0x46a   :  { %4908 = vmatpush3.bf16.msra.mxu1 %v918_v55  ;;  %4902 = vmatpush3.bf16.msra.mxu0 %v859_v56 }
 0x46b   :  { %v857_v57 = vpack.c.bf16 %v800_v52, %v799_v54  ;;  %4913 = vmatprep.subr.bf16.mxu0 %v5602_v0  ;;  %4909 = vmatprep.mubr.msk.bf16.mxu1 %vm5603_vm1, %v5602_v0 }
 0x46c   :  { %4919 = vmatprep.subr.bf16.mxu1 %v5602_v0  ;;  %v5459_v61 = vpop.eup %5458 }
 0x46d   :  { %4904 = vmatmul.mubr.msk.bf16.vlgmr.msra.gmra.mrb[12].mxu0 %vm114_vm2, %v857_v57  ;;  %v802_v63 = vmul.f32 %v5459_v61, %v5948_v22  ;;  %v5408_v22 = vld [vmem:[%s6847_s3] sm:$0xff]  }
 0x46e   :  { %4915 = vmatprep.mubr.msk.bf16.mxu0 %vm5603_vm1, %v5602_v0  ;;  %v4506_v57 = vld [vmem:[%s6765_s17] ss:$0 sm:$0xff] }
 0x492   :  { %v779_v58 = vpop.xlane.xlu1 %778 }
 0x493   :  { %5460 = vrcp.f32 %v779_v58 }
 0x494   :  { %5462 = vrcp.f32 %v788_v48 }
 0x496   :  { %v785_v59 = vpop.xlane.xlu1 %784 }
 0x497   :  { %5464 = vrcp.f32 %v785_v59 }
 0x49a   :  { %v977_v60 = vpop.permute.xlu1 %976 }
 0x49b   :  { %4914 = vmatpush3.bf16.msra.mxu0 %v977_v60 }
 0x49c   :  { %4927 = vmatprep.subr.bf16.mxu0 %v5602_v0 }
 0x49d   :  { %v5461_v62 = vpop.eup %5460 }
 0x49e   :  { %v801_v1 = vmul.f32 %v5461_v62, %v5447_v30  ;;  %v5463_v2 = vpop.eup %5462 }
 0x49f   :  { %v804_v44 = vmul.f32 %v5463_v2, %v5952_v24 }
 0x4a0   :  { %v916_v3 = vpack.c.bf16 %v802_v63, %v801_v1 }
 0x4a1   :  { %v5465_v41 = vpop.eup %5464 }
 0x4a2   :  { %v803_v4 = vmul.f32 %v5465_v41, %v5449_v33  ;;  %4910 = vmatmul.mubr.msk.bf16.vlgmr.msra.gmra.mrb[12].mxu1 %vm114_vm2, %v916_v3 }
 0x4a3   :  { %4923 = vmatprep.mubr.msk.bf16.mxu1 %vm5603_vm1, %v5602_v0  ;;  %4920 = vmatpush3.bf16.msra.mxu1 %v5406_v14 }
 0x4a4   :  { %v975_v5 = vpack.c.bf16 %v804_v44, %v803_v4  ;;  %4921 = vmatprep.subr.bf16.mxu1 %v5602_v0 }
 0x4a6   :  { %4916 = vmatmul.mubr.msk.bf16.vlgmr.msra.gmra.mrb[16].mxu0 %vm114_vm2, %v975_v5 }
 0x4a7   :  { %4931 = vmatprep.mubr.msk.bf16.mxu0 %vm5603_vm1, %v5602_v0  ;;  %4922 = vmatpush3.bf16.msra.mxu1 %v5407_v15 }
 0x4a8   :  { %4935 = vmatprep.subr.bf16.mxu1 %v5408_v22  ;;  %4928 = vmatpush3.bf16.msra.mxu0 %v5410_v16 }
 0x4a9   :  { %4929 = vmatprep.subr.bf16.mxu0 %v5602_v0 }
 0x4ac   :  { %4930 = vmatpush3.bf16.msra.mxu0 %v5411_v18 }
 0x53c   :  { %v848_v6 = vpop.f32.mrb[8].mxu1 }
 0x53d   :  { %855 = vst.msk [vmem:[#allocation2] sm:$0xff] %vm344_vm5, %v848_v6  ;;  %v4899_v7 = vpop.f32.mrb[9].mxu1 }
 0x53e   :  { %v851_v8 = vpop.f32.mrb[10].mxu1 }
 0x53f   :  { %856 = vst.msk [vmem:[#allocation2 + $0x8] sm:$0xff] %vm344_vm5, %v851_v8  ;;  %v4900_v9 = vpop.f32.mrb[11].mxu1 }
 0x540   :  { %v898_v10 = vpop.f32.mrb[12].mxu0 }
 0x541   :  { %907 = vrot.lane.b32.xlu0 %v898_v10, %s6799_s16  ;;  %v4905_v11 = vpop.f32.mrb[13].mxu0 }
 0x542   :  { %v901_v12 = vpop.f32.mrb[14].mxu0 }
 0x543   :  { %909 = vrot.lane.b32.xlu1 %v901_v12, %s6799_s16  ;;  %v4906_v13 = vpop.f32.mrb[15].mxu0  ;;  %s6849_s16 = smov 80  }
 0x575   :  { %v957_v17 = vpop.f32.mrb[12].mxu1 }
 0x576   :  { %966 = vrot.lane.b32.xlu0 %v957_v17, %s6803_s4  ;;  %v4911_v19 = vpop.f32.mrb[13].mxu1 }
 0x577   :  { %v960_v20 = vpop.f32.mrb[14].mxu1 }
 0x578   :  { %968 = vrot.lane.b32.xlu1 %v960_v20, %s6803_s4  ;;  %v4912_v21 = vpop.f32.mrb[15].mxu1  ;;  %s6850_s4 = smov 72  }
 0x579   :  { %v1016_v23 = vpop.f32.mrb[16].mxu0 }
 0x57a   :  { %1025 = vrot.lane.b32.xlu0 %v1016_v23, %s6801_s10  ;;  %v4917_v24 = vpop.f32.mrb[17].mxu0 }
 0x57b   :  { %v1019_v25 = vpop.f32.mrb[18].mxu0 }
 0x57c   :  { %1027 = vrot.lane.b32.xlu1 %v1019_v25, %s6801_s10  ;;  %v4918_v26 = vpop.f32.mrb[19].mxu0 }
 0x5b3   :  { %v908_v27 = vpop.permute.xlu0 %907 }
 0x5b4   :  { %914 = vst.msk [vmem:[#allocation2] sm:$0xff] %vm913_vm7, %v908_v27 }
 0x5b5   :  { %v910_v28 = vpop.permute.xlu1 %909 }
 0x5b6   :  { %915 = vst.msk [vmem:[#allocation2 + $0x8] sm:$0xff] %vm913_vm7, %v910_v28 }
 0x5e8   :  { %v967_v29 = vpop.permute.xlu0 %966 }
 0x5e9   :  { %973 = vst.msk [vmem:[#allocation2] sm:$0xff] %vm972_vm8, %v967_v29 }
 0x5ea   :  { %v969_v30 = vpop.permute.xlu1 %968 }
 0x5eb   :  { %974 = vst.msk [vmem:[#allocation2 + $0x8] sm:$0xff] %vm972_vm8, %v969_v30 }
 0x5ec   :  { %v1026_v32 = vpop.permute.xlu0 %1025 }
 0x5ed   :  { %1032 = vst.msk [vmem:[#allocation2] sm:$0xff] %vm1031_vm9, %v1026_v32  ;;  %v4500_v32 = vld [vmem:[%s6766_s24] ss:$0 sm:$0xff] }
 0x5ee   :  { %v1028_v33 = vpop.permute.xlu1 %1027 }
 0x5ef   :  { %1033 = vst.msk [vmem:[#allocation2 + $0x8] sm:$0xff] %vm1031_vm9, %v1028_v33 }
 0x5f4   :  { %v1034_v36 = vld [vmem:[#allocation2] sm:$0xff] }
 0x5f6   :  { %v1035_v37 = vld [vmem:[#allocation2 + $0x8] sm:$0xff] }
 0x5f7   :  { %v1036_v39 = vpack.c.bf16 %v1035_v37, %v1034_v36 }
 0x5f9   :  { %4924 = vmatmul.mubr.msk.bf16.vlgmr.msra.gmra.mrb[16].mxu1 %vm288_vm4, %v1036_v39 }
 0x5fa   :  { %4936 = vmatpush3.bf16.msra.mxu1 %v5408_v22  ;;  %4939 = vmatprep.mubr.msk.bf16.mxu1 %vm288_vm4, %v5833_v38 }
 0x5fb   :  { %4937 = vmatprep.subr.bf16.mxu1 %v5409_v40 }
 0x5fe   :  { %4938 = vmatpush3.bf16.msra.mxu1 %v5409_v40 }
 0x601   :  { %4940 = vmatmul.mubr.msk.bf16.vlgmr.msra.gmra.mrb[20].mxu1 %vm288_vm4, %v6018_v45 }
 0x6cc   :  { %v1092_v47 = vpop.f32.mrb[16].mxu1 }
 0x6cd   :  { %v1093_v48 = vadd.f32 %v4496_v46, %v1092_v47  ;;  %v4925_v49 = vpop.f32.mrb[17].mxu1  ;;  %v4502_v47 = vld [vmem:[%s6768_s15] ss:$0 sm:$0xff] }
 0x6ce   :  { %v1095_v50 = vpop.f32.mrb[18].mxu1 }
 0x6cf   :  { %v1096_v51 = vadd.f32 %v4496_v46, %v1095_v50  ;;  %v4926_v52 = vpop.f32.mrb[19].mxu1  ;;  %v1099_v54 = vadd.f32 %v1093_v48, %v5827_v34 }
 0x6d1   :  { %v1103_v55 = vsel %vm288_vm4, %v1099_v54, 0.0  ;;  %v1100_v56 = vadd.f32 %v1096_v51, %v5829_v35 }
 0x6d2   :  { %1104 = vadd.xlane.f32.xlu0 %v1103_v55 }
 0x6d3   :  { %v1106_v58 = vsel %vm288_vm4, %v1100_v56, 0.0 }
 0x6d4   :  { %1107 = vadd.xlane.f32.xlu1 %v1106_v58  ;;  %v4941_v59 = vpop.f32.mrb[20].mxu1 }
 0x6d5   :  { %v6039_v60 = vadd.f32 %v4941_v59, %v4506_v57  ;;  %v1279_v61 = vpop.f32.mrb[21].mxu1 }
 0x6d6   :  { %v4942_v62 = vpop.f32.mrb[22].mxu1  ;;  %v1280_v1 = vadd.f32 %v4506_v57, %v1279_v61 }
 0x6d7   :  { %v1282_v63 = vpop.f32.mrb[23].mxu1 }
 0x6d8   :  { %v1283_v34 = vadd.f32 %v4506_v57, %v1282_v63 }
 0x6da   :  { %v6041_v2 = vpack.c.bf16 %v1283_v34, %v1280_v1  ;;  %v5351_v3 = vpack.i.bf16 %v1283_v34, %v1280_v1  ;;  %v257_v34 = vld [vmem:[%s6769_s5 + $0x8] sm:$0xff] }
 0x6dc   :  { %5245 = vmatprep.subr.msk.bf16.mxu0 %vm5865_vm6, %v6041_v2 }
 0x6e5   :  { %5352 = vrot.lane.b32.xlu1 %v5351_v3, %s6809_s7 }
 0x6e9   :  { %5357 = vrot.lane.b32.xlu1 %v5351_v3, %s6807_s8 }
 0x6ed   :  { %5362 = vrot.lane.b32.xlu1 %v5351_v3, %s6805_s12 }
 0x75f   :  { %v1105_v35 = vpop.xlane.xlu0 %1104 }
 0x760   :  { %v1110_v41 = vmul.f32 0.03125, %v1105_v35 }
 0x761   :  { %v1108_v44 = vpop.xlane.xlu1 %1107 }
 0x762   :  { %v1112_v4 = vsub.f32 %v1099_v54, %v1110_v41  ;;  %v1111_v5 = vmul.f32 0.03125, %v1108_v44  ;;  %v256_v41 = vld [vmem:[%s6769_s5] sm:$0xff] }
 0x764   :  { %v1113_v6 = vsub.f32 %v1100_v56, %v1111_v5  ;;  %v1114_v7 = vmul.f32 %v1112_v4, %v1112_v4 }
 0x765   :  { %v5353_v8 = vpop.permute.xlu1 %5352 }
 0x766   :  { %v5355_v9 = vunpack.i.h.bf16 %v5353_v8  ;;  %v5354_v10 = vunpack.i.l.bf16 %v5353_v8  ;;  %v1116_v11 = vsel %vm288_vm4, %v1114_v7, 0.0  ;;  %v1115_v12 = vmul.f32 %v1113_v6, %v1113_v6 }
 0x767   :  { %1117 = vadd.xlane.f32.xlu0 %v1116_v11 }
 0x768   :  { %v5249_v13 = vpack.c.bf16 %v5355_v9, %v5354_v10  ;;  %v1119_v14 = vsel %vm288_vm4, %v1115_v12, 0.0  ;;  %v259_v9 = vld [vmem:[%s6769_s5 + $0x18] sm:$0xff] }
 0x769   :  { %v5358_v15 = vpop.permute.xlu1 %5357 }
 0x76a   :  { %5251 = vmatprep.subr.msk.bf16.mxu1 %vm5865_vm6, %v5249_v13  ;;  %v5360_v16 = vunpack.i.h.bf16 %v5358_v15  ;;  %v5359_v18 = vunpack.i.l.bf16 %v5358_v15 }
 0x76b   :  { %1120 = vadd.xlane.f32.xlu0 %v1119_v14  ;;  %5254 = vmatpush3.bf16.xpose.msk.msra.mxu1 %vm5865_vm6, %v5249_v13  ;;  %v258_v13 = vld [vmem:[%s6769_s5 + $0x10] sm:$0xff] }
 0x76c   :  { %v5255_v46 = vpack.c.bf16 %v5360_v16, %v5359_v18 }
 0x76d   :  { %v5363_v20 = vpop.permute.xlu1 %5362 }
 0x76e   :  { %v5365_v23 = vunpack.i.h.bf16 %v5363_v20  ;;  %v5364_v24 = vunpack.i.l.bf16 %v5363_v20  ;;  %v261_v20 = vld [vmem:[%s6769_s5 + $0x28] sm:$0xff] }
 0x770   :  { %v5261_v28 = vpack.c.bf16 %v5365_v23, %v5364_v24  ;;  %v260_v24 = vld [vmem:[%s6769_s5 + $0x20] sm:$0xff] }
 0x781   :  { %1396 = vrot.lane.b32.xlu0 %v6039_v60, %s6809_s7 }
 0x7f4   :  { %v1118_v17 = vpop.xlane.xlu0 %1117 }
 0x7f5   :  { %v1122_v19 = vmul.f32 0.03125, %v1118_v17 }
 0x7f7   :  { %v1124_v21 = vadd.f32 1e-05, %v1122_v19 }
 0x7f8   :  { %v1121_v22 = vpop.xlane.xlu0 %1120 }
 0x7f9   :  { %5466 = vrsqrt.f32 %v1124_v21  ;;  %v1123_v25 = vmul.f32 0.03125, %v1121_v22 }
 0x7fb   :  { %v1125_v26 = vadd.f32 1e-05, %v1123_v25 }
 0x7fc   :  { %v1397_v27 = vpop.permute.xlu0 %1396 }
 0x7fd   :  { %5468 = vrsqrt.f32 %v1125_v26  ;;  %4956 = vmatprep.subr.msk.mxu1 %vm344_vm5, %v1397_v27 }
 0x7fe   :  { %4957 = vmatpush3.xpose.msk.msra.mxu1 %vm344_vm5, %v1397_v27 }
 0x7ff   :  { %5263 = vmatprep.subr.msk.bf16.mxu1 %vm5865_vm6, %v5261_v28 }
 0x803   :  { %v5467_v29 = vpop.eup %5466 }
 0x804   :  { %v1128_v30 = vmul.f32 %v5467_v29, %v1112_v4  ;;  %v263_v29 = vld [vmem:[%s6769_s5 + $0x38] sm:$0xff] }
 0x806   :  { %v1136_v36 = vmul.f32 %v4500_v32, %v1128_v30 }
 0x807   :  { %v5469_v33 = vpop.eup %5468 }
 0x808   :  { %v1129_v37 = vmul.f32 %v5469_v33, %v1113_v6  ;;  %v6067_v40 = vadd.f32 %v4501_v31, %v1136_v36  ;;  %v262_v36 = vld [vmem:[%s6769_s5 + $0x30] sm:$0xff] }
 0x80a   :  { %v1137_v39 = vmul.f32 %v4500_v32, %v1129_v37 }
 0x80c   :  { %v6069_v42 = vadd.f32 %v4501_v31, %v1137_v39 }
 0x80e   :  { %v1150_v43 = vpack.c.bf16 %v6069_v42, %v6067_v40 }
 0x810   :  { %4932 = vmatmul.mubr.msk.bf16.vlgmr.msra.gmra.mrb[20].mxu0 %vm288_vm4, %v1150_v43 }
 0x811   :  { %5248 = vmatpush3.bf16.xpose.msk.msra.mxu0 %vm5865_vm6, %v6041_v2 }
 0x812   :  { %4947 = vmatprep.subr.msk.mxu0 %vm344_vm5, %v6039_v60 }
 0x819   :  { %4948 = vmatpush3.xpose.msk.msra.mxu0 %vm344_vm5, %v6039_v60 }
 0x81a   :  { %5257 = vmatprep.subr.msk.bf16.mxu0 %vm5865_vm6, %v5255_v46 }
 0x8e3   :  { %v1207_v48 = vpop.f32.mrb[20].mxu0 }
 0x8e4   :  { %v1208_v49 = vadd.f32 %v4502_v47, %v1207_v48  ;;  %v4933_v50 = vpop.f32.mrb[21].mxu0 }
 0x8e5   :  { %v1210_v51 = vpop.f32.mrb[22].mxu0 }
 0x8e6   :  { %v1211_v52 = vadd.f32 %v4502_v47, %v1210_v51  ;;  %v4934_v54 = vpop.f32.mrb[23].mxu0  ;;  %4949 = vmatprep.mubr.msk.f32.mxu0 %vm344_vm5, %v1208_v49  ;;  %1388 = vrot.lane.b32.xlu0 %v1208_v49, %s6809_s7 }
 0x8e8   :  { %1390 = vrot.lane.b32.xlu1 %v1211_v52, %s6809_s7  ;;  %4950 = vmatmul.mubr.msk.f32.vlgmr.msra.gmra.mrb[24].mxu0 %vm344_vm5, %v1211_v52  ;;  %s6852_s7 = smov 16  }
 0x8e9   :  { %5260 = vmatpush3.bf16.xpose.msk.msra.mxu0 %vm5865_vm6, %v5255_v46  ;;  %v6154_v46 = vpack.c.bf16 %v6039_v60, %v6039_v60 }
 0x8ea   :  { %1491 = vrot.lane.b32.xlu0 %v6039_v60, %s6807_s8 }
 0x8ec   :  { %1586 = vrot.lane.b32.xlu1 %v6039_v60, %s6805_s12 }
 0x8ee   :  { %1483 = vrot.lane.b32.xlu0 %v1208_v49, %s6807_s8 }
 0x8f0   :  { %1485 = vrot.lane.b32.xlu1 %v1211_v52, %s6807_s8  ;;  %s6858_s8 = smov 64  }
 0x8f2   :  { %1578 = vrot.lane.b32.xlu0 %v1208_v49, %s6805_s12 }
 0x8f4   :  { %1580 = vrot.lane.b32.xlu1 %v1211_v52, %s6805_s12  ;;  %s6854_s12 = smov 96  }
 0x958   :  { %v1389_v55 = vpop.permute.xlu0 %1388 }
 0x959   :  { %4958 = vmatprep.mubr.msk.f32.mxu1 %vm344_vm5, %v1389_v55 }
 0x95a   :  { %v1391_v56 = vpop.permute.xlu1 %1390 }
 0x95b   :  { %4959 = vmatmul.mubr.msk.f32.vlgmr.msra.gmra.mrb[24].mxu1 %vm344_vm5, %v1391_v56 }
 0x95c   :  { %5266 = vmatpush3.bf16.xpose.msk.msra.mxu1 %vm5865_vm6, %v5261_v28  ;;  %v1492_v57 = vpop.permute.xlu0 %1491 }
 0x95d   :  { %4965 = vmatprep.subr.msk.mxu0 %vm344_vm5, %v1492_v57 }
 0x95e   :  { %v1587_v58 = vpop.permute.xlu1 %1586  ;;  %4966 = vmatpush3.xpose.msk.msra.mxu0 %vm344_vm5, %v1492_v57 }
 0x95f   :  { %4974 = vmatprep.subr.msk.mxu1 %vm344_vm5, %v1587_v58  ;;  %4979 = vmatprep.subr.bf16.mxu0 %v5602_v0 }
 0x960   :  { %v1484_v59 = vpop.permute.xlu0 %1483 }
 0x961   :  { %4967 = vmatprep.mubr.msk.f32.mxu0 %vm344_vm5, %v1484_v59 }
 0x962   :  { %v1486_v61 = vpop.permute.xlu1 %1485 }
 0x963   :  { %4968 = vmatmul.mubr.msk.f32.vlgmr.msra.gmra.mrb[26].mxu0 %vm344_vm5, %v1486_v61 }
 0x964   :  { %4975 = vmatpush3.xpose.msk.msra.mxu1 %vm344_vm5, %v1587_v58  ;;  %v1579_v62 = vpop.permute.xlu0 %1578  ;;  %4983 = vmatprep.mubr.msk.bf16.mxu0 %vm5603_vm1, %v5602_v0 }
 0x965   :  { %4976 = vmatprep.mubr.msk.f32.mxu1 %vm344_vm5, %v1579_v62  ;;  %4987 = vmatprep.subr.bf16.mxu1 %v5602_v0 }
 0x966   :  { %v1581_v63 = vpop.permute.xlu1 %1580 }
 0x967   :  { %4977 = vmatmul.mubr.msk.f32.vlgmr.msra.gmra.mrb[26].mxu1 %vm344_vm5, %v1581_v63 }
 0x968   :  { %4991 = vmatprep.mubr.msk.bf16.mxu1 %vm5603_vm1, %v5602_v0 }
 0x9bb   :  { %v4951_v1 = vpop.f32.mrb[24].mxu0 }
 0x9bc   :  { %v1674_v3 = vmul.f32 0.35355338, %v4951_v1  ;;  %v1379_v35 = vpop.f32.mrb[25].mxu0 }
 0x9bd   :  { %v1673_v44 = vmul.f32 0.35355338, %v1379_v35 }
 0x9be   :  { %v1682_v4 = vadd.f32 %v1674_v3, %v257_v34 }
 0x9bf   :  { %v1681_v5 = vadd.f32 %v1673_v44, %v256_v41 }
 0x9c0   :  { %v1693_v6 = vsel %vm1689_vm10, %v1682_v4, -inf }
 0x9c1   :  { %1694 = vmax.xlane.f32.xlu1 %v1693_v6  ;;  %v1690_v7 = vsel %vm1689_vm10, %v1681_v5, -inf }
 0x9c2   :  { %1691 = vmax.xlane.f32.xlu0 %v1690_v7 }
 0xa2e   :  { %v4960_v8 = vpop.f32.mrb[24].mxu1 }
 0xa2f   :  { %v1676_v10 = vmul.f32 0.35355338, %v4960_v8  ;;  %v1474_v11 = vpop.f32.mrb[25].mxu1 }
 0xa30   :  { %v1675_v12 = vmul.f32 0.35355338, %v1474_v11 }
 0xa31   :  { %v1684_v14 = vadd.f32 %v1676_v10, %v259_v9 }
 0xa32   :  { %v1683_v17 = vadd.f32 %v1675_v12, %v258_v13 }
 0xa33   :  { %v1699_v15 = vsel %vm1689_vm10, %v1684_v14, -inf }
 0xa34   :  { %1700 = vmax.xlane.f32.xlu0 %v1699_v15  ;;  %v1696_v23 = vsel %vm1689_vm10, %v1683_v17, -inf }
 0xa36   :  { %v4969_v19 = vpop.f32.mrb[26].mxu0 }
 0xa37   :  { %v1678_v21 = vmul.f32 0.35355338, %v4969_v19  ;;  %v1569_v22 = vpop.f32.mrb[27].mxu0 }
 0xa38   :  { %v1677_v25 = vmul.f32 0.35355338, %v1569_v22  ;;  %1697 = vmax.xlane.f32.xlu0 %v1696_v23 }
 0xa39   :  { %v1686_v26 = vadd.f32 %v1678_v21, %v261_v20 }
 0xa3a   :  { %v4978_v27 = vpop.f32.mrb[26].mxu1  ;;  %v1685_v28 = vadd.f32 %v1677_v25, %v260_v24 }
 0xa3b   :  { %v1680_v30 = vmul.f32 0.35355338, %v4978_v27  ;;  %v1664_v32 = vpop.f32.mrb[27].mxu1  ;;  %v1705_v33 = vsel %vm1689_vm10, %v1686_v26, -inf }
 0xa3c   :  { %v1679_v37 = vmul.f32 0.35355338, %v1664_v32  ;;  %1706 = vmax.xlane.f32.xlu0 %v1705_v33  ;;  %v1702_v31 = vsel %vm1689_vm10, %v1685_v28, -inf }
 0xa3d   :  { %1703 = vmax.xlane.f32.xlu1 %v1702_v31  ;;  %v1688_v39 = vadd.f32 %v1680_v30, %v263_v29 }
 0xa3e   :  { %v1687_v43 = vadd.f32 %v1679_v37, %v262_v36 }
 0xa3f   :  { %v1711_v16 = vsel %vm1689_vm10, %v1688_v39, -inf }
 0xa40   :  { %1712 = vmax.xlane.f32.xlu0 %v1711_v16  ;;  %v1708_v18 = vsel %vm1689_vm10, %v1687_v43, -inf }
 0xa41   :  { %1709 = vmax.xlane.f32.xlu1 %v1708_v18 }
 0xa4e   :  { %v1695_v47 = vpop.xlane.xlu1 %1694 }
 0xa4f   :  { %v1715_v48 = vsub.f32 %v1682_v4, %v1695_v47  ;;  %v1692_v60 = vpop.xlane.xlu0 %1691 }
 0xa50   :  { %v1714_v50 = vsub.f32 %v1681_v5, %v1692_v60 }
 0xa51   :  { %v1724_v49 = vmul.f32 1.442695, %v1715_v48 }
 0xa52   :  { %1783 = vrot.lane.b32.xlu1 %v6041_v2, %s6811_s9  ;;  %v1722_v51 = vmul.f32 1.442695, %v1714_v50 }
 0xa53   :  { %5470 = vpow2.f32 %v1724_v49 }
 0xa54   :  { %5472 = vpow2.f32 %v1722_v51 }
 0xa56   :  { %1839 = vrot.lane.b32.xlu0 %v6041_v2, %s6848_s11  ;;  %1785 = vrot.lane.b32.xlu1 %v6154_v46, %s6811_s9  ;;  %s6860_s9 = smov 56  }
 0xa5a   :  { %1902 = vrot.lane.b32.xlu0 %v6041_v2, %s6849_s16  ;;  %1841 = vrot.lane.b32.xlu1 %v6154_v46, %s6848_s11 }
 0xa5d   :  { %v6166_v52 = vpop.eup %5470 }
 0xa5e   :  { %1965 = vrot.lane.b32.xlu1 %v6041_v2, %s6850_s4  ;;  %v1741_v54 = vsel %vm1689_vm10, %v6166_v52, 0.0  ;;  %v6170_v55 = vpop.eup %5472 }
 0xa5f   :  { %v1738_v56 = vsel %vm1689_vm10, %v6170_v55, 0.0 }
 0xa79   :  { %1742 = vadd.xlane.f32.xlu0 %v1741_v54 }
 0xa82   :  { %1739 = vadd.xlane.f32.xlu1 %v1738_v56 }
 0xac1   :  { %v1701_v2 = vpop.xlane.xlu0 %1700 }
 0xac2   :  { %v1717_v57 = vsub.f32 %v1684_v14, %v1701_v2 }
 0xac4   :  { %v1728_v58 = vmul.f32 1.442695, %v1717_v57 }
 0xac5   :  { %v1698_v59 = vpop.xlane.xlu0 %1697 }
 0xac6   :  { %5474 = vpow2.f32 %v1728_v58  ;;  %v1716_v61 = vsub.f32 %v1683_v17, %v1698_v59 }
 0xac8   :  { %v1726_v62 = vmul.f32 1.442695, %v1716_v61 }
 0xac9   :  { %v1707_v63 = vpop.xlane.xlu0 %1706 }
 0xaca   :  { %5476 = vpow2.f32 %v1726_v62  ;;  %v1719_v1 = vsub.f32 %v1686_v26, %v1707_v63  ;;  %v1704_v34 = vpop.xlane.xlu1 %1703 }
 0xacb   :  { %v1718_v3 = vsub.f32 %v1685_v28, %v1704_v34 }
 0xacc   :  { %v1732_v35 = vmul.f32 1.442695, %v1719_v1 }
 0xacd   :  { %v1730_v41 = vmul.f32 1.442695, %v1718_v3  ;;  %v1713_v44 = vpop.xlane.xlu0 %1712 }
 0xace   :  { %5478 = vpow2.f32 %v1732_v35  ;;  %v1721_v4 = vsub.f32 %v1688_v39, %v1713_v44  ;;  %v1710_v5 = vpop.xlane.xlu1 %1709 }
 0xacf   :  { %5480 = vpow2.f32 %v1730_v41  ;;  %v1720_v6 = vsub.f32 %v1687_v43, %v1710_v5 }
 0xad0   :  { %v6174_v7 = vpop.eup %5474  ;;  %v1736_v8 = vmul.f32 1.442695, %v1721_v4 }
 0xad1   :  { %v1734_v9 = vmul.f32 1.442695, %v1720_v6  ;;  %v1840_v10 = vpop.permute.xlu0 %1839  ;;  %v1747_v11 = vsel %vm1689_vm10, %v6174_v7, 0.0 }
 0xad2   :  { %5482 = vpow2.f32 %v1736_v8  ;;  %1748 = vadd.xlane.f32.xlu0 %v1747_v11  ;;  %4988 = vmatpush3.bf16.msra.mxu1 %v1840_v10  ;;  %v1784_v12 = vpop.permute.xlu1 %1783  ;;  %v5412_v8 = vld [vmem:[%s6770_s18] sm:$0xff]   ;;  %v5413_v11 = vld [vmem:[%s6770_s18 + $0x8] sm:$0xff]  }
 0xad3   :  { %5484 = vpow2.f32 %v1734_v9  ;;  %4980 = vmatpush3.bf16.msra.mxu0 %v1784_v12  ;;  %4989 = vmatprep.subr.bf16.mxu1 %v5602_v0 }
 0xad4   :  { %v5477_v13 = vpop.eup %5476  ;;  %4981 = vmatprep.subr.bf16.mxu0 %v5602_v0 }
 0xad5   :  { %v1744_v14 = vsel %vm1689_vm10, %v5477_v13, 0.0  ;;  %v1903_v29 = vpop.permute.xlu0 %1902 }
 0xad6   :  { %1745 = vadd.xlane.f32.xlu1 %v1744_v14  ;;  %v1786_v15 = vpop.permute.xlu1 %1785 }
 0xad7   :  { %v1793_v17 = vsel %vm1791_vm11, %v1786_v15, 0 }
 0xad8   :  { %v5479_v19 = vpop.eup %5478  ;;  %4982 = vmatpush3.bf16.msra.mxu0 %v1793_v17 }
 0xad9   :  { %v5481_v20 = vpop.eup %5480  ;;  %v1753_v21 = vsel %vm1689_vm10, %v5479_v19, 0.0  ;;  %4995 = vmatprep.subr.bf16.mxu0 %v5602_v0 }
 0xada   :  { %1754 = vadd.xlane.f32.xlu0 %v1753_v21  ;;  %v1842_v22 = vpop.permute.xlu1 %1841  ;;  %v1750_v23 = vsel %vm1689_vm10, %v5481_v20, 0.0 }
 0xadb   :  { %v1848_v24 = vsel %vm1791_vm11, %v1842_v22, 0  ;;  %1751 = vadd.xlane.f32.xlu1 %v1750_v23 }
 0xadc   :  { %v5483_v25 = vpop.eup %5482  ;;  %4990 = vmatpush3.bf16.msra.mxu1 %v1848_v24 }
 0xadd   :  { %v5485_v26 = vpop.eup %5484  ;;  %v1759_v27 = vsel %vm1689_vm10, %v5483_v25, 0.0  ;;  %5003 = vmatprep.subr.bf16.mxu1 %v5602_v0 }
 0xade   :  { %1760 = vadd.xlane.f32.xlu0 %v1759_v27  ;;  %v1756_v28 = vsel %vm1689_vm10, %v5485_v26, 0.0  ;;  %v1966_v30 = vpop.permute.xlu1 %1965 }
 0xadf   :  { %1757 = vadd.xlane.f32.xlu1 %v1756_v28 }
 0xaf0   :  { %1967 = vrot.lane.b32.xlu1 %v6154_v46, %s6850_s4 }
 0xaf4   :  { %1904 = vrot.lane.b32.xlu0 %v6154_v46, %s6849_s16 }
 0xb06   :  { %v1743_v32 = vpop.xlane.xlu0 %1742 }
 0xb07   :  { %5486 = vrcp.f32 %v1743_v32 }
 0xb0f   :  { %v1740_v33 = vpop.xlane.xlu1 %1739 }
 0xb10   :  { %5488 = vrcp.f32 %v1740_v33  ;;  %v4535_v33 = vld [vmem:[%s6771_s19] ss:$0 sm:$0xff] }
 0xb11   :  { %v5487_v36 = vpop.eup %5486 }
 0xb12   :  { %v1771_v31 = vmul.f32 %v5487_v36, %v6166_v52 }
 0xb1a   :  { %v5489_v37 = vpop.eup %5488 }
 0xb1b   :  { %v1770_v39 = vmul.f32 %v5489_v37, %v6170_v55 }
 0xb1d   :  { %v1778_v43 = vpack.c.bf16 %v1771_v31, %v1770_v39 }
 0xb1f   :  { %4984 = vmatmul.mubr.msk.bf16.vlgmr.msra.gmra.mrb[28].mxu0 %vm1689_vm10, %v1778_v43 }
 0xb20   :  { %4996 = vmatpush3.bf16.msra.mxu0 %v1903_v29  ;;  %4999 = vmatprep.mubr.msk.bf16.mxu0 %vm5603_vm1, %v5602_v0 }
 0xb21   :  { %4997 = vmatprep.subr.bf16.mxu0 %v5602_v0 }
 0xb5f   :  { %v1749_v16 = vpop.xlane.xlu0 %1748 }
 0xb60   :  { %5490 = vrcp.f32 %v1749_v16 }
 0xb63   :  { %v1746_v18 = vpop.xlane.xlu1 %1745 }
 0xb64   :  { %5492 = vrcp.f32 %v1746_v18 }
 0xb67   :  { %v1755_v46 = vpop.xlane.xlu0 %1754 }
 0xb68   :  { %5494 = vrcp.f32 %v1755_v46  ;;  %v1752_v47 = vpop.xlane.xlu1 %1751 }
 0xb69   :  { %5496 = vrcp.f32 %v1752_v47 }
 0xb6a   :  { %v5491_v49 = vpop.eup %5490 }
 0xb6b   :  { %v1761_v48 = vpop.xlane.xlu0 %1760  ;;  %v1773_v51 = vmul.f32 %v5491_v49, %v6174_v7 }
 0xb6c   :  { %5498 = vrcp.f32 %v1761_v48  ;;  %v1758_v60 = vpop.xlane.xlu1 %1757 }
 0xb6d   :  { %5500 = vrcp.f32 %v1758_v60 }
 0xb6e   :  { %v5493_v50 = vpop.eup %5492 }
 0xb6f   :  { %v1772_v52 = vmul.f32 %v5493_v50, %v5477_v13  ;;  %v1905_v54 = vpop.permute.xlu0 %1904 }
 0xb70   :  { %v1911_v55 = vsel %vm1791_vm11, %v1905_v54, 0  ;;  %v1968_v61 = vpop.permute.xlu1 %1967 }
 0xb71   :  { %4998 = vmatpush3.bf16.msra.mxu0 %v1911_v55  ;;  %v1838_v56 = vpack.c.bf16 %v1773_v51, %v1772_v52  ;;  %v1974_v3 = vsel %vm1791_vm11, %v1968_v61, 0 }
 0xb72   :  { %v5495_v2 = vpop.eup %5494  ;;  %5011 = vmatprep.subr.bf16.mxu0 %v5602_v0 }
 0xb73   :  { %v5497_v57 = vpop.eup %5496  ;;  %v1775_v58 = vmul.f32 %v5495_v2, %v5479_v19  ;;  %4992 = vmatmul.mubr.msk.bf16.vlgmr.msra.gmra.mrb[28].mxu1 %vm1689_vm10, %v1838_v56 }
 0xb74   :  { %v1774_v59 = vmul.f32 %v5497_v57, %v5481_v20  ;;  %5004 = vmatpush3.bf16.msra.mxu1 %v1966_v30  ;;  %5007 = vmatprep.mubr.msk.bf16.mxu1 %vm5603_vm1, %v5602_v0  ;;  %v5415_v57 = vld [vmem:[%s6772_s20 + $0x8] sm:$0xff]  }
 0xb75   :  { %5005 = vmatprep.subr.bf16.mxu1 %v5602_v0 }
 0xb76   :  { %v5499_v62 = vpop.eup %5498  ;;  %v1901_v63 = vpack.c.bf16 %v1775_v58, %v1774_v59 }
 0xb77   :  { %v5501_v1 = vpop.eup %5500  ;;  %v1777_v34 = vmul.f32 %v5499_v62, %v5483_v25 }
 0xb78   :  { %v1776_v35 = vmul.f32 %v5501_v1, %v5485_v26  ;;  %5006 = vmatpush3.bf16.msra.mxu1 %v1974_v3  ;;  %5000 = vmatmul.mubr.msk.bf16.vlgmr.msra.gmra.mrb[32].mxu0 %vm1689_vm10, %v1901_v63 }
 0xb79   :  { %5015 = vmatprep.mubr.msk.bf16.mxu0 %vm5603_vm1, %v5602_v0  ;;  %5019 = vmatprep.subr.bf16.mxu1 %v5602_v0 }
 0xb7a   :  { %v1964_v41 = vpack.c.bf16 %v1777_v34, %v1776_v35  ;;  %5012 = vmatpush3.bf16.msra.mxu0 %v5412_v8  ;;  %v4541_v35 = vld [vmem:[%s6766_s24 + $0x1] ss:$0 sm:$0xff] }
 0xb7b   :  { %5013 = vmatprep.subr.bf16.mxu0 %v5602_v0 }
 0xb7c   :  { %5008 = vmatmul.mubr.msk.bf16.vlgmr.msra.gmra.mrb[32].mxu1 %vm1689_vm10, %v1964_v41 }
 0xb7d   :  { %5023 = vmatprep.mubr.msk.bf16.mxu1 %vm5603_vm1, %v5602_v0 }
 0xb7e   :  { %5014 = vmatpush3.bf16.msra.mxu0 %v5413_v11  ;;  %v5417_v11 = vld [vmem:[%s6773_s22 + $0x8] sm:$0xff]  }
 0xb7f   :  { %5027 = vmatprep.subr.bf16.mxu0 %v5602_v0 }
 0xbf2   :  { %v1829_v44 = vpop.f32.mrb[28].mxu0 }
 0xbf3   :  { %1836 = vst.msk [vmem:[#allocation2] sm:$0xff] %vm344_vm5, %v1829_v44  ;;  %v4985_v4 = vpop.f32.mrb[29].mxu0 }
 0xbf4   :  { %v1832_v5 = vpop.f32.mrb[30].mxu0 }
 0xbf5   :  { %1837 = vst.msk [vmem:[#allocation2 + $0x8] sm:$0xff] %vm344_vm5, %v1832_v5  ;;  %v4986_v6 = vpop.f32.mrb[31].mxu0  ;;  %v4542_v5 = vld [vmem:[%s6767_s25 + $0x1] ss:$0 sm:$0xff] }
 0xc46   :  { %v1884_v7 = vpop.f32.mrb[28].mxu1 }
 0xc47   :  { %1893 = vrot.lane.b32.xlu0 %v1884_v7, %s6851_s2  ;;  %v4993_v9 = vpop.f32.mrb[29].mxu1 }
 0xc48   :  { %v1887_v10 = vpop.f32.mrb[30].mxu1 }
 0xc49   :  { %1895 = vrot.lane.b32.xlu1 %v1887_v10, %s6851_s2  ;;  %v4994_v12 = vpop.f32.mrb[31].mxu1  ;;  %v5416_v10 = vld [vmem:[%s6773_s22] sm:$0xff]  }
 0xc4a   :  { %v4543_v12 = vld [vmem:[%s6774_s21] ss:$0 sm:$0xff] }
 0xc4b   :  { %v1947_v13 = vpop.f32.mrb[32].mxu0 }
 0xc4c   :  { %1956 = vrot.lane.b32.xlu0 %v1947_v13, %s6852_s7  ;;  %v5001_v14 = vpop.f32.mrb[33].mxu0 }
 0xc4d   :  { %v1950_v15 = vpop.f32.mrb[34].mxu0 }
 0xc4e   :  { %1958 = vrot.lane.b32.xlu1 %v1950_v15, %s6852_s7  ;;  %v5002_v17 = vpop.f32.mrb[35].mxu0 }
 0xc4f   :  { %v2010_v19 = vpop.f32.mrb[32].mxu1 }
 0xc50   :  { %2019 = vrot.lane.b32.xlu0 %v2010_v19, %s6853_s30  ;;  %v5009_v20 = vpop.f32.mrb[33].mxu1 }
 0xc51   :  { %v2013_v21 = vpop.f32.mrb[34].mxu1 }
 0xc52   :  { %2021 = vrot.lane.b32.xlu1 %v2013_v21, %s6853_s30  ;;  %v5010_v22 = vpop.f32.mrb[35].mxu1 }
 0xcb9   :  { %v1894_v23 = vpop.permute.xlu0 %1893 }
 0xcba   :  { %1899 = vst.msk [vmem:[#allocation2] sm:$0xff] %vm913_vm7, %v1894_v23 }
 0xcbb   :  { %v1896_v24 = vpop.permute.xlu1 %1895 }
 0xcbc   :  { %1900 = vst.msk [vmem:[#allocation2 + $0x8] sm:$0xff] %vm913_vm7, %v1896_v24  ;;  %v4547_v24 = vld [vmem:[%s6775_s23] ss:$0 sm:$0xff] }
 0xcbe   :  { %v1957_v25 = vpop.permute.xlu0 %1956 }
 0xcbf   :  { %1962 = vst.msk [vmem:[#allocation2] sm:$0xff] %vm972_vm8, %v1957_v25 }
 0xcc0   :  { %v1959_v26 = vpop.permute.xlu1 %1958 }
 0xcc1   :  { %1963 = vst.msk [vmem:[#allocation2 + $0x8] sm:$0xff] %vm972_vm8, %v1959_v26 }
 0xcc2   :  { %v2020_v27 = vpop.permute.xlu0 %2019 }
 0xcc3   :  { %2025 = vst.msk [vmem:[#allocation2] sm:$0xff] %vm1031_vm9, %v2020_v27 }
 0xcc4   :  { %v2022_v28 = vpop.permute.xlu1 %2021 }
 0xcc5   :  { %2026 = vst.msk [vmem:[#allocation2 + $0x8] sm:$0xff] %vm1031_vm9, %v2022_v28 }
 0xcca   :  { %v2027_v29 = vld [vmem:[#allocation2] sm:$0xff] }
 0xccc   :  { %v2028_v30 = vld [vmem:[#allocation2 + $0x8] sm:$0xff] }
 0xccd   :  { %v2029_v32 = vpack.c.bf16 %v2028_v30, %v2027_v29 }
 0xccf   :  { %5016 = vmatmul.mubr.msk.bf16.vlgmr.msra.gmra.mrb[36].mxu0 %vm288_vm4, %v2029_v32 }
 0xcd0   :  { %5031 = vmatprep.mubr.msk.bf16.mxu0 %vm5603_vm1, %v5602_v0  ;;  %5028 = vmatpush3.bf16.msra.mxu0 %v5416_v10 }
 0xcd1   :  { %5029 = vmatprep.subr.bf16.mxu0 %v5602_v0 }
 0xcd4   :  { %5030 = vmatpush3.bf16.msra.mxu0 %v5417_v11 }
 0xda2   :  { %v2085_v36 = vpop.f32.mrb[36].mxu0 }
 0xda3   :  { %v2086_v37 = vadd.f32 %v4535_v33, %v2085_v36  ;;  %v5017_v31 = vpop.f32.mrb[37].mxu0 }
 0xda4   :  { %v2088_v39 = vpop.f32.mrb[38].mxu0 }
 0xda5   :  { %v2089_v43 = vadd.f32 %v4535_v33, %v2088_v39  ;;  %v5018_v16 = vpop.f32.mrb[39].mxu0  ;;  %v2092_v18 = vadd.f32 %v2086_v37, %v6067_v40 }
 0xda7   :  { %v2098_v46 = vsel %vm288_vm4, %v2092_v18, 0.0  ;;  %v2093_v47 = vadd.f32 %v2089_v43, %v6069_v42  ;;  %v5414_v42 = vld [vmem:[%s6772_s20] sm:$0xff]  }
 0xda8   :  { %2099 = vadd.xlane.f32.xlu0 %v2098_v46  ;;  %5020 = vmatpush3.bf16.msra.mxu1 %v5414_v42 }
 0xda9   :  { %v2101_v48 = vsel %vm288_vm4, %v2093_v47, 0.0  ;;  %5021 = vmatprep.subr.bf16.mxu1 %v5602_v0 }
 0xdaa   :  { %2102 = vadd.xlane.f32.xlu1 %v2101_v48 }
 0xdac   :  { %5022 = vmatpush3.bf16.msra.mxu1 %v5415_v57  ;;  %v4553_v57 = vld [vmem:[%s6766_s24 + $0x2] ss:$0 sm:$0xff] }
 0xdad   :  { %5035 = vmatprep.subr.bf16.mxu1 %v5602_v0 }
 0xe35   :  { %v2100_v49 = vpop.xlane.xlu0 %2099 }
 0xe36   :  { %v2104_v60 = vmul.f32 0.03125, %v2100_v49 }
 0xe37   :  { %v2103_v50 = vpop.xlane.xlu1 %2102 }
 0xe38   :  { %v2106_v51 = vsub.f32 %v2092_v18, %v2104_v60  ;;  %v2105_v52 = vmul.f32 0.03125, %v2103_v50  ;;  %v5418_v50 = vld [vmem:[%s6837_s1 + $0x10] sm:$0xff]  }
 0xe3a   :  { %v2107_v54 = vsub.f32 %v2093_v47, %v2105_v52  ;;  %v2108_v55 = vmul.f32 %v2106_v51, %v2106_v51 }
 0xe3c   :  { %v2110_v56 = vsel %vm288_vm4, %v2108_v55, 0.0  ;;  %v2109_v2 = vmul.f32 %v2107_v54, %v2107_v54 }
 0xe3d   :  { %2111 = vadd.xlane.f32.xlu0 %v2110_v56 }
 0xe3e   :  { %v2113_v40 = vsel %vm288_vm4, %v2109_v2, 0.0 }
 0xe41   :  { %2114 = vadd.xlane.f32.xlu0 %v2113_v40 }
 0xeca   :  { %v2112_v58 = vpop.xlane.xlu0 %2111 }
 0xecb   :  { %v2116_v59 = vmul.f32 0.03125, %v2112_v58 }
 0xecd   :  { %v2118_v61 = vadd.f32 1e-05, %v2116_v59 }
 0xece   :  { %v2115_v62 = vpop.xlane.xlu0 %2114 }
 0xecf   :  { %5502 = vrsqrt.f32 %v2118_v61  ;;  %v2117_v63 = vmul.f32 0.03125, %v2115_v62 }
 0xed1   :  { %v2119_v1 = vadd.f32 1e-05, %v2117_v63  ;;  %v4554_v63 = vld [vmem:[%s6767_s25 + $0x2] ss:$0 sm:$0xff] }
 0xed3   :  { %5504 = vrsqrt.f32 %v2119_v1 }
 0xed9   :  { %v5503_v34 = vpop.eup %5502 }
 0xeda   :  { %v2122_v3 = vmul.f32 %v5503_v34, %v2106_v51  ;;  %v5419_v51 = vld [vmem:[%s6837_s1 + $0x18] sm:$0xff]   ;;  %s6861_s1 = smov 40  }
 0xedc   :  { %v2130_v44 = vmul.f32 %v4541_v35, %v2122_v3 }
 0xedd   :  { %v5505_v41 = vpop.eup %5504 }
 0xede   :  { %v2123_v4 = vmul.f32 %v5505_v41, %v2107_v54  ;;  %v2138_v7 = vadd.f32 %v4542_v5, %v2130_v44  ;;  %v4560_v41 = vld [vmem:[%s6842_s0 + $0x1] ss:$0 sm:$0xff]  ;;  %s6856_s0 = smov 112  }
 0xee0   :  { %v2131_v6 = vmul.f32 %v4541_v35, %v2123_v4 }
 0xee2   :  { %v2139_v8 = vadd.f32 %v4542_v5, %v2131_v6 }
 0xee4   :  { %v2144_v9 = vpack.c.bf16 %v2139_v8, %v2138_v7 }
 0xee6   :  { %5024 = vmatmul.mubr.msk.bf16.vlgmr.msra.gmra.mrb[36].mxu1 %vm288_vm4, %v2144_v9 }
 0xee7   :  { %5039 = vmatprep.mubr.msk.bf16.mxu1 %vm5603_vm1, %v5602_v0  ;;  %5036 = vmatpush3.bf16.msra.mxu1 %v5418_v50 }
 0xee8   :  { %5037 = vmatprep.subr.bf16.mxu1 %v5602_v0 }
 0xeeb   :  { %5038 = vmatpush3.bf16.msra.mxu1 %v5419_v51 }
 0xfb9   :  { %v2201_v13 = vpop.f32.mrb[36].mxu1 }
 0xfba   :  { %v2202_v14 = vadd.f32 %v4543_v12, %v2201_v13  ;;  %v5025_v15 = vpop.f32.mrb[37].mxu1 }
 0xfbb   :  { %v2204_v17 = vpop.f32.mrb[38].mxu1 }
 0xfbc   :  { %v2205_v19 = vadd.f32 %v4543_v12, %v2204_v17  ;;  %v5026_v20 = vpop.f32.mrb[39].mxu1  ;;  %v2208_v21 = vmax.f32 %v2202_v14, 0.0 }
 0xfbe   :  { %v2209_v22 = vmax.f32 %v2205_v19, 0.0 }
 0xfc0   :  { %v2214_v23 = vpack.c.bf16 %v2209_v22, %v2208_v21 }
 0xfc2   :  { %5032 = vmatmul.mubr.msk.bf16.vlgmr.msra.gmra.mrb[40].mxu0 %vm288_vm4, %v2214_v23 }
0x1095   :  { %v2271_v25 = vpop.f32.mrb[40].mxu0 }
0x1096   :  { %v2272_v26 = vadd.f32 %v4547_v24, %v2271_v25  ;;  %v5033_v27 = vpop.f32.mrb[41].mxu0 }
0x1097   :  { %v2274_v28 = vpop.f32.mrb[42].mxu0 }
0x1098   :  { %v2275_v29 = vadd.f32 %v4547_v24, %v2274_v28  ;;  %v5034_v30 = vpop.f32.mrb[43].mxu0  ;;  %v2278_v32 = vadd.f32 %v2272_v26, %v2138_v7 }
0x109a   :  { %v2284_v33 = vsel %vm288_vm4, %v2278_v32, 0.0  ;;  %v2279_v36 = vadd.f32 %v2275_v29, %v2139_v8 }
0x109b   :  { %2285 = vadd.xlane.f32.xlu1 %v2284_v33 }
0x109c   :  { %v2287_v37 = vsel %vm288_vm4, %v2279_v36, 0.0 }
0x109d   :  { %2288 = vadd.xlane.f32.xlu0 %v2287_v37 }
0x1128   :  { %v2286_v31 = vpop.xlane.xlu1 %2285 }
0x1129   :  { %v2290_v39 = vmul.f32 0.03125, %v2286_v31 }
0x112a   :  { %v2289_v43 = vpop.xlane.xlu0 %2288 }
0x112b   :  { %v2292_v16 = vsub.f32 %v2278_v32, %v2290_v39  ;;  %v2291_v18 = vmul.f32 0.03125, %v2289_v43 }
0x112d   :  { %v2293_v46 = vsub.f32 %v2279_v36, %v2291_v18  ;;  %v2294_v47 = vmul.f32 %v2292_v16, %v2292_v16 }
0x112f   :  { %v2296_v48 = vsel %vm288_vm4, %v2294_v47, 0.0  ;;  %v2295_v49 = vmul.f32 %v2293_v46, %v2293_v46  ;;  %v5586_v47 = vld [vmem:[%s6845_s6 + $0x8] sm:$0xff] }
0x1130   :  { %2297 = vadd.xlane.f32.xlu1 %v2296_v48 }
0x1131   :  { %v2299_v60 = vsel %vm288_vm4, %v2295_v49, 0.0  ;;  %v5587_v49 = vld [vmem:[%s6845_s6 + $0x18] sm:$0xff] }
0x1132   :  { %2300 = vadd.xlane.f32.xlu0 %v2299_v60 }
0x11bd   :  { %v2298_v52 = vpop.xlane.xlu1 %2297 }
0x11be   :  { %v2302_v54 = vmul.f32 0.03125, %v2298_v52  ;;  %v5588_v52 = vld [vmem:[%s6845_s6] sm:$0xff] }
0x11bf   :  { %v2301_v55 = vpop.xlane.xlu0 %2300 }
0x11c0   :  { %v2304_v56 = vadd.f32 1e-05, %v2302_v54  ;;  %v2303_v2 = vmul.f32 0.03125, %v2301_v55 }
0x11c2   :  { %5506 = vrsqrt.f32 %v2304_v56  ;;  %v2305_v40 = vadd.f32 1e-05, %v2303_v2  ;;  %v5589_v2 = vld [vmem:[%s6845_s6 + $0x10] sm:$0xff] }
0x11c4   :  { %5508 = vrsqrt.f32 %v2305_v40 }
0x11cc   :  { %v5507_v42 = vpop.eup %5506 }
0x11cd   :  { %v2308_v58 = vmul.f32 %v5507_v42, %v2292_v16 }
0x11ce   :  { %v5509_v59 = vpop.eup %5508 }
0x11cf   :  { %v2316_v61 = vmul.f32 %v4553_v57, %v2308_v58  ;;  %v2309_v62 = vmul.f32 %v5509_v59, %v2293_v46 }
0x11d1   :  { %v2317_v1 = vmul.f32 %v4553_v57, %v2309_v62  ;;  %v6296_v34 = vadd.f32 %v4554_v63, %v2316_v61 }
0x11d3   :  { %v6298_v3 = vadd.f32 %v4554_v63, %v2317_v1  ;;  %v5590_v1 = vld [vmem:[%s6845_s6 + $0x20] sm:$0xff] }
0x11d5   :  { %v2331_v35 = vpack.c.bf16 %v6298_v3, %v6296_v34 }
0x11d7   :  { %5040 = vmatmul.mubr.msk.bf16.vlgmr.msra.gmra.mrb[40].mxu1 %vm288_vm4, %v2331_v35 }
0x12aa   :  { %v2389_v44 = vpop.f32.mrb[40].mxu1 }
0x12ab   :  { %v6306_v4 = vadd.f32 %v4560_v41, %v2389_v44  ;;  %v5041_v5 = vpop.f32.mrb[41].mxu1  ;;  %v5591_v44 = vld [vmem:[%s6845_s6 + $0x28] sm:$0xff] }
0x12ac   :  { %v2392_v6 = vpop.f32.mrb[42].mxu1 }
0x12ad   :  { %v6308_v7 = vadd.f32 %v4560_v41, %v2392_v6  ;;  %v5042_v8 = vpop.f32.mrb[43].mxu1  ;;  %5047 = vmatprep.mubr.msk.f32.mxu0 %vm344_vm5, %v6306_v4 }
0x12ae   :  { %v5592_v8 = vld [vmem:[%s6845_s6 + $0x30] sm:$0xff] }
0x12af   :  { %v5371_v9 = vpack.i.bf16 %v6308_v7, %v6306_v4 }
0x12b1   :  { %5372 = vrot.lane.b32.xlu0 %v5371_v9, %s6848_s11  ;;  %5367 = vrot.lane.b32.xlu1 %v5371_v9, %s6854_s12 }
0x12b5   :  { %2492 = vrot.lane.b32.xlu0 %v6306_v4, %s6855_s27  ;;  %5377 = vrot.lane.b32.xlu1 %v5371_v9, %s6849_s16 }
0x12b9   :  { %2583 = vrot.lane.b32.xlu0 %v6306_v4, %s6856_s0  ;;  %5382 = vrot.lane.b32.xlu1 %v5371_v9, %s6850_s4 }
0x12bd   :  { %2674 = vrot.lane.b32.xlu0 %v6306_v4, %s6857_s28  ;;  %2494 = vrot.lane.b32.xlu1 %v6308_v7, %s6855_s27 }
0x12c1   :  { %2585 = vrot.lane.b32.xlu1 %v6308_v7, %s6856_s0 }
0x12c5   :  { %2676 = vrot.lane.b32.xlu1 %v6308_v7, %s6857_s28 }
0x1323   :  { %v5373_v10 = vpop.permute.xlu0 %5372  ;;  %v5368_v11 = vpop.permute.xlu1 %5367 }
0x1324   :  { %v5375_v12 = vunpack.i.h.bf16 %v5373_v10  ;;  %v5374_v13 = vunpack.i.l.bf16 %v5373_v10  ;;  %v5370_v14 = vunpack.i.h.bf16 %v5368_v11  ;;  %v5369_v15 = vunpack.i.l.bf16 %v5368_v11  ;;  %v5593_v11 = vld [vmem:[%s6845_s6 + $0x38] sm:$0xff]  ;;  %s6859_s6 = smov 48  }
0x1326   :  { %v5273_v17 = vpack.c.bf16 %v5375_v12, %v5374_v13  ;;  %v5267_v19 = vpack.c.bf16 %v5370_v14, %v5369_v15 }
0x1327   :  { %v2493_v20 = vpop.permute.xlu0 %2492  ;;  %v5378_v21 = vpop.permute.xlu1 %5377 }
0x1328   :  { %v5380_v22 = vunpack.i.h.bf16 %v5378_v21  ;;  %v5379_v23 = vunpack.i.l.bf16 %v5378_v21  ;;  %5269 = vmatprep.subr.msk.bf16.mxu0 %vm5865_vm6, %v5267_v19  ;;  %5275 = vmatprep.subr.msk.bf16.mxu1 %vm5865_vm6, %v5273_v17 }
0x1329   :  { %5054 = vmatprep.mubr.msk.f32.mxu1 %vm344_vm5, %v2493_v20  ;;  %5272 = vmatpush3.bf16.xpose.msk.msra.mxu0 %vm5865_vm6, %v5267_v19 }
0x132a   :  { %v5279_v24 = vpack.c.bf16 %v5380_v22, %v5379_v23  ;;  %5278 = vmatpush3.bf16.xpose.msk.msra.mxu1 %vm5865_vm6, %v5273_v17  ;;  %v2870_v17 = vpack.c.bf16 %v6308_v7, %v6306_v4 }
0x132b   :  { %v2584_v25 = vpop.permute.xlu0 %2583  ;;  %v5383_v26 = vpop.permute.xlu1 %5382 }
0x132c   :  { %v5385_v27 = vunpack.i.h.bf16 %v5383_v26  ;;  %v5384_v28 = vunpack.i.l.bf16 %v5383_v26  ;;  %5281 = vmatprep.subr.msk.bf16.mxu0 %vm5865_vm6, %v5279_v24 }
0x132e   :  { %v5285_v29 = vpack.c.bf16 %v5385_v27, %v5384_v28 }
0x132f   :  { %v2495_v30 = vpop.permute.xlu1 %2494  ;;  %v2675_v32 = vpop.permute.xlu0 %2674 }
0x1330   :  { %5048 = vmatmul.mubr.msk.f32.vlgmr.msra.gmra.mrb[44].mxu0 %vm344_vm5, %v6308_v7  ;;  %5287 = vmatprep.subr.msk.bf16.mxu1 %vm5865_vm6, %v5285_v29 }
0x1331   :  { %5055 = vmatmul.mubr.msk.f32.vlgmr.msra.gmra.mrb[44].mxu1 %vm344_vm5, %v2495_v30  ;;  %5284 = vmatpush3.bf16.xpose.msk.msra.mxu0 %vm5865_vm6, %v5279_v24 }
0x1332   :  { %5061 = vmatprep.mubr.msk.f32.mxu0 %vm344_vm5, %v2584_v25  ;;  %5290 = vmatpush3.bf16.xpose.msk.msra.mxu1 %vm5865_vm6, %v5285_v29 }
0x1333   :  { %5068 = vmatprep.mubr.msk.f32.mxu1 %vm344_vm5, %v2675_v32  ;;  %v2586_v33 = vpop.permute.xlu1 %2585  ;;  %5071 = vmatprep.subr.bf16.mxu0 %v5602_v0 }
0x1334   :  { %5077 = vmatprep.subr.bf16.mxu1 %v5602_v0 }
0x1337   :  { %v2677_v36 = vpop.permute.xlu1 %2676 }
0x1338   :  { %5062 = vmatmul.mubr.msk.f32.vlgmr.msra.gmra.mrb[46].mxu0 %vm344_vm5, %v2586_v33 }
0x1339   :  { %5069 = vmatmul.mubr.msk.f32.vlgmr.msra.gmra.mrb[46].mxu1 %vm344_vm5, %v2677_v36  ;;  %5073 = vmatprep.mubr.msk.bf16.mxu0 %vm5603_vm1, %v5602_v0 }
0x133a   :  { %5079 = vmatprep.mubr.msk.bf16.mxu1 %vm5603_vm1, %v5602_v0 }
0x1403   :  { %v5049_v37 = vpop.f32.mrb[44].mxu0 }
0x1404   :  { %v2766_v31 = vmul.f32 0.35355338, %v5049_v37  ;;  %v5056_v39 = vpop.f32.mrb[44].mxu1  ;;  %v2483_v43 = vpop.f32.mrb[45].mxu0 }
0x1405   :  { %v2768_v16 = vmul.f32 0.35355338, %v5056_v39  ;;  %v2765_v18 = vmul.f32 0.35355338, %v2483_v43  ;;  %v2574_v46 = vpop.f32.mrb[45].mxu1 }
0x1406   :  { %v2774_v48 = vadd.f32 %v5586_v47, %v2766_v31  ;;  %v2767_v50 = vmul.f32 0.35355338, %v2574_v46 }
0x1407   :  { %v2776_v60 = vadd.f32 %v5587_v49, %v2768_v16  ;;  %v2773_v54 = vadd.f32 %v5588_v52, %v2765_v18 }
0x1408   :  { %v2784_v51 = vsel %vm114_vm2, %v2774_v48, -inf  ;;  %v2775_v40 = vadd.f32 %v5589_v2, %v2767_v50 }
0x1409   :  { %v2790_v55 = vsel %vm114_vm2, %v2776_v60, -inf  ;;  %2785 = vmax.xlane.f32.xlu1 %v2784_v51  ;;  %v2781_v62 = vsel %vm114_vm2, %v2773_v54, -inf }
0x140a   :  { %2791 = vmax.xlane.f32.xlu0 %v2790_v55  ;;  %v2787_v41 = vsel %vm114_vm2, %v2775_v40, -inf }
0x140b   :  { %v5063_v56 = vpop.f32.mrb[46].mxu0 }
0x140c   :  { %v5070_v42 = vpop.f32.mrb[46].mxu1  ;;  %v2665_v57 = vpop.f32.mrb[47].mxu0  ;;  %v2770_v58 = vmul.f32 0.35355338, %v5063_v56 }
0x140d   :  { %v2769_v59 = vmul.f32 0.35355338, %v2665_v57  ;;  %v2756_v61 = vpop.f32.mrb[47].mxu1  ;;  %v2772_v6 = vmul.f32 0.35355338, %v5070_v42 }
0x140e   :  { %v2771_v63 = vmul.f32 0.35355338, %v2756_v61  ;;  %2782 = vmax.xlane.f32.xlu0 %v2781_v62  ;;  %v2778_v5 = vadd.f32 %v5591_v44, %v2770_v58 }
0x140f   :  { %v6378_v35 = vadd.f32 %v5590_v1, %v2769_v59  ;;  %v2780_v12 = vadd.f32 %v5593_v11, %v2772_v6 }
0x1410   :  { %v6387_v9 = vadd.f32 %v5592_v8, %v2771_v63  ;;  %v2796_v13 = vsel %vm114_vm2, %v2778_v5, -inf }
0x1411   :  { %v2793_v10 = vsel %vm114_vm2, %v6378_v35, -inf  ;;  %v2802_v15 = vsel %vm114_vm2, %v2780_v12, -inf }
0x1412   :  { %2788 = vmax.xlane.f32.xlu0 %v2787_v41  ;;  %2794 = vmax.xlane.f32.xlu1 %v2793_v10  ;;  %v2799_v14 = vsel %vm114_vm2, %v6387_v9, -inf }
0x1416   :  { %2797 = vmax.xlane.f32.xlu0 %v2796_v13  ;;  %2800 = vmax.xlane.f32.xlu1 %v2799_v14 }
0x141a   :  { %2803 = vmax.xlane.f32.xlu0 %v2802_v15 }
0x1427   :  { %2872 = vrot.lane.b32.xlu1 %v2870_v17, %s6858_s8 }
0x1496   :  { %v2786_v19 = vpop.xlane.xlu1 %2785 }
0x1497   :  { %v2792_v20 = vpop.xlane.xlu0 %2791  ;;  %v2806_v21 = vsub.f32 %v2774_v48, %v2786_v19 }
0x1498   :  { %v2808_v22 = vsub.f32 %v2776_v60, %v2792_v20 }
0x1499   :  { %v2815_v23 = vmul.f32 1.442695, %v2806_v21 }
0x149a   :  { %v2819_v24 = vmul.f32 1.442695, %v2808_v22 }
0x149b   :  { %5510 = vpow2.f32 %v2815_v23  ;;  %v2783_v25 = vpop.xlane.xlu0 %2782 }
0x149c   :  { %v2805_v26 = vsub.f32 %v2773_v54, %v2783_v25  ;;  %5512 = vpow2.f32 %v2819_v24 }
0x149e   :  { %v2813_v27 = vmul.f32 1.442695, %v2805_v26 }
0x149f   :  { %v2789_v28 = vpop.xlane.xlu0 %2788  ;;  %v2795_v29 = vpop.xlane.xlu1 %2794 }
0x14a0   :  { %5514 = vpow2.f32 %v2813_v27  ;;  %v2807_v30 = vsub.f32 %v2775_v40, %v2789_v28  ;;  %v2809_v56 = vsub.f32 %v6378_v35, %v2795_v29 }
0x14a2   :  { %v2817_v32 = vmul.f32 1.442695, %v2807_v30  ;;  %v2821_v2 = vmul.f32 1.442695, %v2809_v56 }
0x14a3   :  { %v2798_v33 = vpop.xlane.xlu0 %2797  ;;  %v2801_v4 = vpop.xlane.xlu1 %2800 }
0x14a4   :  { %5516 = vpow2.f32 %v2817_v32  ;;  %v2810_v7 = vsub.f32 %v2778_v5, %v2798_v33  ;;  %v2811_v40 = vsub.f32 %v6387_v9, %v2801_v4 }
0x14a5   :  { %v5511_v36 = vpop.eup %5510 }
0x14a6   :  { %v2823_v37 = vmul.f32 1.442695, %v2810_v7  ;;  %v2832_v31 = vsel %vm114_vm2, %v5511_v36, 0.0  ;;  %v5513_v39 = vpop.eup %5512  ;;  %v2825_v42 = vmul.f32 1.442695, %v2811_v40 }
0x14a7   :  { %v2804_v43 = vpop.xlane.xlu0 %2803  ;;  %2833 = vadd.xlane.f32.xlu0 %v2832_v31  ;;  %v2873_v16 = vpop.permute.xlu1 %2872  ;;  %v2838_v48 = vsel %vm114_vm2, %v5513_v39, 0.0 }
0x14a8   :  { %5518 = vpow2.f32 %v2823_v37  ;;  %v2812_v18 = vsub.f32 %v2780_v12, %v2804_v43  ;;  %5072 = vmatpush3.bf16.msra.mxu0 %v2873_v16 }
0x14a9   :  { %5083 = vmatprep.subr.bf16.mxu0 %v5602_v0 }
0x14aa   :  { %v5515_v46 = vpop.eup %5514  ;;  %v2827_v47 = vmul.f32 1.442695, %v2812_v18  ;;  %v5420_v18 = vld [vmem:[%s6846_s29 + $0x10] sm:$0xff]  }
0x14ab   :  { %2839 = vadd.xlane.f32.xlu0 %v2838_v48  ;;  %v2829_v49 = vsel %vm114_vm2, %v5515_v46, 0.0 }
0x14ac   :  { %5520 = vpow2.f32 %v2827_v47  ;;  %2830 = vadd.xlane.f32.xlu1 %v2829_v49 }
0x14ad   :  { %5522 = vpow2.f32 %v2821_v2 }
0x14ae   :  { %v5517_v60 = vpop.eup %5516  ;;  %5524 = vpow2.f32 %v2825_v42 }
0x14af   :  { %v2835_v50 = vsel %vm114_vm2, %v5517_v60, 0.0 }
0x14b0   :  { %2836 = vadd.xlane.f32.xlu1 %v2835_v50  ;;  %v5422_v50 = vld [vmem:[%s6847_s3 + $0x10] sm:$0xff]  }
0x14b2   :  { %v5519_v51 = vpop.eup %5518 }
0x14b3   :  { %v2844_v52 = vsel %vm114_vm2, %v5519_v51, 0.0 }
0x14b4   :  { %2845 = vadd.xlane.f32.xlu0 %v2844_v52 }
0x14b6   :  { %v6407_v54 = vpop.eup %5520 }
0x14b7   :  { %v2850_v55 = vsel %vm114_vm2, %v6407_v54, 0.0  ;;  %v5523_v57 = vpop.eup %5522 }
0x14b8   :  { %2851 = vadd.xlane.f32.xlu0 %v2850_v55  ;;  %v2841_v58 = vsel %vm114_vm2, %v5523_v57, 0.0  ;;  %v5525_v59 = vpop.eup %5524 }
0x14b9   :  { %v2847_v61 = vsel %vm114_vm2, %v5525_v59, 0.0 }
0x14c1   :  { %2980 = vrot.lane.b32.xlu1 %v2870_v17, %s6859_s6 }
0x14ce   :  { %2922 = vrot.lane.b32.xlu0 %v2870_v17, %s6860_s9 }
0x14e5   :  { %2842 = vadd.xlane.f32.xlu1 %v2841_v58 }
0x14e9   :  { %2848 = vadd.xlane.f32.xlu1 %v2847_v61 }
0x14fa   :  { %3038 = vrot.lane.b32.xlu1 %v2870_v17, %s6861_s1 }
0x1534   :  { %v2834_v62 = vpop.xlane.xlu0 %2833 }
0x1535   :  { %5526 = vrcp.f32 %v2834_v62 }
0x1538   :  { %v2840_v63 = vpop.xlane.xlu0 %2839 }
0x1539   :  { %v2831_v1 = vpop.xlane.xlu1 %2830 }
0x153a   :  { %5528 = vrcp.f32 %v2831_v1  ;;  %v5424_v1 = vld [vmem:[%s6763_s14 + $0x10] sm:$0xff]  }
0x153b   :  { %5530 = vrcp.f32 %v2840_v63  ;;  %v5423_v63 = vld [vmem:[%s6847_s3 + $0x18] sm:$0xff]  }
0x153d   :  { %v2837_v35 = vpop.xlane.xlu1 %2836 }
0x153e   :  { %5532 = vrcp.f32 %v2837_v35  ;;  %v5425_v35 = vld [vmem:[%s6763_s14 + $0x18] sm:$0xff]  }
0x153f   :  { %v5527_v44 = vpop.eup %5526 }
0x1540   :  { %v2862_v6 = vmul.f32 %v5527_v44, %v5511_v36 }
0x1541   :  { %v2846_v41 = vpop.xlane.xlu0 %2845  ;;  %v2981_v15 = vpop.permute.xlu1 %2980 }
0x1542   :  { %5534 = vrcp.f32 %v2846_v41 }
0x1544   :  { %v5529_v5 = vpop.eup %5528 }
0x1545   :  { %v2861_v8 = vmul.f32 %v5529_v5, %v5515_v46  ;;  %v2852_v9 = vpop.xlane.xlu0 %2851  ;;  %v5531_v10 = vpop.eup %5530  ;;  %v5421_v46 = vld [vmem:[%s6846_s29 + $0x18] sm:$0xff]   ;;  %s6863_s29 = sld [smem:[#allocation18_spill]] }
0x1546   :  { %v2864_v13 = vmul.f32 %v5531_v10, %v5513_v39 }
0x1547   :  { %v2869_v11 = vpack.c.bf16 %v2862_v6, %v2861_v8 }
0x1548   :  { %v5533_v12 = vpop.eup %5532 }
0x1549   :  { %v2863_v14 = vmul.f32 %v5533_v12, %v5517_v60  ;;  %v2923_v17 = vpop.permute.xlu0 %2922  ;;  %5074 = vmatmul.mubr.msk.bf16.vlgmr.msra.gmra.mrb[48].mxu0 %vm114_vm2, %v2869_v11  ;;  %v4611_v12 = vld [vmem:[%s6765_s17 + $0x1] ss:$0 sm:$0xff]  ;;  %s6862_s17 = sld [smem:[#allocation17_spill]] }
0x154a   :  { %5084 = vmatpush3.bf16.msra.mxu0 %v2981_v15  ;;  %5078 = vmatpush3.bf16.msra.mxu1 %v2923_v17 }
0x154b   :  { %v2921_v19 = vpack.c.bf16 %v2864_v13, %v2863_v14  ;;  %5089 = vmatprep.subr.bf16.mxu1 %v5602_v0  ;;  %5085 = vmatprep.mubr.msk.bf16.mxu0 %vm5603_vm1, %v5602_v0 }
0x154c   :  { %5095 = vmatprep.subr.bf16.mxu0 %v5602_v0  ;;  %v5535_v23 = vpop.eup %5534 }
0x154d   :  { %5080 = vmatmul.mubr.msk.bf16.vlgmr.msra.gmra.mrb[48].mxu1 %vm114_vm2, %v2921_v19  ;;  %v2866_v25 = vmul.f32 %v5535_v23, %v5519_v51 }
0x154e   :  { %5091 = vmatprep.mubr.msk.bf16.mxu1 %vm5603_vm1, %v5602_v0 }
0x1572   :  { %v2843_v20 = vpop.xlane.xlu1 %2842 }
0x1573   :  { %5536 = vrcp.f32 %v2843_v20 }
0x1574   :  { %5538 = vrcp.f32 %v2852_v9 }
0x1576   :  { %v2849_v21 = vpop.xlane.xlu1 %2848 }
0x1577   :  { %5540 = vrcp.f32 %v2849_v21 }
0x157a   :  { %v3039_v22 = vpop.permute.xlu1 %3038 }
0x157b   :  { %5090 = vmatpush3.bf16.msra.mxu1 %v3039_v22 }
0x157c   :  { %5103 = vmatprep.subr.bf16.mxu1 %v5602_v0 }
0x157d   :  { %v5537_v24 = vpop.eup %5536 }
0x157e   :  { %v2865_v26 = vmul.f32 %v5537_v24, %v5523_v57  ;;  %v5539_v27 = vpop.eup %5538 }
0x157f   :  { %v2868_v30 = vmul.f32 %v5539_v27, %v6407_v54 }
0x1580   :  { %v2979_v28 = vpack.c.bf16 %v2866_v25, %v2865_v26 }
0x1581   :  { %v5541_v29 = vpop.eup %5540 }
0x1582   :  { %v2867_v32 = vmul.f32 %v5541_v29, %v5525_v59  ;;  %5086 = vmatmul.mubr.msk.bf16.vlgmr.msra.gmra.mrb[52].mxu0 %vm114_vm2, %v2979_v28 }
0x1583   :  { %5099 = vmatprep.mubr.msk.bf16.mxu0 %vm5603_vm1, %v5602_v0  ;;  %5096 = vmatpush3.bf16.msra.mxu0 %v5420_v18 }
0x1584   :  { %v3037_v33 = vpack.c.bf16 %v2868_v30, %v2867_v32  ;;  %5097 = vmatprep.subr.bf16.mxu0 %v5602_v0 }
0x1586   :  { %5092 = vmatmul.mubr.msk.bf16.vlgmr.msra.gmra.mrb[52].mxu1 %vm114_vm2, %v3037_v33 }
0x1587   :  { %5107 = vmatprep.mubr.msk.bf16.mxu1 %vm5603_vm1, %v5602_v0  ;;  %5098 = vmatpush3.bf16.msra.mxu0 %v5421_v46 }
0x1588   :  { %5111 = vmatprep.subr.bf16.mxu0 %v5422_v50  ;;  %5104 = vmatpush3.bf16.msra.mxu1 %v5424_v1 }
0x1589   :  { %5105 = vmatprep.subr.bf16.mxu1 %v5602_v0 }
0x158c   :  { %5106 = vmatpush3.bf16.msra.mxu1 %v5425_v35  ;;  %v4602_v35 = vld [vmem:[%s6768_s15 + $0x1] ss:$0 sm:$0xff] }
0x161c   :  { %v2912_v4 = vpop.f32.mrb[48].mxu0 }
0x161d   :  { %2919 = vst.msk [vmem:[#allocation2] sm:$0xff] %vm344_vm5, %v2912_v4  ;;  %v5075_v7 = vpop.f32.mrb[49].mxu0 }
0x161e   :  { %v2915_v36 = vpop.f32.mrb[50].mxu0 }
0x161f   :  { %2920 = vst.msk [vmem:[#allocation2 + $0x8] sm:$0xff] %vm344_vm5, %v2915_v36  ;;  %v5076_v37 = vpop.f32.mrb[51].mxu0 }
0x1620   :  { %v2962_v31 = vpop.f32.mrb[48].mxu1 }
0x1621   :  { %2971 = vrot.lane.b32.xlu0 %v2962_v31, %s6851_s2  ;;  %v5081_v39 = vpop.f32.mrb[49].mxu1 }
0x1622   :  { %v2965_v43 = vpop.f32.mrb[50].mxu1 }
0x1623   :  { %2973 = vrot.lane.b32.xlu1 %v2965_v43, %s6851_s2  ;;  %v5082_v16 = vpop.f32.mrb[51].mxu1 }
0x1655   :  { %v3020_v47 = vpop.f32.mrb[52].mxu0 }
0x1656   :  { %3029 = vrot.lane.b32.xlu0 %v3020_v47, %s6852_s7  ;;  %v5087_v48 = vpop.f32.mrb[53].mxu0 }
0x1657   :  { %v3023_v49 = vpop.f32.mrb[54].mxu0 }
0x1658   :  { %3031 = vrot.lane.b32.xlu1 %v3023_v49, %s6852_s7  ;;  %v5088_v60 = vpop.f32.mrb[55].mxu0 }
0x1659   :  { %v3078_v51 = vpop.f32.mrb[52].mxu1 }
0x165a   :  { %3087 = vrot.lane.b32.xlu0 %v3078_v51, %s6853_s30  ;;  %v5093_v52 = vpop.f32.mrb[53].mxu1 }
0x165b   :  { %v3081_v54 = vpop.f32.mrb[54].mxu1 }
0x165c   :  { %3089 = vrot.lane.b32.xlu1 %v3081_v54, %s6853_s30  ;;  %v5094_v55 = vpop.f32.mrb[55].mxu1 }
0x165d   :  { %v4595_v55 = vld [vmem:[%s6766_s24 + $0x3] ss:$0 sm:$0xff] }
0x1693   :  { %v2972_v56 = vpop.permute.xlu0 %2971 }
0x1694   :  { %2977 = vst.msk [vmem:[#allocation2] sm:$0xff] %vm913_vm7, %v2972_v56 }
0x1695   :  { %v2974_v2 = vpop.permute.xlu1 %2973 }
0x1696   :  { %2978 = vst.msk [vmem:[#allocation2 + $0x8] sm:$0xff] %vm913_vm7, %v2974_v2 }
0x16c8   :  { %v3030_v40 = vpop.permute.xlu0 %3029 }
0x16c9   :  { %3035 = vst.msk [vmem:[#allocation2] sm:$0xff] %vm972_vm8, %v3030_v40 }
0x16ca   :  { %v3032_v42 = vpop.permute.xlu1 %3031 }
0x16cb   :  { %3036 = vst.msk [vmem:[#allocation2 + $0x8] sm:$0xff] %vm972_vm8, %v3032_v42  ;;  %v4596_v42 = vld [vmem:[%s6767_s25 + $0x3] ss:$0 sm:$0xff] }
0x16cc   :  { %v3088_v57 = vpop.permute.xlu0 %3087 }
0x16cd   :  { %3093 = vst.msk [vmem:[#allocation2] sm:$0xff] %vm1031_vm9, %v3088_v57 }
0x16ce   :  { %v3090_v58 = vpop.permute.xlu1 %3089 }
0x16cf   :  { %3094 = vst.msk [vmem:[#allocation2 + $0x8] sm:$0xff] %vm1031_vm9, %v3090_v58 }
0x16d4   :  { %v3095_v59 = vld [vmem:[#allocation2] sm:$0xff] }
0x16d6   :  { %v3096_v61 = vld [vmem:[#allocation2 + $0x8] sm:$0xff] }
0x16d7   :  { %v3097_v62 = vpack.c.bf16 %v3096_v61, %v3095_v59 }
0x16d9   :  { %5100 = vmatmul.mubr.msk.bf16.vlgmr.msra.gmra.mrb[56].mxu0 %vm288_vm4, %v3097_v62 }
0x16da   :  { %5112 = vmatpush3.bf16.msra.mxu0 %v5422_v50  ;;  %5115 = vmatprep.mubr.msk.bf16.mxu0 %vm288_vm4, %v5833_v38  ;;  %v4589_v38 = vld [vmem:[%s6764_s13 + $0x1] ss:$0 sm:$0xff] }
0x16db   :  { %5113 = vmatprep.subr.bf16.mxu0 %v5423_v63 }
0x16de   :  { %5114 = vmatpush3.bf16.msra.mxu0 %v5423_v63 }
0x16e1   :  { %5116 = vmatmul.mubr.msk.bf16.vlgmr.msra.gmra.mrb[60].mxu0 %vm288_vm4, %v6018_v45 }
0x17ac   :  { %v3153_v41 = vpop.f32.mrb[56].mxu0 }
0x17ad   :  { %v3154_v44 = vadd.f32 %v4589_v38, %v3153_v41  ;;  %v5101_v5 = vpop.f32.mrb[57].mxu0 }
0x17ae   :  { %v3156_v45 = vpop.f32.mrb[58].mxu0 }
0x17af   :  { %v3160_v6 = vadd.f32 %v3154_v44, %v6296_v34  ;;  %v3157_v8 = vadd.f32 %v4589_v38, %v3156_v45  ;;  %v5102_v9 = vpop.f32.mrb[59].mxu0 }
0x17b1   :  { %v3161_v10 = vadd.f32 %v3157_v8, %v6298_v3  ;;  %v3166_v11 = vsel %vm288_vm4, %v3160_v6, 0.0 }
0x17b2   :  { %3167 = vadd.xlane.f32.xlu0 %v3166_v11 }
0x17b3   :  { %v3169_v13 = vsel %vm288_vm4, %v3161_v10, 0.0 }
0x17b4   :  { %3170 = vadd.xlane.f32.xlu1 %v3169_v13  ;;  %v5117_v14 = vpop.f32.mrb[60].mxu0 }
0x17b5   :  { %v6483_v15 = vadd.f32 %v5117_v14, %v4611_v12  ;;  %v3337_v17 = vpop.f32.mrb[61].mxu0 }
0x17b6   :  { %v5118_v19 = vpop.f32.mrb[62].mxu0  ;;  %v3338_v20 = vadd.f32 %v4611_v12, %v3337_v17 }
0x17b7   :  { %v3340_v34 = vpop.f32.mrb[63].mxu0 }
0x17b8   :  { %v3341_v21 = vadd.f32 %v4611_v12, %v3340_v34 }
0x17ba   :  { %v6485_v22 = vpack.c.bf16 %v3341_v21, %v3338_v20  ;;  %v5386_v3 = vpack.i.bf16 %v3341_v21, %v3338_v20  ;;  %v5594_v21 = vld [vmem:[%s6769_s5 + $0x8] sm:$0xff] }
0x17bc   :  { %5293 = vmatprep.subr.msk.bf16.mxu1 %vm5865_vm6, %v6485_v22 }
0x17c5   :  { %5387 = vrot.lane.b32.xlu1 %v5386_v3, %s6855_s27 }
0x17c9   :  { %5392 = vrot.lane.b32.xlu1 %v5386_v3, %s6856_s0 }
0x17cd   :  { %5397 = vrot.lane.b32.xlu1 %v5386_v3, %s6857_s28 }
0x183f   :  { %v3168_v23 = vpop.xlane.xlu0 %3167 }
0x1840   :  { %v3172_v24 = vmul.f32 0.03125, %v3168_v23  ;;  %v5595_v23 = vld [vmem:[%s6769_s5] sm:$0xff] }
0x1841   :  { %v3171_v25 = vpop.xlane.xlu1 %3170 }
0x1842   :  { %v3174_v26 = vsub.f32 %v3160_v6, %v3172_v24  ;;  %v3173_v27 = vmul.f32 0.03125, %v3171_v25 }
0x1844   :  { %v3175_v28 = vsub.f32 %v3161_v10, %v3173_v27  ;;  %v3176_v29 = vmul.f32 %v3174_v26, %v3174_v26 }
0x1845   :  { %v5388_v30 = vpop.permute.xlu1 %5387 }
0x1846   :  { %v5390_v32 = vunpack.i.h.bf16 %v5388_v30  ;;  %v5389_v33 = vunpack.i.l.bf16 %v5388_v30  ;;  %v3178_v4 = vsel %vm288_vm4, %v3176_v29, 0.0  ;;  %v3177_v7 = vmul.f32 %v3175_v28, %v3175_v28 }
0x1847   :  { %3179 = vadd.xlane.f32.xlu0 %v3178_v4  ;;  %v5597_v4 = vld [vmem:[%s6769_s5 + $0x10] sm:$0xff] }
0x1848   :  { %v5297_v36 = vpack.c.bf16 %v5390_v32, %v5389_v33  ;;  %v3181_v37 = vsel %vm288_vm4, %v3177_v7, 0.0  ;;  %v5596_v32 = vld [vmem:[%s6769_s5 + $0x18] sm:$0xff] }
0x1849   :  { %v5393_v31 = vpop.permute.xlu1 %5392 }
0x184a   :  { %5299 = vmatprep.subr.msk.bf16.mxu0 %vm5865_vm6, %v5297_v36  ;;  %v5395_v62 = vunpack.i.h.bf16 %v5393_v31  ;;  %v5394_v63 = vunpack.i.l.bf16 %v5393_v31 }
0x184b   :  { %3182 = vadd.xlane.f32.xlu0 %v3181_v37  ;;  %5302 = vmatpush3.bf16.xpose.msk.msra.mxu0 %vm5865_vm6, %v5297_v36 }
0x184c   :  { %v5303_v1 = vpack.c.bf16 %v5395_v62, %v5394_v63 }
0x184d   :  { %v5398_v16 = vpop.permute.xlu1 %5397 }
0x184e   :  { %v5400_v47 = vunpack.i.h.bf16 %v5398_v16  ;;  %v5399_v48 = vunpack.i.l.bf16 %v5398_v16 }
0x1850   :  { %v5309_v51 = vpack.c.bf16 %v5400_v47, %v5399_v48  ;;  %v5599_v47 = vld [vmem:[%s6769_s5 + $0x20] sm:$0xff] }
0x1861   :  { %3456 = vrot.lane.b32.xlu0 %v6483_v15, %s6855_s27 }
0x18d4   :  { %v3180_v39 = vpop.xlane.xlu0 %3179 }
0x18d5   :  { %v3184_v43 = vmul.f32 0.03125, %v3180_v39 }
0x18d7   :  { %v3186_v18 = vadd.f32 1e-05, %v3184_v43 }
0x18d8   :  { %v3183_v46 = vpop.xlane.xlu0 %3182 }
0x18d9   :  { %5542 = vrsqrt.f32 %v3186_v18  ;;  %v3185_v49 = vmul.f32 0.03125, %v3183_v46  ;;  %v5598_v18 = vld [vmem:[%s6769_s5 + $0x28] sm:$0xff] }
0x18db   :  { %v3187_v60 = vadd.f32 1e-05, %v3185_v49 }
0x18dc   :  { %v3457_v50 = vpop.permute.xlu0 %3456 }
0x18dd   :  { %5544 = vrsqrt.f32 %v3187_v60  ;;  %5132 = vmatprep.subr.msk.mxu0 %vm344_vm5, %v3457_v50 }
0x18de   :  { %5133 = vmatpush3.xpose.msk.msra.mxu0 %vm344_vm5, %v3457_v50 }
0x18df   :  { %5311 = vmatprep.subr.msk.bf16.mxu0 %vm5865_vm6, %v5309_v51 }
0x18e3   :  { %v5543_v52 = vpop.eup %5542 }
0x18e4   :  { %v3190_v54 = vmul.f32 %v5543_v52, %v3174_v26 }
0x18e6   :  { %v3198_v2 = vmul.f32 %v4595_v55, %v3190_v54 }
0x18e7   :  { %v5545_v56 = vpop.eup %5544 }
0x18e8   :  { %v3191_v40 = vmul.f32 %v5545_v56, %v3175_v28  ;;  %v6511_v58 = vadd.f32 %v4596_v42, %v3198_v2  ;;  %v5601_v2 = vld [vmem:[%s6769_s5 + $0x30] sm:$0xff] }
0x18ea   :  { %v3199_v57 = vmul.f32 %v4595_v55, %v3191_v40  ;;  %v5600_v55 = vld [vmem:[%s6769_s5 + $0x38] sm:$0xff] }
0x18ec   :  { %v6513_v59 = vadd.f32 %v4596_v42, %v3199_v57 }
0x18ee   :  { %v3213_v61 = vpack.c.bf16 %v6513_v59, %v6511_v58 }
0x18f0   :  { %5108 = vmatmul.mubr.msk.bf16.vlgmr.msra.gmra.mrb[56].mxu1 %vm288_vm4, %v3213_v61  ;;  %v6598_v61 = vpack.c.bf16 %v6483_v15, %v6483_v15 }
0x18f1   :  { %5296 = vmatpush3.bf16.xpose.msk.msra.mxu1 %vm5865_vm6, %v6485_v22 }
0x18f2   :  { %5123 = vmatprep.subr.msk.mxu1 %vm344_vm5, %v6483_v15 }
0x18f9   :  { %5124 = vmatpush3.xpose.msk.msra.mxu1 %vm344_vm5, %v6483_v15 }
0x18fa   :  { %5305 = vmatprep.subr.msk.bf16.mxu1 %vm5865_vm6, %v5303_v1 }
0x19c3   :  { %v3271_v38 = vpop.f32.mrb[56].mxu1 }
0x19c4   :  { %v3272_v41 = vadd.f32 %v4602_v35, %v3271_v38  ;;  %v5109_v44 = vpop.f32.mrb[57].mxu1 }
0x19c5   :  { %v3274_v5 = vpop.f32.mrb[58].mxu1 }
0x19c6   :  { %v3275_v45 = vadd.f32 %v4602_v35, %v3274_v5  ;;  %v5110_v6 = vpop.f32.mrb[59].mxu1  ;;  %5125 = vmatprep.mubr.msk.f32.mxu1 %vm344_vm5, %v3272_v41  ;;  %3448 = vrot.lane.b32.xlu0 %v3272_v41, %s6855_s27 }
0x19c8   :  { %3450 = vrot.lane.b32.xlu1 %v3275_v45, %s6855_s27  ;;  %5126 = vmatmul.mubr.msk.f32.vlgmr.msra.gmra.mrb[60].mxu1 %vm344_vm5, %v3275_v45 }
0x19c9   :  { %5308 = vmatpush3.bf16.xpose.msk.msra.mxu1 %vm5865_vm6, %v5303_v1 }
0x19ca   :  { %3551 = vrot.lane.b32.xlu0 %v6483_v15, %s6856_s0 }
0x19cc   :  { %3646 = vrot.lane.b32.xlu1 %v6483_v15, %s6857_s28 }
0x19ce   :  { %3543 = vrot.lane.b32.xlu0 %v3272_v41, %s6856_s0 }
0x19d0   :  { %3545 = vrot.lane.b32.xlu1 %v3275_v45, %s6856_s0 }
0x19d2   :  { %3638 = vrot.lane.b32.xlu0 %v3272_v41, %s6857_s28 }
0x19d4   :  { %3640 = vrot.lane.b32.xlu1 %v3275_v45, %s6857_s28 }
0x1a38   :  { %v3449_v8 = vpop.permute.xlu0 %3448 }
0x1a39   :  { %5134 = vmatprep.mubr.msk.f32.mxu0 %vm344_vm5, %v3449_v8 }
0x1a3a   :  { %v3451_v9 = vpop.permute.xlu1 %3450 }
0x1a3b   :  { %5135 = vmatmul.mubr.msk.f32.vlgmr.msra.gmra.mrb[64].mxu0 %vm344_vm5, %v3451_v9 }
0x1a3c   :  { %5314 = vmatpush3.bf16.xpose.msk.msra.mxu0 %vm5865_vm6, %v5309_v51  ;;  %v3552_v10 = vpop.permute.xlu0 %3551 }
0x1a3d   :  { %5141 = vmatprep.subr.msk.mxu1 %vm344_vm5, %v3552_v10 }
0x1a3e   :  { %v3647_v11 = vpop.permute.xlu1 %3646  ;;  %5142 = vmatpush3.xpose.msk.msra.mxu1 %vm344_vm5, %v3552_v10 }
0x1a3f   :  { %5150 = vmatprep.subr.msk.mxu0 %vm344_vm5, %v3647_v11  ;;  %5155 = vmatprep.subr.bf16.mxu1 %v5602_v0 }
0x1a40   :  { %v3544_v12 = vpop.permute.xlu0 %3543 }
0x1a41   :  { %5143 = vmatprep.mubr.msk.f32.mxu1 %vm344_vm5, %v3544_v12 }
0x1a42   :  { %v3546_v13 = vpop.permute.xlu1 %3545 }
0x1a43   :  { %5144 = vmatmul.mubr.msk.f32.vlgmr.msra.gmra.mrb[62].mxu1 %vm344_vm5, %v3546_v13 }
0x1a44   :  { %5151 = vmatpush3.xpose.msk.msra.mxu0 %vm344_vm5, %v3647_v11  ;;  %v3639_v53 = vpop.permute.xlu0 %3638  ;;  %5159 = vmatprep.mubr.msk.bf16.mxu1 %vm5603_vm1, %v5602_v0 }
0x1a45   :  { %5152 = vmatprep.mubr.msk.f32.mxu0 %vm344_vm5, %v3639_v53  ;;  %5163 = vmatprep.subr.bf16.mxu0 %v5602_v0 }
0x1a46   :  { %v3641_v14 = vpop.permute.xlu1 %3640 }
0x1a47   :  { %5153 = vmatmul.mubr.msk.f32.vlgmr.msra.gmra.mrb[66].mxu0 %vm344_vm5, %v3641_v14 }
0x1a48   :  { %5167 = vmatprep.mubr.msk.bf16.mxu0 %vm5603_vm1, %v5602_v0 }
0x1a9b   :  { %v5127_v17 = vpop.f32.mrb[60].mxu1 }
0x1a9c   :  { %v3734_v19 = vmul.f32 0.35355338, %v5127_v17  ;;  %v3439_v34 = vpop.f32.mrb[61].mxu1 }
0x1a9d   :  { %v3733_v20 = vmul.f32 0.35355338, %v3439_v34 }
0x1a9e   :  { %v3742_v3 = vadd.f32 %v5594_v21, %v3734_v19 }
0x1a9f   :  { %v3741_v24 = vadd.f32 %v5595_v23, %v3733_v20 }
0x1aa0   :  { %v3752_v25 = vsel %vm1689_vm10, %v3742_v3, -inf }
0x1aa1   :  { %3753 = vmax.xlane.f32.xlu1 %v3752_v25  ;;  %v3749_v26 = vsel %vm1689_vm10, %v3741_v24, -inf }
0x1aa2   :  { %3750 = vmax.xlane.f32.xlu0 %v3749_v26 }
0x1b0e   :  { %v5136_v27 = vpop.f32.mrb[64].mxu0 }
0x1b0f   :  { %v3736_v28 = vmul.f32 0.35355338, %v5136_v27  ;;  %v3534_v29 = vpop.f32.mrb[65].mxu0 }
0x1b10   :  { %v3735_v30 = vmul.f32 0.35355338, %v3534_v29 }
0x1b11   :  { %v3744_v33 = vadd.f32 %v5596_v32, %v3736_v28 }
0x1b12   :  { %v3743_v7 = vadd.f32 %v5597_v4, %v3735_v30 }
0x1b13   :  { %v3758_v36 = vsel %vm1689_vm10, %v3744_v33, -inf }
0x1b14   :  { %3759 = vmax.xlane.f32.xlu0 %v3758_v36  ;;  %v3755_v43 = vsel %vm1689_vm10, %v3743_v7, -inf }
0x1b16   :  { %v5145_v37 = vpop.f32.mrb[62].mxu1 }
0x1b17   :  { %v3738_v31 = vmul.f32 0.35355338, %v5145_v37  ;;  %v3629_v39 = vpop.f32.mrb[63].mxu1 }
0x1b18   :  { %v3737_v16 = vmul.f32 0.35355338, %v3629_v39  ;;  %3756 = vmax.xlane.f32.xlu0 %v3755_v43 }
0x1b19   :  { %v3746_v46 = vadd.f32 %v5598_v18, %v3738_v31 }
0x1b1a   :  { %v3745_v48 = vadd.f32 %v5599_v47, %v3737_v16  ;;  %v5154_v49 = vpop.f32.mrb[66].mxu0 }
0x1b1b   :  { %v3740_v60 = vmul.f32 0.35355338, %v5154_v49  ;;  %v3724_v50 = vpop.f32.mrb[67].mxu0  ;;  %v3764_v51 = vsel %vm1689_vm10, %v3746_v46, -inf }
0x1b1c   :  { %v3739_v52 = vmul.f32 0.35355338, %v3724_v50  ;;  %3765 = vmax.xlane.f32.xlu0 %v3764_v51  ;;  %v3761_v54 = vsel %vm1689_vm10, %v3745_v48, -inf }
0x1b1d   :  { %v3748_v56 = vadd.f32 %v5600_v55, %v3740_v60  ;;  %3762 = vmax.xlane.f32.xlu1 %v3761_v54 }
0x1b1e   :  { %v3747_v40 = vadd.f32 %v5601_v2, %v3739_v52 }
0x1b1f   :  { %v3770_v42 = vsel %vm1689_vm10, %v3748_v56, -inf }
0x1b20   :  { %3771 = vmax.xlane.f32.xlu0 %v3770_v42  ;;  %v3767_v57 = vsel %vm1689_vm10, %v3747_v40, -inf }
0x1b21   :  { %3768 = vmax.xlane.f32.xlu1 %v3767_v57 }
0x1b2e   :  { %v3754_v62 = vpop.xlane.xlu1 %3753 }
0x1b2f   :  { %v3774_v63 = vsub.f32 %v3742_v3, %v3754_v62  ;;  %v3751_v15 = vpop.xlane.xlu0 %3750 }
0x1b30   :  { %v3773_v35 = vsub.f32 %v3741_v24, %v3751_v15 }
0x1b31   :  { %v3783_v1 = vmul.f32 1.442695, %v3774_v63 }
0x1b32   :  { %3842 = vrot.lane.b32.xlu1 %v6485_v22, %s6854_s12  ;;  %v3781_v38 = vmul.f32 1.442695, %v3773_v35 }
0x1b33   :  { %5546 = vpow2.f32 %v3783_v1 }
0x1b34   :  { %5548 = vpow2.f32 %v3781_v38 }
0x1b36   :  { %3897 = vrot.lane.b32.xlu0 %v6485_v22, %s6848_s11  ;;  %3844 = vrot.lane.b32.xlu1 %v6598_v61, %s6854_s12 }
0x1b3a   :  { %3960 = vrot.lane.b32.xlu0 %v6485_v22, %s6849_s16  ;;  %3899 = vrot.lane.b32.xlu1 %v6598_v61, %s6848_s11  ;;  %s6864_s11 = sld [smem:[#allocation19_spill]] }
0x1b3d   :  { %v6610_v41 = vpop.eup %5546 }
0x1b3e   :  { %4023 = vrot.lane.b32.xlu1 %v6485_v22, %s6850_s4  ;;  %v3800_v44 = vsel %vm1689_vm10, %v6610_v41, 0.0  ;;  %v6614_v5 = vpop.eup %5548 }
0x1b3f   :  { %v3797_v45 = vsel %vm1689_vm10, %v6614_v5, 0.0 }
0x1b59   :  { %3801 = vadd.xlane.f32.xlu0 %v3800_v44 }
0x1b62   :  { %3798 = vadd.xlane.f32.xlu1 %v3797_v45 }
0x1ba1   :  { %v3760_v22 = vpop.xlane.xlu0 %3759 }
0x1ba2   :  { %v3776_v6 = vsub.f32 %v3744_v33, %v3760_v22 }
0x1ba4   :  { %v3787_v8 = vmul.f32 1.442695, %v3776_v6 }
0x1ba5   :  { %v3757_v9 = vpop.xlane.xlu0 %3756 }
0x1ba6   :  { %5550 = vpow2.f32 %v3787_v8  ;;  %v3775_v10 = vsub.f32 %v3743_v7, %v3757_v9 }
0x1ba8   :  { %v3785_v11 = vmul.f32 1.442695, %v3775_v10 }
0x1ba9   :  { %v3766_v12 = vpop.xlane.xlu0 %3765 }
0x1baa   :  { %5552 = vpow2.f32 %v3785_v11  ;;  %v3778_v13 = vsub.f32 %v3746_v46, %v3766_v12  ;;  %v3763_v53 = vpop.xlane.xlu1 %3762 }
0x1bab   :  { %v3777_v14 = vsub.f32 %v3745_v48, %v3763_v53 }
0x1bac   :  { %v3791_v17 = vmul.f32 1.442695, %v3778_v13 }
0x1bad   :  { %v3789_v19 = vmul.f32 1.442695, %v3777_v14  ;;  %v3772_v34 = vpop.xlane.xlu0 %3771 }
0x1bae   :  { %5554 = vpow2.f32 %v3791_v17  ;;  %v3780_v20 = vsub.f32 %v3748_v56, %v3772_v34  ;;  %v3769_v21 = vpop.xlane.xlu1 %3768 }
0x1baf   :  { %5556 = vpow2.f32 %v3789_v19  ;;  %v3779_v3 = vsub.f32 %v3747_v40, %v3769_v21 }
0x1bb0   :  { %v6618_v23 = vpop.eup %5550  ;;  %v3795_v24 = vmul.f32 1.442695, %v3780_v20  ;;  %v5426_v20 = vld [vmem:[%s6770_s18 + $0x10] sm:$0xff]  }
0x1bb1   :  { %v3793_v25 = vmul.f32 1.442695, %v3779_v3  ;;  %v3898_v26 = vpop.permute.xlu0 %3897  ;;  %v3806_v27 = vsel %vm1689_vm10, %v6618_v23, 0.0 }
0x1bb2   :  { %5558 = vpow2.f32 %v3795_v24  ;;  %3807 = vadd.xlane.f32.xlu0 %v3806_v27  ;;  %5164 = vmatpush3.bf16.msra.mxu0 %v3898_v26  ;;  %v3843_v28 = vpop.permute.xlu1 %3842 }
0x1bb3   :  { %5560 = vpow2.f32 %v3793_v25  ;;  %5156 = vmatpush3.bf16.msra.mxu1 %v3843_v28  ;;  %5165 = vmatprep.subr.bf16.mxu0 %v5602_v0 }
0x1bb4   :  { %v5553_v29 = vpop.eup %5552  ;;  %5157 = vmatprep.subr.bf16.mxu1 %v5602_v0 }
0x1bb5   :  { %v3803_v30 = vsel %vm1689_vm10, %v5553_v29, 0.0  ;;  %v3961_v47 = vpop.permute.xlu0 %3960 }
0x1bb6   :  { %3804 = vadd.xlane.f32.xlu1 %v3803_v30  ;;  %v3845_v32 = vpop.permute.xlu1 %3844 }
0x1bb7   :  { %v3851_v33 = vsel %vm1791_vm11, %v3845_v32, 0 }
0x1bb8   :  { %v5555_v4 = vpop.eup %5554  ;;  %5158 = vmatpush3.bf16.msra.mxu1 %v3851_v33 }
0x1bb9   :  { %v5557_v7 = vpop.eup %5556  ;;  %v3812_v36 = vsel %vm1689_vm10, %v5555_v4, 0.0  ;;  %5171 = vmatprep.subr.bf16.mxu1 %v5602_v0 }
0x1bba   :  { %3813 = vadd.xlane.f32.xlu0 %v3812_v36  ;;  %v3900_v37 = vpop.permute.xlu1 %3899  ;;  %v3809_v31 = vsel %vm1689_vm10, %v5557_v7, 0.0 }
0x1bbb   :  { %v3906_v39 = vsel %vm1791_vm11, %v3900_v37, 0  ;;  %3810 = vadd.xlane.f32.xlu1 %v3809_v31 }
0x1bbc   :  { %v5559_v43 = vpop.eup %5558  ;;  %5166 = vmatpush3.bf16.msra.mxu0 %v3906_v39 }
0x1bbd   :  { %v5561_v16 = vpop.eup %5560  ;;  %v3818_v18 = vsel %vm1689_vm10, %v5559_v43, 0.0  ;;  %5179 = vmatprep.subr.bf16.mxu0 %v5602_v0 }
0x1bbe   :  { %3819 = vadd.xlane.f32.xlu0 %v3818_v18  ;;  %v3815_v46 = vsel %vm1689_vm10, %v5561_v16, 0.0  ;;  %v4024_v48 = vpop.permute.xlu1 %4023 }
0x1bbf   :  { %3816 = vadd.xlane.f32.xlu1 %v3815_v46 }
0x1bd0   :  { %4025 = vrot.lane.b32.xlu1 %v6598_v61, %s6850_s4 }
0x1bd4   :  { %3962 = vrot.lane.b32.xlu0 %v6598_v61, %s6849_s16 }
0x1be6   :  { %v3802_v49 = vpop.xlane.xlu0 %3801 }
0x1be7   :  { %5562 = vrcp.f32 %v3802_v49 }
0x1bef   :  { %v3799_v60 = vpop.xlane.xlu1 %3798 }
0x1bf0   :  { %5564 = vrcp.f32 %v3799_v60 }
0x1bf1   :  { %v5563_v50 = vpop.eup %5562 }
0x1bf2   :  { %v3830_v52 = vmul.f32 %v5563_v50, %v6610_v41 }
0x1bfa   :  { %v5565_v51 = vpop.eup %5564 }
0x1bfb   :  { %v3829_v54 = vmul.f32 %v5565_v51, %v6614_v5 }
0x1bfd   :  { %v3837_v55 = vpack.c.bf16 %v3830_v52, %v3829_v54 }
0x1bff   :  { %5160 = vmatmul.mubr.msk.bf16.vlgmr.msra.gmra.mrb[64].mxu1 %vm1689_vm10, %v3837_v55 }
0x1c00   :  { %5172 = vmatpush3.bf16.msra.mxu1 %v3961_v47  ;;  %5175 = vmatprep.mubr.msk.bf16.mxu1 %vm5603_vm1, %v5602_v0  ;;  %v4645_v47 = vld [vmem:[%s6771_s19 + $0x1] ss:$0 sm:$0xff] }
0x1c01   :  { %5173 = vmatprep.subr.bf16.mxu1 %v5602_v0 }
0x1c3f   :  { %v3808_v56 = vpop.xlane.xlu0 %3807 }
0x1c40   :  { %5566 = vrcp.f32 %v3808_v56 }
0x1c43   :  { %v3805_v2 = vpop.xlane.xlu1 %3804 }
0x1c44   :  { %5568 = vrcp.f32 %v3805_v2 }
0x1c47   :  { %v3814_v40 = vpop.xlane.xlu0 %3813 }
0x1c48   :  { %5570 = vrcp.f32 %v3814_v40  ;;  %v3811_v42 = vpop.xlane.xlu1 %3810 }
0x1c49   :  { %5572 = vrcp.f32 %v3811_v42 }
0x1c4a   :  { %v5567_v61 = vpop.eup %5566 }
0x1c4b   :  { %v3820_v57 = vpop.xlane.xlu0 %3819  ;;  %v3832_v1 = vmul.f32 %v5567_v61, %v6618_v23  ;;  %v5427_v23 = vld [vmem:[%s6770_s18 + $0x18] sm:$0xff]  }
0x1c4c   :  { %5574 = vrcp.f32 %v3820_v57  ;;  %v3817_v62 = vpop.xlane.xlu1 %3816 }
0x1c4d   :  { %5576 = vrcp.f32 %v3817_v62 }
0x1c4e   :  { %v5569_v63 = vpop.eup %5568 }
0x1c4f   :  { %v3831_v15 = vmul.f32 %v5569_v63, %v5553_v29  ;;  %v3963_v35 = vpop.permute.xlu0 %3962 }
0x1c50   :  { %v3969_v38 = vsel %vm1791_vm11, %v3963_v35, 0  ;;  %v4026_v6 = vpop.permute.xlu1 %4025 }
0x1c51   :  { %5174 = vmatpush3.bf16.msra.mxu1 %v3969_v38  ;;  %v3896_v41 = vpack.c.bf16 %v3832_v1, %v3831_v15  ;;  %v4032_v12 = vsel %vm1791_vm11, %v4026_v6, 0  ;;  %v5429_v38 = vld [vmem:[%s6772_s20 + $0x18] sm:$0xff]  }
0x1c52   :  { %v5571_v44 = vpop.eup %5570  ;;  %5187 = vmatprep.subr.bf16.mxu1 %v5602_v0 }
0x1c53   :  { %v5573_v5 = vpop.eup %5572  ;;  %v3834_v45 = vmul.f32 %v5571_v44, %v5555_v4  ;;  %5168 = vmatmul.mubr.msk.bf16.vlgmr.msra.gmra.mrb[68].mxu0 %vm1689_vm10, %v3896_v41 }
0x1c54   :  { %v3833_v22 = vmul.f32 %v5573_v5, %v5557_v7  ;;  %5180 = vmatpush3.bf16.msra.mxu0 %v4024_v48  ;;  %5183 = vmatprep.mubr.msk.bf16.mxu0 %vm5603_vm1, %v5602_v0 }
0x1c55   :  { %5181 = vmatprep.subr.bf16.mxu0 %v5602_v0 }
0x1c56   :  { %v5575_v8 = vpop.eup %5574  ;;  %v3959_v9 = vpack.c.bf16 %v3834_v45, %v3833_v22 }
0x1c57   :  { %v5577_v10 = vpop.eup %5576  ;;  %v3836_v11 = vmul.f32 %v5575_v8, %v5559_v43 }
0x1c58   :  { %v3835_v13 = vmul.f32 %v5577_v10, %v5561_v16  ;;  %5182 = vmatpush3.bf16.msra.mxu0 %v4032_v12  ;;  %5176 = vmatmul.mubr.msk.bf16.vlgmr.msra.gmra.mrb[68].mxu1 %vm1689_vm10, %v3959_v9  ;;  %v4651_v10 = vld [vmem:[%s6766_s24 + $0x4] ss:$0 sm:$0xff] }
0x1c59   :  { %5191 = vmatprep.mubr.msk.bf16.mxu1 %vm5603_vm1, %v5602_v0  ;;  %5195 = vmatprep.subr.bf16.mxu0 %v5602_v0 }
0x1c5a   :  { %v4022_v53 = vpack.c.bf16 %v3836_v11, %v3835_v13  ;;  %5188 = vmatpush3.bf16.msra.mxu1 %v5426_v20  ;;  %v5430_v20 = vld [vmem:[%s6773_s22 + $0x10] sm:$0xff]  }
0x1c5b   :  { %5189 = vmatprep.subr.bf16.mxu1 %v5602_v0 }
0x1c5c   :  { %5184 = vmatmul.mubr.msk.bf16.vlgmr.msra.gmra.mrb[72].mxu0 %vm1689_vm10, %v4022_v53  ;;  %v4652_v53 = vld [vmem:[%s6767_s25 + $0x4] ss:$0 sm:$0xff] }
0x1c5d   :  { %5199 = vmatprep.mubr.msk.bf16.mxu0 %vm5603_vm1, %v5602_v0 }
0x1c5e   :  { %5190 = vmatpush3.bf16.msra.mxu1 %v5427_v23 }
0x1c5f   :  { %5203 = vmatprep.subr.bf16.mxu1 %v5602_v0 }
0x1cd2   :  { %v3887_v14 = vpop.f32.mrb[64].mxu1 }
0x1cd3   :  { %3894 = vst.msk [vmem:[#allocation2] sm:$0xff] %vm344_vm5, %v3887_v14  ;;  %v5161_v17 = vpop.f32.mrb[65].mxu1 }
0x1cd4   :  { %v3890_v19 = vpop.f32.mrb[66].mxu1 }
0x1cd5   :  { %3895 = vst.msk [vmem:[#allocation2 + $0x8] sm:$0xff] %vm344_vm5, %v3890_v19  ;;  %v5162_v34 = vpop.f32.mrb[67].mxu1 }
0x1d26   :  { %v3942_v21 = vpop.f32.mrb[68].mxu0 }
0x1d27   :  { %3951 = vrot.lane.b32.xlu0 %v3942_v21, %s6851_s2  ;;  %v5169_v3 = vpop.f32.mrb[69].mxu0  ;;  %v5431_v21 = vld [vmem:[%s6773_s22 + $0x18] sm:$0xff]  }
0x1d28   :  { %v3945_v24 = vpop.f32.mrb[70].mxu0  ;;  %v4658_v3 = vld [vmem:[%s6774_s21 + $0x1] ss:$0 sm:$0xff] }
0x1d29   :  { %3953 = vrot.lane.b32.xlu1 %v3945_v24, %s6851_s2  ;;  %v5170_v25 = vpop.f32.mrb[71].mxu0  ;;  %s6865_s2 = sld [smem:[#allocation20_spill]] }
0x1d2b   :  { %v4005_v26 = vpop.f32.mrb[68].mxu1 }
0x1d2c   :  { %4014 = vrot.lane.b32.xlu0 %v4005_v26, %s6852_s7  ;;  %v5177_v27 = vpop.f32.mrb[69].mxu1 }
0x1d2d   :  { %v4008_v28 = vpop.f32.mrb[70].mxu1 }
0x1d2e   :  { %4016 = vrot.lane.b32.xlu1 %v4008_v28, %s6852_s7  ;;  %v5178_v29 = vpop.f32.mrb[71].mxu1 }
0x1d2f   :  { %v4068_v30 = vpop.f32.mrb[72].mxu0 }
0x1d30   :  { %4077 = vrot.lane.b32.xlu0 %v4068_v30, %s6853_s30  ;;  %v5185_v32 = vpop.f32.mrb[73].mxu0 }
0x1d31   :  { %v4071_v33 = vpop.f32.mrb[74].mxu0 }
0x1d32   :  { %4079 = vrot.lane.b32.xlu1 %v4071_v33, %s6853_s30  ;;  %v5186_v4 = vpop.f32.mrb[75].mxu0  ;;  %v4667_v33 = vld [vmem:[%s6862_s17 + $0x1] ss:$0 sm:$0xff] }
0x1d99   :  { %v3952_v7 = vpop.permute.xlu0 %3951 }
0x1d9a   :  { %3957 = vst.msk [vmem:[#allocation2] sm:$0xff] %vm913_vm7, %v3952_v7 }
0x1d9b   :  { %v3954_v36 = vpop.permute.xlu1 %3953 }
0x1d9c   :  { %3958 = vst.msk [vmem:[#allocation2 + $0x8] sm:$0xff] %vm913_vm7, %v3954_v36 }
0x1d9e   :  { %v4015_v37 = vpop.permute.xlu0 %4014 }
0x1d9f   :  { %4020 = vst.msk [vmem:[#allocation2] sm:$0xff] %vm972_vm8, %v4015_v37 }
0x1da0   :  { %v4017_v31 = vpop.permute.xlu1 %4016 }
0x1da1   :  { %4021 = vst.msk [vmem:[#allocation2 + $0x8] sm:$0xff] %vm972_vm8, %v4017_v31 }
0x1da2   :  { %v4078_v39 = vpop.permute.xlu0 %4077 }
0x1da3   :  { %4083 = vst.msk [vmem:[#allocation2] sm:$0xff] %vm1031_vm9, %v4078_v39 }
0x1da4   :  { %v4080_v43 = vpop.permute.xlu1 %4079 }
0x1da5   :  { %4084 = vst.msk [vmem:[#allocation2 + $0x8] sm:$0xff] %vm1031_vm9, %v4080_v43 }
0x1daa   :  { %v4085_v16 = vld [vmem:[#allocation2] sm:$0xff] }
0x1dac   :  { %v4086_v18 = vld [vmem:[#allocation2 + $0x8] sm:$0xff] }
0x1dad   :  { %v4087_v46 = vpack.c.bf16 %v4086_v18, %v4085_v16 }
0x1daf   :  { %5192 = vmatmul.mubr.msk.bf16.vlgmr.msra.gmra.mrb[72].mxu1 %vm288_vm4, %v4087_v46 }
0x1db0   :  { %5207 = vmatprep.mubr.msk.bf16.mxu1 %vm5603_vm1, %v5602_v0  ;;  %5204 = vmatpush3.bf16.msra.mxu1 %v5430_v20 }
0x1db1   :  { %5205 = vmatprep.subr.bf16.mxu1 %v5602_v0 }
0x1db4   :  { %5206 = vmatpush3.bf16.msra.mxu1 %v5431_v21 }
0x1e82   :  { %v4143_v48 = vpop.f32.mrb[72].mxu1 }
0x1e83   :  { %v4144_v49 = vadd.f32 %v4645_v47, %v4143_v48  ;;  %v5193_v60 = vpop.f32.mrb[73].mxu1 }
0x1e84   :  { %v4146_v50 = vpop.f32.mrb[74].mxu1 }
0x1e85   :  { %v4150_v51 = vadd.f32 %v4144_v49, %v6511_v58  ;;  %v4147_v52 = vadd.f32 %v4645_v47, %v4146_v50  ;;  %v5194_v54 = vpop.f32.mrb[75].mxu1 }
0x1e87   :  { %v4151_v55 = vadd.f32 %v4147_v52, %v6513_v59  ;;  %v4156_v56 = vsel %vm288_vm4, %v4150_v51, 0.0  ;;  %v5428_v59 = vld [vmem:[%s6772_s20 + $0x10] sm:$0xff]  }
0x1e88   :  { %4157 = vadd.xlane.f32.xlu0 %v4156_v56  ;;  %5196 = vmatpush3.bf16.msra.mxu0 %v5428_v59 }
0x1e89   :  { %v4159_v2 = vsel %vm288_vm4, %v4151_v55, 0.0  ;;  %5197 = vmatprep.subr.bf16.mxu0 %v5602_v0 }
0x1e8a   :  { %4160 = vadd.xlane.f32.xlu1 %v4159_v2  ;;  %v5432_v2 = vld [vmem:[%s6863_s29] sm:$0xff]  }
0x1e8c   :  { %5198 = vmatpush3.bf16.msra.mxu0 %v5429_v38 }
0x1e8d   :  { %5211 = vmatprep.subr.bf16.mxu0 %v5602_v0 }
0x1f15   :  { %v4158_v40 = vpop.xlane.xlu0 %4157 }
0x1f16   :  { %v4162_v42 = vmul.f32 0.03125, %v4158_v40  ;;  %v5433_v40 = vld [vmem:[%s6863_s29 + $0x8] sm:$0xff]  }
0x1f17   :  { %v4161_v57 = vpop.xlane.xlu1 %4160 }
0x1f18   :  { %v4164_v61 = vsub.f32 %v4150_v51, %v4162_v42  ;;  %v4163_v62 = vmul.f32 0.03125, %v4161_v57  ;;  %v33_v42 = vstv %s6864_s11 }
0x1f19   :  { %34 = vst [vmem:[#allocation3] sm:$0x1] %v33_v42 }
0x1f1a   :  { %v4165_v63 = vsub.f32 %v4151_v55, %v4163_v62  ;;  %v4166_v1 = vmul.f32 %v4164_v61, %v4164_v61 }
0x1f1c   :  { %v4168_v15 = vsel %vm288_vm4, %v4166_v1, 0.0  ;;  %v4167_v58 = vmul.f32 %v4165_v63, %v4165_v63 }
0x1f1d   :  { %4169 = vadd.xlane.f32.xlu0 %v4168_v15 }
0x1f1e   :  { %v4171_v35 = vsel %vm288_vm4, %v4167_v58, 0.0 }
0x1f21   :  { %4172 = vadd.xlane.f32.xlu0 %v4171_v35  ;;  %v4673_v35 = vld [vmem:[%s6766_s24 + $0x5] ss:$0 sm:$0xff] }
0x1faa   :  { %v4170_v41 = vpop.xlane.xlu0 %4169 }
0x1fab   :  { %v4174_v44 = vmul.f32 0.03125, %v4170_v41 }
0x1fad   :  { %v4176_v5 = vadd.f32 1e-05, %v4174_v44  ;;  %v4674_v44 = vld [vmem:[%s6767_s25 + $0x5] ss:$0 sm:$0xff] }
0x1fae   :  { %v4173_v45 = vpop.xlane.xlu0 %4172 }
0x1faf   :  { %5578 = vrsqrt.f32 %v4176_v5  ;;  %v4175_v22 = vmul.f32 0.03125, %v4173_v45 }
0x1fb1   :  { %v4177_v6 = vadd.f32 1e-05, %v4175_v22 }
0x1fb3   :  { %5580 = vrsqrt.f32 %v4177_v6 }
0x1fb9   :  { %v5579_v8 = vpop.eup %5578 }
0x1fba   :  { %v4180_v9 = vmul.f32 %v5579_v8, %v4164_v61  ;;  %v4675_v8 = vld [vmem:[#allocation3] ss:$0 sm:$0xff] }
0x1fbc   :  { %v4188_v12 = vmul.f32 %v4651_v10, %v4180_v9 }
0x1fbd   :  { %v5581_v11 = vpop.eup %5580 }
0x1fbe   :  { %v4181_v13 = vmul.f32 %v5581_v11, %v4165_v63  ;;  %v4196_v17 = vadd.f32 %v4652_v53, %v4188_v12 }
0x1fc0   :  { %v4189_v14 = vmul.f32 %v4651_v10, %v4181_v13 }
0x1fc2   :  { %v4197_v19 = vadd.f32 %v4652_v53, %v4189_v14 }
0x1fc4   :  { %v4203_v34 = vpack.c.bf16 %v4197_v19, %v4196_v17 }
0x1fc6   :  { %5200 = vmatmul.mubr.msk.bf16.vlgmr.msra.gmra.mrb[76].mxu0 %vm288_vm4, %v4203_v34 }
0x1fc7   :  { %5215 = vmatprep.mubr.msk.bf16.mxu0 %vm5603_vm1, %v5602_v0  ;;  %5212 = vmatpush3.bf16.msra.mxu0 %v5432_v2 }
0x1fc8   :  { %5213 = vmatprep.subr.bf16.mxu0 %v5602_v0 }
0x1fcb   :  { %5214 = vmatpush3.bf16.msra.mxu0 %v5433_v40 }
0x2099   :  { %v4261_v23 = vpop.f32.mrb[76].mxu0 }
0x209a   :  { %v4262_v24 = vadd.f32 %v4658_v3, %v4261_v23  ;;  %v5201_v25 = vpop.f32.mrb[77].mxu0 }
0x209b   :  { %v4264_v26 = vpop.f32.mrb[78].mxu0 }
0x209c   :  { %v4265_v27 = vadd.f32 %v4658_v3, %v4264_v26  ;;  %v5202_v28 = vpop.f32.mrb[79].mxu0  ;;  %v4268_v29 = vmax.f32 %v4262_v24, 0.0 }
0x209e   :  { %v4269_v30 = vmax.f32 %v4265_v27, 0.0 }
0x20a0   :  { %v4275_v32 = vpack.c.bf16 %v4269_v30, %v4268_v29 }
0x20a2   :  { %5208 = vmatmul.mubr.msk.bf16.vlgmr.msra.gmra.mrb[76].mxu1 %vm288_vm4, %v4275_v32 }
0x2175   :  { %v4333_v4 = vpop.f32.mrb[76].mxu1 }
0x2176   :  { %v4334_v7 = vadd.f32 %v4667_v33, %v4333_v4  ;;  %v5209_v36 = vpop.f32.mrb[77].mxu1 }
0x2177   :  { %v4336_v37 = vpop.f32.mrb[78].mxu1 }
0x2178   :  { %v4340_v31 = vadd.f32 %v4334_v7, %v4196_v17  ;;  %v4337_v39 = vadd.f32 %v4667_v33, %v4336_v37  ;;  %v5210_v43 = vpop.f32.mrb[79].mxu1 }
0x217a   :  { %v4341_v16 = vadd.f32 %v4337_v39, %v4197_v19  ;;  %v4346_v18 = vsel %vm288_vm4, %v4340_v31, 0.0 }
0x217b   :  { %4347 = vadd.xlane.f32.xlu1 %v4346_v18 }
0x217c   :  { %v4349_v46 = vsel %vm288_vm4, %v4341_v16, 0.0 }
0x217d   :  { %4350 = vadd.xlane.f32.xlu0 %v4349_v46 }
0x2208   :  { %v4348_v47 = vpop.xlane.xlu1 %4347 }
0x2209   :  { %v4352_v48 = vmul.f32 0.03125, %v4348_v47 }
0x220a   :  { %v4351_v49 = vpop.xlane.xlu0 %4350 }
0x220b   :  { %v4354_v60 = vsub.f32 %v4340_v31, %v4352_v48  ;;  %v4353_v50 = vmul.f32 0.03125, %v4351_v49 }
0x220d   :  { %v4355_v51 = vsub.f32 %v4341_v16, %v4353_v50  ;;  %v4356_v52 = vmul.f32 %v4354_v60, %v4354_v60 }
0x220f   :  { %v4358_v54 = vsel %vm288_vm4, %v4356_v52, 0.0  ;;  %v4357_v55 = vmul.f32 %v4355_v51, %v4355_v51 }
0x2210   :  { %4359 = vadd.xlane.f32.xlu1 %v4358_v54 }
0x2211   :  { %v4361_v56 = vsel %vm288_vm4, %v4357_v55, 0.0 }
0x2212   :  { %4362 = vadd.xlane.f32.xlu0 %v4361_v56 }
0x229d   :  { %v4360_v57 = vpop.xlane.xlu1 %4359 }
0x229e   :  { %v4364_v61 = vmul.f32 0.03125, %v4360_v57 }
0x229f   :  { %v4363_v62 = vpop.xlane.xlu0 %4362 }
0x22a0   :  { %v4366_v63 = vadd.f32 1e-05, %v4364_v61  ;;  %v4365_v1 = vmul.f32 0.03125, %v4363_v62 }
0x22a2   :  { %5582 = vrsqrt.f32 %v4366_v63  ;;  %v4367_v15 = vadd.f32 1e-05, %v4365_v1 }
0x22a4   :  { %5584 = vrsqrt.f32 %v4367_v15 }
0x22ac   :  { %v5583_v58 = vpop.eup %5582 }
0x22ad   :  { %v4370_v0 = vmul.f32 %v5583_v58, %v4354_v60 }
0x22ae   :  { %v5585_v59 = vpop.eup %5584 }
0x22af   :  { %v4378_v38 = vmul.f32 %v4673_v35, %v4370_v0  ;;  %v4371_v41 = vmul.f32 %v5585_v59, %v4355_v51 }
0x22b1   :  { %v4379_v5 = vmul.f32 %v4673_v35, %v4371_v41  ;;  %v4386_v45 = vadd.f32 %v4674_v44, %v4378_v38 }
0x22b3   :  { %v4387_v22 = vadd.f32 %v4674_v44, %v4379_v5 }
0x22b5   :  { %v4392_v6 = vpack.c.bf16 %v4387_v22, %v4386_v45 }
0x22b7   :  { %5216 = vmatmul.mubr.msk.bf16.vlgmr.msra.gmra.mrb[80].mxu0 %vm288_vm4, %v4392_v6 }
0x238a   :  { %v4449_v9 = vpop.f32.mrb[80].mxu0 }
0x238b   :  { %v4450_v10 = vadd.f32 %v4675_v8, %v4449_v9  ;;  %v5217_v11 = vpop.f32.mrb[81].mxu0 }
0x238c   :  { %v4452_v12 = vpop.f32.mrb[82].mxu0 }
0x238d   :  { %4457 = vst.msk [vmem:[%s6865_s2 - $0x7] sm:$0x80] %vm4456_vm12, %v4450_v10  ;;  %v4453_v13 = vadd.f32 %v4675_v8, %v4452_v12  ;;  %v5218_v53 = vpop.f32.mrb[83].mxu0 }
0x238f   :  { %4679 = vst.msk [vmem:[%s6865_s2 - $0x6] sm:$0x80] %vm4456_vm12, %v4453_v13 }

</bundles_post_ra>
